<compile_context>
chip_gen: v7x
topology: tpu7x:2x2x1
jax: 0.10.0
libtpu: 0.0.40
codegen_flags: <defaults>
</compile_context>

<pallas_src>
import functools
import math

import jax
import jax.numpy as jnp
from jax import lax
from jax.experimental import pallas as pl
from jax.experimental.pallas import tpu as pltpu

EPS = 1e-6


def _layer_norm(v, gamma, beta):
    mu = jnp.mean(v, axis=-1, keepdims=True)
    var = jnp.mean((v - mu) ** 2, axis=-1, keepdims=True)
    return (v - mu) * lax.rsqrt(var + EPS) * gamma + beta


def encoder_layer_kernel(
    x_ref, mask_ref,
    wq_ref, bq_ref, wkv_ref, bkv_ref, wo_ref, bo_ref,
    g1_ref, be1_ref, g2_ref, be2_ref,
    w1_ref, b1_ref, w2_ref, b2_ref,
    o_ref,
    ln1_scr, k_scr, v_scr, head_scr,
    *, num_heads: int, tq: int, f_chunk: int,
):
    S, D = x_ref.shape                          # full sequence block (S, D)
    dk = D // num_heads

    qi = pl.program_id(1)
    q_start = pl.multiple_of(qi * tq, tq)       # sublane-aligned tile start

    # ---- once per batch element (qi == 0): LN1 over full seq + K/V proj ----
    @pl.when(qi == 0)
    def _():
        x_full = x_ref[...].astype(jnp.float32)                       # (S, D)
        ln1_full = _layer_norm(
            x_full, g1_ref[...], be1_ref[...]).astype(jnp.bfloat16)
        ln1_scr[...] = ln1_full
        kv = jnp.dot(ln1_full, wkv_ref[...],
                     preferred_element_type=jnp.float32) + bkv_ref[...]  # (S, 2D)
        k_scr[...] = kv[:, :D].astype(jnp.bfloat16)
        v_scr[...] = kv[:, D:].astype(jnp.bfloat16)

    # ---- sublayer 1: multi-head self-attention for this (TQ, D) tile ----
    ln1_tile = ln1_scr[pl.ds(q_start, tq), :]                  # bf16 (TQ, D)
    # softmax 1/sqrt(dk) scale is folded into wq/bq host-side
    q_tile = jnp.dot(ln1_tile, wq_ref[...],
                     preferred_element_type=jnp.float32) + bq_ref[...]

    mask = mask_ref[...].astype(jnp.float32)                   # (1, S)
    mask_bias = jnp.where(mask == 0.0, -1e9, 0.0)              # (1, S)

    k_all = k_scr[...]                                         # bf16 (S, D)
    v_all = v_scr[...]                                         # bf16 (S, D)
    for h in range(num_heads):
        sl = slice(h * dk, (h + 1) * dk)
        qh = q_tile[:, sl].astype(jnp.bfloat16)                # (TQ, dk)
        # q @ k^T without materializing a transpose
        scores = lax.dot_general(
            qh, k_all[:, sl], (((1,), (1,)), ((), ())),
            preferred_element_type=jnp.float32)                # (TQ, S)
        scores = scores + mask_bias
        scores = scores - jnp.max(scores, axis=-1, keepdims=True)
        p = jnp.exp(scores)
        p = p * pl.reciprocal(jnp.sum(p, axis=-1, keepdims=True), approx=True)
        head_scr[:, sl] = jnp.dot(
            p.astype(jnp.bfloat16), v_all[:, sl],
            preferred_element_type=jnp.float32).astype(jnp.bfloat16)

    # single full-width output projection (K = D, fills the MXU)
    attn = jnp.dot(head_scr[...], wo_ref[...],
                   preferred_element_type=jnp.float32)         # (TQ, D)
    x_tile = x_ref[pl.ds(q_start, tq), :].astype(jnp.float32)  # (TQ, D)
    x1 = x_tile + attn + bo_ref[...]          # residual (dropout = identity)

    # ---- sublayer 2: feed-forward with pre-norm residual (chunked F) ----
    ln2_bf = _layer_norm(x1, g2_ref[...], be2_ref[...]).astype(jnp.bfloat16)
    F = w1_ref.shape[1]
    ff = jnp.zeros((tq, D), jnp.float32)
    for c in range(F // f_chunk):             # static chunking over hidden dim
        cs = slice(c * f_chunk, (c + 1) * f_chunk)
        h1 = jnp.dot(ln2_bf, w1_ref[:, cs],
                     preferred_element_type=jnp.float32) + b1_ref[:, cs]
        h1 = jnp.maximum(h1, 0.0).astype(jnp.bfloat16)
        ff = ff + jnp.dot(h1, w2_ref[cs, :],
                          preferred_element_type=jnp.float32)
    ff = ff + b2_ref[...]

    o_ref[...] = (x1 + ff).astype(o_ref.dtype)


def encoder_layer(x, src_mask, params, *, num_heads, tq=None, f_chunk=None):
    B, S, D = x.shape
    F = params["w1"].shape[1]
    assert D % num_heads == 0
    dk = D // num_heads
    scale = 1.0 / math.sqrt(dk)

    if tq is None:
        tq = S if S <= 128 else next(
            (c for c in (128, 64, 32, 16, 8) if S % c == 0), S)
    assert S % tq == 0, "sequence length must be divisible by the query tile"
    if f_chunk is None:
        f_chunk = next((c for c in (512, 384, 256, 128) if F % c == 0), F)
    assert F % f_chunk == 0, "FFN hidden dim must be divisible by f_chunk"

    # host-side packing: fold softmax scale into wq/bq, pack wk|wv, bf16 weights
    wq = (params["wq"] * scale).astype(jnp.bfloat16)
    bq = (params["bq"] * scale).astype(jnp.float32)
    wkv = jnp.concatenate([params["wk"], params["wv"]], axis=1).astype(jnp.bfloat16)
    bkv = jnp.concatenate([params["bk"], params["bv"]], axis=1).astype(jnp.float32)
    wo = params["wo"].astype(jnp.bfloat16)
    w1 = params["w1"].astype(jnp.bfloat16)
    w2 = params["w2"].astype(jnp.bfloat16)

    operands = (
        x, src_mask,
        wq, bq, wkv, bkv, wo, params["bo"],
        params["g1"], params["be1"], params["g2"], params["be2"],
        w1, params["bb1"], w2, params["bb2"],
    )

    kernel = functools.partial(
        encoder_layer_kernel, num_heads=num_heads, tq=tq, f_chunk=f_chunk)

    try:
        vmem_cap = int(pltpu.get_tpu_info().vmem_capacity_bytes)
    except Exception:
        vmem_cap = 128 << 20                       # conservative default

    weight_bytes = sum(int(a.size) * a.dtype.itemsize for a in operands[2:])

    def build(single_buffer_weights: bool):
        wkwargs = ({"pipeline_mode": pl.Buffered(1)}
                   if single_buffer_weights else {})

        def wspec(shape):
            # grid-invariant weight/bias block
            return pl.BlockSpec(shape, lambda b, qi, _n=len(shape): (0,) * _n,
                                **wkwargs)

        in_specs = [
            pl.BlockSpec((None, S, D), lambda b, qi: (b, 0, 0)),   # x (full seq)
            pl.BlockSpec((None, 1, S), lambda b, qi: (b, 0, 0)),   # mask
            wspec((D, D)), wspec((1, D)),          # wq (scaled), bq (scaled)
            wspec((D, 2 * D)), wspec((1, 2 * D)),  # wkv, bkv
            wspec((D, D)), wspec((1, D)),          # wo, bo
            wspec((1, D)), wspec((1, D)),          # ln1 gamma/beta
            wspec((1, D)), wspec((1, D)),          # ln2 gamma/beta
            wspec((D, F)), wspec((1, F)),          # w1, b1
            wspec((F, D)), wspec((1, D)),          # w2, b2
        ]
        out_specs = pl.BlockSpec((None, tq, D), lambda b, qi: (b, qi, 0))

        scratch_shapes = [
            pltpu.VMEM((S, D), jnp.bfloat16),      # ln1 cache
            pltpu.VMEM((S, D), jnp.bfloat16),      # K cache
            pltpu.VMEM((S, D), jnp.bfloat16),      # V cache
            pltpu.VMEM((tq, D), jnp.bfloat16),     # per-head output concat
        ]

        # generation-aware scoped-VMEM sizing (includes in-kernel intermediates)
        act_bytes = S * D * x.dtype.itemsize + S * src_mask.dtype.itemsize
        out_bytes = tq * D * x.dtype.itemsize
        scratch_bytes = (3 * S * D + tq * D) * 2
        interm_bytes = (2 * S * D * 4            # x_full + ln1 (f32, qi==0)
                        + 2 * S * D * 4          # kv f32 (qi==0)
                        + 4 * tq * D * 4         # q_tile, x1, ln2, ff
                        + tq * S * 4             # scores
                        + tq * f_chunk * 4)      # h1
        wmult = 1 if single_buffer_weights else 2
        need = (2 * act_bytes + 2 * out_bytes + wmult * weight_bytes
                + scratch_bytes + interm_bytes + (4 << 20))
        vmem_limit = int(min(max(need, 16 << 20), int(0.85 * vmem_cap)))

        return pl.pallas_call(
            kernel,
            out_shape=jax.ShapeDtypeStruct((B, S, D), x.dtype),
            grid_spec=pltpu.PrefetchScalarGridSpec(
                num_scalar_prefetch=0,
                grid=(B, S // tq),
                in_specs=in_specs,
                out_specs=out_specs,
                scratch_shapes=scratch_shapes,
            ),
            compiler_params=pltpu.CompilerParams(
                # qi must stay sequential on one core (K/V scratch cache)
                dimension_semantics=("parallel", "arbitrary"),
                vmem_limit_bytes=vmem_limit,
            ),
        )

    try:
        out = build(True)(*operands)
        jax.block_until_ready(out)
        return out
    except Exception:
        # TODO(synk): pl.Buffered(1) per-operand buffering unsupported on this
        # JAX version; fall back to default double-buffered weight blocks.
        return build(False)(*operands)

    # TODO(synk): for very long S / large F on v7x, stream K/V and the FFN
    # weights (flash-style KV tiles + F-blocked w1/w2 via emit_pipeline) so
    # VMEM becomes independent of S and F.


# ------------------------- pure-JAX reference -------------------------
def encoder_layer_ref(x, src_mask, p, *, num_heads):
    B, S, D = x.shape
    dk = D // num_heads

    def ln(v, g, b):
        mu = jnp.mean(v, axis=-1, keepdims=True)
        var = jnp.mean((v - mu) ** 2, axis=-1, keepdims=True)
        return (v - mu) / jnp.sqrt(var + EPS) * g + b

    ln1 = ln(x, p["g1"], p["be1"])
    q = ln1 @ p["wq"] + p["bq"]
    k = ln1 @ p["wk"] + p["bk"]
    v = ln1 @ p["wv"] + p["bv"]
    q = q.reshape(B, S, num_heads, dk).transpose(0, 2, 1, 3)
    k = k.reshape(B, S, num_heads, dk).transpose(0, 2, 1, 3)
    v = v.reshape(B, S, num_heads, dk).transpose(0, 2, 1, 3)
    scores = jnp.einsum("bhqd,bhkd->bhqk", q, k) / jnp.sqrt(jnp.float32(dk))
    mask = src_mask[:, None, :, :]  # (B,1,1,S)
    scores = jnp.where(mask == 0.0, -1e9, scores)
    attn = jax.nn.softmax(scores, axis=-1)
    out = jnp.einsum("bhqk,bhkd->bhqd", attn, v).transpose(0, 2, 1, 3).reshape(B, S, D)
    x1 = x + (out @ p["wo"] + p["bo"])
    ln2 = ln(x1, p["g2"], p["be2"])
    ff = jnp.maximum(ln2 @ p["w1"] + p["bb1"], 0.0) @ p["w2"] + p["bb2"]
    return x1 + ff


if __name__ == "__main__":
    B, S, D, H, F = 2, 8, 32, 4, 64

    key = jax.random.PRNGKey(0)
    keys = jax.random.split(key, 12)

    def init(k, shape, scale=0.05):
        return jax.random.normal(k, shape, jnp.float32) * scale

    params = {
        "wq": init(keys[0], (D, D)), "bq": init(keys[1], (1, D)),
        "wk": init(keys[2], (D, D)), "bk": init(keys[3], (1, D)),
        "wv": init(keys[4], (D, D)), "bv": init(keys[5], (1, D)),
        "wo": init(keys[6], (D, D)), "bo": init(keys[7], (1, D)),
        "g1": jnp.ones((1, D), jnp.float32), "be1": jnp.zeros((1, D), jnp.float32),
        "g2": jnp.ones((1, D), jnp.float32), "be2": jnp.zeros((1, D), jnp.float32),
        "w1": init(keys[8], (D, F)), "bb1": init(keys[9], (1, F)),
        "w2": init(keys[10], (F, D)), "bb2": init(keys[11], (1, D)),
    }

    x = jax.random.normal(jax.random.PRNGKey(1), (B, S, D), jnp.float32)
    # src_mask: (B, 1, S), all valid positions (matches PyTorch (B,1,1,S) semantics)
    src_mask = jnp.ones((B, 1, S), jnp.float32)

    out = encoder_layer(x, src_mask, params, num_heads=H)
    jax.block_until_ready(out)

    ref = encoder_layer_ref(x, src_mask, params, num_heads=H)
    assert out.shape == (B, S, D)
    # bf16 matmuls (f32 accumulation) vs. f32 reference -> loosened tolerance
    assert jnp.allclose(out, ref, atol=2e-2, rtol=2e-2), "mismatch vs reference"

    # TODO(synk): dropout inside ResidualConnection / attention is identity (eval mode).
    print("KERNEL_OK")
</pallas_src>

<mosaic_0001>
module attributes {stable_mosaic.version = 11 : i64} {
  func.func @encoder_layer_kernel(%arg0: i32, %arg1: i32, %arg2: memref<1x8x32xf32, #tpu.memory_space<vmem>>, %arg3: memref<1x1x8xf32, #tpu.memory_space<vmem>>, %arg4: memref<32x32xbf16, #tpu.memory_space<vmem>>, %arg5: memref<1x32xf32, #tpu.memory_space<vmem>>, %arg6: memref<32x64xbf16, #tpu.memory_space<vmem>>, %arg7: memref<1x64xf32, #tpu.memory_space<vmem>>, %arg8: memref<32x32xbf16, #tpu.memory_space<vmem>>, %arg9: memref<1x32xf32, #tpu.memory_space<vmem>>, %arg10: memref<1x32xf32, #tpu.memory_space<vmem>>, %arg11: memref<1x32xf32, #tpu.memory_space<vmem>>, %arg12: memref<1x32xf32, #tpu.memory_space<vmem>>, %arg13: memref<1x32xf32, #tpu.memory_space<vmem>>, %arg14: memref<32x64xbf16, #tpu.memory_space<vmem>>, %arg15: memref<1x64xf32, #tpu.memory_space<vmem>>, %arg16: memref<64x32xbf16, #tpu.memory_space<vmem>>, %arg17: memref<1x32xf32, #tpu.memory_space<vmem>>, %arg18: memref<1x8x32xf32, #tpu.memory_space<vmem>>, %arg19: memref<8x32xbf16, #tpu.memory_space<vmem>>, %arg20: memref<8x32xbf16, #tpu.memory_space<vmem>>, %arg21: memref<8x32xbf16, #tpu.memory_space<vmem>>, %arg22: memref<8x32xbf16, #tpu.memory_space<vmem>>) attributes {dimension_semantics = [#tpu.dimension_semantics<parallel>, #tpu.dimension_semantics<arbitrary>], iteration_bounds = array<i64: 2, 1>, scalar_prefetch = 0 : i64, scratch_operands = 4 : i64, tpu.core_type = #tpu.core_type<tc>, window_params = [{transform_indices = @transform_0, window_bounds = array<i64: 1, 8, 32>}, {transform_indices = @transform_1, window_bounds = array<i64: 1, 1, 8>}, {pipeline_mode = #tpu.pipeline_mode<synchronous>, transform_indices = @transform_2, window_bounds = array<i64: 32, 32>}, {pipeline_mode = #tpu.pipeline_mode<synchronous>, transform_indices = @transform_3, window_bounds = array<i64: 1, 32>}, {pipeline_mode = #tpu.pipeline_mode<synchronous>, transform_indices = @transform_4, window_bounds = array<i64: 32, 64>}, {pipeline_mode = #tpu.pipeline_mode<synchronous>, transform_indices = @transform_5, window_bounds = array<i64: 1, 64>}, {pipeline_mode = #tpu.pipeline_mode<synchronous>, transform_indices = @transform_6, window_bounds = array<i64: 32, 32>}, {pipeline_mode = #tpu.pipeline_mode<synchronous>, transform_indices = @transform_7, window_bounds = array<i64: 1, 32>}, {pipeline_mode = #tpu.pipeline_mode<synchronous>, transform_indices = @transform_8, window_bounds = array<i64: 1, 32>}, {pipeline_mode = #tpu.pipeline_mode<synchronous>, transform_indices = @transform_9, window_bounds = array<i64: 1, 32>}, {pipeline_mode = #tpu.pipeline_mode<synchronous>, transform_indices = @transform_10, window_bounds = array<i64: 1, 32>}, {pipeline_mode = #tpu.pipeline_mode<synchronous>, transform_indices = @transform_11, window_bounds = array<i64: 1, 32>}, {pipeline_mode = #tpu.pipeline_mode<synchronous>, transform_indices = @transform_12, window_bounds = array<i64: 32, 64>}, {pipeline_mode = #tpu.pipeline_mode<synchronous>, transform_indices = @transform_13, window_bounds = array<i64: 1, 64>}, {pipeline_mode = #tpu.pipeline_mode<synchronous>, transform_indices = @transform_14, window_bounds = array<i64: 64, 32>}, {pipeline_mode = #tpu.pipeline_mode<synchronous>, transform_indices = @transform_15, window_bounds = array<i64: 1, 32>}, {transform_indices = @transform_16, window_bounds = array<i64: 1, 8, 32>}]} {
    %c8_i32 = arith.constant 8 : i32
    %0 = arith.muli %arg1, %c8_i32 : i32
    %1 = tpu.assume_multiple %0, 8 : i32
    %c0_i32 = arith.constant 0 : i32
    %2 = arith.cmpi eq, %arg1, %c0_i32 : i32
    %3 = arith.extui %2 : i1 to i32
    %c0_i32_0 = arith.constant 0 : i32
    %4 = arith.cmpi ne, %3, %c0_i32_0 : i32
    scf.if %4 {
      %c0_69 = arith.constant 0 : index
      %c0_70 = arith.constant 0 : index
      %c0_71 = arith.constant 0 : index
      %159 = vector.load %arg2[%c0_69, %c0_70, %c0_71] : memref<1x8x32xf32, #tpu.memory_space<vmem>>, vector<1x8x32xf32>
      %160 = vector.shape_cast %159 : vector<1x8x32xf32> to vector<8x32xf32>
      %c0_72 = arith.constant 0 : index
      %c0_73 = arith.constant 0 : index
      %161 = vector.load %arg10[%c0_72, %c0_73] : memref<1x32xf32, #tpu.memory_space<vmem>>, vector<1x32xf32>
      %c0_74 = arith.constant 0 : index
      %c0_75 = arith.constant 0 : index
      %162 = vector.load %arg11[%c0_74, %c0_75] : memref<1x32xf32, #tpu.memory_space<vmem>>, vector<1x32xf32>
      %cst_76 = arith.constant dense<0.000000e+00> : vector<8xf32>
      %163 = vector.multi_reduction <add>, %160, %cst_76 [1] : vector<8x32xf32> to vector<8xf32>
      %164 = vector.shape_cast %163 : vector<8xf32> to vector<8x1xf32>
      %cst_77 = arith.constant 3.200000e+01 : f32
      %165 = vector.broadcast %cst_77 : f32 to vector<8x1xf32>
      %166 = arith.divf %164, %165 : vector<8x1xf32>
      %167 = vector.broadcast %166 : vector<8x1xf32> to vector<8x32xf32>
      %168 = arith.subf %160, %167 : vector<8x32xf32>
      %169 = arith.mulf %168, %168 : vector<8x32xf32>
      %cst_78 = arith.constant dense<0.000000e+00> : vector<8xf32>
      %170 = vector.multi_reduction <add>, %169, %cst_78 [1] : vector<8x32xf32> to vector<8xf32>
      %171 = vector.shape_cast %170 : vector<8xf32> to vector<8x1xf32>
      %cst_79 = arith.constant 3.200000e+01 : f32
      %172 = vector.broadcast %cst_79 : f32 to vector<8x1xf32>
      %173 = arith.divf %171, %172 : vector<8x1xf32>
      %174 = vector.broadcast %166 : vector<8x1xf32> to vector<8x32xf32>
      %175 = arith.subf %160, %174 : vector<8x32xf32>
      %cst_80 = arith.constant 9.99999997E-7 : f32
      %176 = vector.broadcast %cst_80 : f32 to vector<8x1xf32>
      %177 = arith.addf %173, %176 : vector<8x1xf32>
      %178 = math.rsqrt %177 : vector<8x1xf32>
      %179 = vector.broadcast %178 : vector<8x1xf32> to vector<8x32xf32>
      %180 = arith.mulf %175, %179 : vector<8x32xf32>
      %181 = vector.broadcast %161 : vector<1x32xf32> to vector<8x32xf32>
      %182 = arith.mulf %180, %181 : vector<8x32xf32>
      %183 = vector.broadcast %162 : vector<1x32xf32> to vector<8x32xf32>
      %184 = arith.addf %182, %183 : vector<8x32xf32>
      %185 = arith.truncf %184 : vector<8x32xf32> to vector<8x32xbf16>
      %c0_81 = arith.constant 0 : index
      %c0_82 = arith.constant 0 : index
      %186 = vector.load %arg19[%c0_81, %c0_82] : memref<8x32xbf16, #tpu.memory_space<vmem>>, vector<8x32xbf16>
      tpu.vector_store %arg19[%c0_81, %c0_82], %185 {strides = array<i32>} : memref<8x32xbf16, #tpu.memory_space<vmem>>, vector<8x32xbf16>,
      %c0_83 = arith.constant 0 : index
      %c0_84 = arith.constant 0 : index
      %187 = vector.load %arg6[%c0_83, %c0_84] : memref<32x64xbf16, #tpu.memory_space<vmem>>, vector<32x64xbf16>
      %cst_85 = arith.constant dense<0.000000e+00> : vector<8x64xf32>
      %188 = tpu.matmul %185, %187, %cst_85 {dimension_numbers = #tpu.dot_dimension_numbers<[1], [0], [0], [1], [0, 0, 1, 1], [], []>} : vector<8x32xbf16>, vector<32x64xbf16>, vector<8x64xf32> -> vector<8x64xf32>
      %c0_86 = arith.constant 0 : index
      %c0_87 = arith.constant 0 : index
      %189 = vector.load %arg7[%c0_86, %c0_87] : memref<1x64xf32, #tpu.memory_space<vmem>>, vector<1x64xf32>
      %190 = vector.broadcast %189 : vector<1x64xf32> to vector<8x64xf32>
      %191 = arith.addf %188, %190 : vector<8x64xf32>
      %192 = vector.extract_strided_slice %191 {offsets = [0, 0], sizes = [8, 32], strides = [1, 1]} : vector<8x64xf32> to vector<8x32xf32>
      %193 = arith.truncf %192 : vector<8x32xf32> to vector<8x32xbf16>
      %c0_88 = arith.constant 0 : index
      %c0_89 = arith.constant 0 : index
      %194 = vector.load %arg20[%c0_88, %c0_89] : memref<8x32xbf16, #tpu.memory_space<vmem>>, vector<8x32xbf16>
      tpu.vector_store %arg20[%c0_88, %c0_89], %193 {strides = array<i32>} : memref<8x32xbf16, #tpu.memory_space<vmem>>, vector<8x32xbf16>,
      %195 = vector.extract_strided_slice %191 {offsets = [0, 32], sizes = [8, 32], strides = [1, 1]} : vector<8x64xf32> to vector<8x32xf32>
      %196 = arith.truncf %195 : vector<8x32xf32> to vector<8x32xbf16>
      %c0_90 = arith.constant 0 : index
      %c0_91 = arith.constant 0 : index
      %197 = vector.load %arg21[%c0_90, %c0_91] : memref<8x32xbf16, #tpu.memory_space<vmem>>, vector<8x32xbf16>
      tpu.vector_store %arg21[%c0_90, %c0_91], %196 {strides = array<i32>} : memref<8x32xbf16, #tpu.memory_space<vmem>>, vector<8x32xbf16>,
    } else {
    }
    %5 = arith.index_cast %1 : i32 to index
    %c0 = arith.constant 0 : index
    %6 = vector.load %arg19[%5, %c0] : memref<8x32xbf16, #tpu.memory_space<vmem>>, vector<8x32xbf16>
    %c0_1 = arith.constant 0 : index
    %c0_2 = arith.constant 0 : index
    %7 = vector.load %arg4[%c0_1, %c0_2] : memref<32x32xbf16, #tpu.memory_space<vmem>>, vector<32x32xbf16>
    %cst = arith.constant dense<0.000000e+00> : vector<8x32xf32>
    %8 = tpu.matmul %6, %7, %cst {dimension_numbers = #tpu.dot_dimension_numbers<[1], [0], [0], [1], [0, 0, 1, 1], [], []>} : vector<8x32xbf16>, vector<32x32xbf16>, vector<8x32xf32> -> vector<8x32xf32>
    %c0_3 = arith.constant 0 : index
    %c0_4 = arith.constant 0 : index
    %9 = vector.load %arg5[%c0_3, %c0_4] : memref<1x32xf32, #tpu.memory_space<vmem>>, vector<1x32xf32>
    %10 = vector.broadcast %9 : vector<1x32xf32> to vector<8x32xf32>
    %11 = arith.addf %8, %10 : vector<8x32xf32>
    %c0_5 = arith.constant 0 : index
    %c0_6 = arith.constant 0 : index
    %c0_7 = arith.constant 0 : index
    %12 = vector.load %arg3[%c0_5, %c0_6, %c0_7] : memref<1x1x8xf32, #tpu.memory_space<vmem>>, vector<1x1x8xf32>
    %13 = vector.shape_cast %12 : vector<1x1x8xf32> to vector<1x8xf32>
    %cst_8 = arith.constant 0.000000e+00 : f32
    %14 = vector.broadcast %cst_8 : f32 to vector<1x8xf32>
    %15 = arith.cmpf oeq, %13, %14 : vector<1x8xf32>
    %cst_9 = arith.constant -1.000000e+09 : f32
    %cst_10 = arith.constant 0.000000e+00 : f32
    %16 = vector.broadcast %cst_9 : f32 to vector<1x8xf32>
    %17 = vector.broadcast %cst_10 : f32 to vector<1x8xf32>
    %18 = arith.select %15, %16, %17 : vector<1x8xi1>, vector<1x8xf32>
    %c0_11 = arith.constant 0 : index
    %c0_12 = arith.constant 0 : index
    %19 = vector.load %arg20[%c0_11, %c0_12] : memref<8x32xbf16, #tpu.memory_space<vmem>>, vector<8x32xbf16>
    %c0_13 = arith.constant 0 : index
    %c0_14 = arith.constant 0 : index
    %20 = vector.load %arg21[%c0_13, %c0_14] : memref<8x32xbf16, #tpu.memory_space<vmem>>, vector<8x32xbf16>
    %21 = vector.extract_strided_slice %11 {offsets = [0, 0], sizes = [8, 8], strides = [1, 1]} : vector<8x32xf32> to vector<8x8xf32>
    %22 = arith.truncf %21 : vector<8x8xf32> to vector<8x8xbf16>
    %23 = vector.extract_strided_slice %19 {offsets = [0, 0], sizes = [8, 8], strides = [1, 1]} : vector<8x32xbf16> to vector<8x8xbf16>
    %cst_15 = arith.constant dense<0.000000e+00> : vector<8x8xf32>
    %24 = tpu.matmul %22, %23, %cst_15 {dimension_numbers = #tpu.dot_dimension_numbers<[1], [1], [0], [0], [0, 0, 1, 0], [], []>} : vector<8x8xbf16>, vector<8x8xbf16>, vector<8x8xf32> -> vector<8x8xf32>
    %25 = vector.broadcast %18 : vector<1x8xf32> to vector<8x8xf32>
    %26 = arith.addf %24, %25 : vector<8x8xf32>
    %cst_16 = arith.constant dense<0xFF800000> : vector<8xf32>
    %27 = vector.multi_reduction <maximumf>, %26, %cst_16 [1] : vector<8x8xf32> to vector<8xf32>
    %28 = vector.shape_cast %27 : vector<8xf32> to vector<8x1xf32>
    %29 = vector.broadcast %28 : vector<8x1xf32> to vector<8x8xf32>
    %30 = arith.subf %26, %29 : vector<8x8xf32>
    %31 = math.exp %30 : vector<8x8xf32>
    %cst_17 = arith.constant dense<0.000000e+00> : vector<8xf32>
    %32 = vector.multi_reduction <add>, %31, %cst_17 [1] : vector<8x8xf32> to vector<8xf32>
    %33 = vector.shape_cast %32 : vector<8xf32> to vector<8x1xf32>
    %34 = tpu.reciprocal %33 {approx = true} : vector<8x1xf32> -> vector<8x1xf32>
    %35 = vector.broadcast %34 : vector<8x1xf32> to vector<8x8xf32>
    %36 = arith.mulf %31, %35 : vector<8x8xf32>
    %37 = arith.truncf %36 : vector<8x8xf32> to vector<8x8xbf16>
    %38 = vector.extract_strided_slice %20 {offsets = [0, 0], sizes = [8, 8], strides = [1, 1]} : vector<8x32xbf16> to vector<8x8xbf16>
    %cst_18 = arith.constant dense<0.000000e+00> : vector<8x8xf32>
    %39 = tpu.matmul %37, %38, %cst_18 {dimension_numbers = #tpu.dot_dimension_numbers<[1], [0], [0], [1], [0, 0, 1, 1], [], []>} : vector<8x8xbf16>, vector<8x8xbf16>, vector<8x8xf32> -> vector<8x8xf32>
    %40 = arith.truncf %39 : vector<8x8xf32> to vector<8x8xbf16>
    %c0_19 = arith.constant 0 : index
    %c0_20 = arith.constant 0 : index
    %41 = vector.load %arg22[%c0_19, %c0_20] : memref<8x32xbf16, #tpu.memory_space<vmem>>, vector<8x8xbf16>
    tpu.vector_store %arg22[%c0_19, %c0_20], %40 {strides = array<i32>} : memref<8x32xbf16, #tpu.memory_space<vmem>>, vector<8x8xbf16>,
    %42 = vector.extract_strided_slice %11 {offsets = [0, 8], sizes = [8, 8], strides = [1, 1]} : vector<8x32xf32> to vector<8x8xf32>
    %43 = arith.truncf %42 : vector<8x8xf32> to vector<8x8xbf16>
    %44 = vector.extract_strided_slice %19 {offsets = [0, 8], sizes = [8, 8], strides = [1, 1]} : vector<8x32xbf16> to vector<8x8xbf16>
    %cst_21 = arith.constant dense<0.000000e+00> : vector<8x8xf32>
    %45 = tpu.matmul %43, %44, %cst_21 {dimension_numbers = #tpu.dot_dimension_numbers<[1], [1], [0], [0], [0, 0, 1, 0], [], []>} : vector<8x8xbf16>, vector<8x8xbf16>, vector<8x8xf32> -> vector<8x8xf32>
    %46 = vector.broadcast %18 : vector<1x8xf32> to vector<8x8xf32>
    %47 = arith.addf %45, %46 : vector<8x8xf32>
    %cst_22 = arith.constant dense<0xFF800000> : vector<8xf32>
    %48 = vector.multi_reduction <maximumf>, %47, %cst_22 [1] : vector<8x8xf32> to vector<8xf32>
    %49 = vector.shape_cast %48 : vector<8xf32> to vector<8x1xf32>
    %50 = vector.broadcast %49 : vector<8x1xf32> to vector<8x8xf32>
    %51 = arith.subf %47, %50 : vector<8x8xf32>
    %52 = math.exp %51 : vector<8x8xf32>
    %cst_23 = arith.constant dense<0.000000e+00> : vector<8xf32>
    %53 = vector.multi_reduction <add>, %52, %cst_23 [1] : vector<8x8xf32> to vector<8xf32>
    %54 = vector.shape_cast %53 : vector<8xf32> to vector<8x1xf32>
    %55 = tpu.reciprocal %54 {approx = true} : vector<8x1xf32> -> vector<8x1xf32>
    %56 = vector.broadcast %55 : vector<8x1xf32> to vector<8x8xf32>
    %57 = arith.mulf %52, %56 : vector<8x8xf32>
    %58 = arith.truncf %57 : vector<8x8xf32> to vector<8x8xbf16>
    %59 = vector.extract_strided_slice %20 {offsets = [0, 8], sizes = [8, 8], strides = [1, 1]} : vector<8x32xbf16> to vector<8x8xbf16>
    %cst_24 = arith.constant dense<0.000000e+00> : vector<8x8xf32>
    %60 = tpu.matmul %58, %59, %cst_24 {dimension_numbers = #tpu.dot_dimension_numbers<[1], [0], [0], [1], [0, 0, 1, 1], [], []>} : vector<8x8xbf16>, vector<8x8xbf16>, vector<8x8xf32> -> vector<8x8xf32>
    %61 = arith.truncf %60 : vector<8x8xf32> to vector<8x8xbf16>
    %c0_25 = arith.constant 0 : index
    %c8 = arith.constant 8 : index
    %62 = vector.load %arg22[%c0_25, %c8] : memref<8x32xbf16, #tpu.memory_space<vmem>>, vector<8x8xbf16>
    tpu.vector_store %arg22[%c0_25, %c8], %61 {strides = array<i32>} : memref<8x32xbf16, #tpu.memory_space<vmem>>, vector<8x8xbf16>,
    %63 = vector.extract_strided_slice %11 {offsets = [0, 16], sizes = [8, 8], strides = [1, 1]} : vector<8x32xf32> to vector<8x8xf32>
    %64 = arith.truncf %63 : vector<8x8xf32> to vector<8x8xbf16>
    %65 = vector.extract_strided_slice %19 {offsets = [0, 16], sizes = [8, 8], strides = [1, 1]} : vector<8x32xbf16> to vector<8x8xbf16>
    %cst_26 = arith.constant dense<0.000000e+00> : vector<8x8xf32>
    %66 = tpu.matmul %64, %65, %cst_26 {dimension_numbers = #tpu.dot_dimension_numbers<[1], [1], [0], [0], [0, 0, 1, 0], [], []>} : vector<8x8xbf16>, vector<8x8xbf16>, vector<8x8xf32> -> vector<8x8xf32>
    %67 = vector.broadcast %18 : vector<1x8xf32> to vector<8x8xf32>
    %68 = arith.addf %66, %67 : vector<8x8xf32>
    %cst_27 = arith.constant dense<0xFF800000> : vector<8xf32>
    %69 = vector.multi_reduction <maximumf>, %68, %cst_27 [1] : vector<8x8xf32> to vector<8xf32>
    %70 = vector.shape_cast %69 : vector<8xf32> to vector<8x1xf32>
    %71 = vector.broadcast %70 : vector<8x1xf32> to vector<8x8xf32>
    %72 = arith.subf %68, %71 : vector<8x8xf32>
    %73 = math.exp %72 : vector<8x8xf32>
    %cst_28 = arith.constant dense<0.000000e+00> : vector<8xf32>
    %74 = vector.multi_reduction <add>, %73, %cst_28 [1] : vector<8x8xf32> to vector<8xf32>
    %75 = vector.shape_cast %74 : vector<8xf32> to vector<8x1xf32>
    %76 = tpu.reciprocal %75 {approx = true} : vector<8x1xf32> -> vector<8x1xf32>
    %77 = vector.broadcast %76 : vector<8x1xf32> to vector<8x8xf32>
    %78 = arith.mulf %73, %77 : vector<8x8xf32>
    %79 = arith.truncf %78 : vector<8x8xf32> to vector<8x8xbf16>
    %80 = vector.extract_strided_slice %20 {offsets = [0, 16], sizes = [8, 8], strides = [1, 1]} : vector<8x32xbf16> to vector<8x8xbf16>
    %cst_29 = arith.constant dense<0.000000e+00> : vector<8x8xf32>
    %81 = tpu.matmul %79, %80, %cst_29 {dimension_numbers = #tpu.dot_dimension_numbers<[1], [0], [0], [1], [0, 0, 1, 1], [], []>} : vector<8x8xbf16>, vector<8x8xbf16>, vector<8x8xf32> -> vector<8x8xf32>
    %82 = arith.truncf %81 : vector<8x8xf32> to vector<8x8xbf16>
    %c0_30 = arith.constant 0 : index
    %c16 = arith.constant 16 : index
    %83 = vector.load %arg22[%c0_30, %c16] : memref<8x32xbf16, #tpu.memory_space<vmem>>, vector<8x8xbf16>
    tpu.vector_store %arg22[%c0_30, %c16], %82 {strides = array<i32>} : memref<8x32xbf16, #tpu.memory_space<vmem>>, vector<8x8xbf16>,
    %84 = vector.extract_strided_slice %11 {offsets = [0, 24], sizes = [8, 8], strides = [1, 1]} : vector<8x32xf32> to vector<8x8xf32>
    %85 = arith.truncf %84 : vector<8x8xf32> to vector<8x8xbf16>
    %86 = vector.extract_strided_slice %19 {offsets = [0, 24], sizes = [8, 8], strides = [1, 1]} : vector<8x32xbf16> to vector<8x8xbf16>
    %cst_31 = arith.constant dense<0.000000e+00> : vector<8x8xf32>
    %87 = tpu.matmul %85, %86, %cst_31 {dimension_numbers = #tpu.dot_dimension_numbers<[1], [1], [0], [0], [0, 0, 1, 0], [], []>} : vector<8x8xbf16>, vector<8x8xbf16>, vector<8x8xf32> -> vector<8x8xf32>
    %88 = vector.broadcast %18 : vector<1x8xf32> to vector<8x8xf32>
    %89 = arith.addf %87, %88 : vector<8x8xf32>
    %cst_32 = arith.constant dense<0xFF800000> : vector<8xf32>
    %90 = vector.multi_reduction <maximumf>, %89, %cst_32 [1] : vector<8x8xf32> to vector<8xf32>
    %91 = vector.shape_cast %90 : vector<8xf32> to vector<8x1xf32>
    %92 = vector.broadcast %91 : vector<8x1xf32> to vector<8x8xf32>
    %93 = arith.subf %89, %92 : vector<8x8xf32>
    %94 = math.exp %93 : vector<8x8xf32>
    %cst_33 = arith.constant dense<0.000000e+00> : vector<8xf32>
    %95 = vector.multi_reduction <add>, %94, %cst_33 [1] : vector<8x8xf32> to vector<8xf32>
    %96 = vector.shape_cast %95 : vector<8xf32> to vector<8x1xf32>
    %97 = tpu.reciprocal %96 {approx = true} : vector<8x1xf32> -> vector<8x1xf32>
    %98 = vector.broadcast %97 : vector<8x1xf32> to vector<8x8xf32>
    %99 = arith.mulf %94, %98 : vector<8x8xf32>
    %100 = arith.truncf %99 : vector<8x8xf32> to vector<8x8xbf16>
    %101 = vector.extract_strided_slice %20 {offsets = [0, 24], sizes = [8, 8], strides = [1, 1]} : vector<8x32xbf16> to vector<8x8xbf16>
    %cst_34 = arith.constant dense<0.000000e+00> : vector<8x8xf32>
    %102 = tpu.matmul %100, %101, %cst_34 {dimension_numbers = #tpu.dot_dimension_numbers<[1], [0], [0], [1], [0, 0, 1, 1], [], []>} : vector<8x8xbf16>, vector<8x8xbf16>, vector<8x8xf32> -> vector<8x8xf32>
    %103 = arith.truncf %102 : vector<8x8xf32> to vector<8x8xbf16>
    %c0_35 = arith.constant 0 : index
    %c24 = arith.constant 24 : index
    %104 = vector.load %arg22[%c0_35, %c24] : memref<8x32xbf16, #tpu.memory_space<vmem>>, vector<8x8xbf16>
    tpu.vector_store %arg22[%c0_35, %c24], %103 {strides = array<i32>} : memref<8x32xbf16, #tpu.memory_space<vmem>>, vector<8x8xbf16>,
    %c0_36 = arith.constant 0 : index
    %c0_37 = arith.constant 0 : index
    %105 = vector.load %arg22[%c0_36, %c0_37] : memref<8x32xbf16, #tpu.memory_space<vmem>>, vector<8x32xbf16>
    %c0_38 = arith.constant 0 : index
    %c0_39 = arith.constant 0 : index
    %106 = vector.load %arg8[%c0_38, %c0_39] : memref<32x32xbf16, #tpu.memory_space<vmem>>, vector<32x32xbf16>
    %cst_40 = arith.constant dense<0.000000e+00> : vector<8x32xf32>
    %107 = tpu.matmul %105, %106, %cst_40 {dimension_numbers = #tpu.dot_dimension_numbers<[1], [0], [0], [1], [0, 0, 1, 1], [], []>} : vector<8x32xbf16>, vector<32x32xbf16>, vector<8x32xf32> -> vector<8x32xf32>
    %c0_41 = arith.constant 0 : index
    %108 = arith.index_cast %1 : i32 to index
    %c0_42 = arith.constant 0 : index
    %109 = vector.load %arg2[%c0_41, %108, %c0_42] : memref<1x8x32xf32, #tpu.memory_space<vmem>>, vector<1x8x32xf32>
    %110 = vector.shape_cast %109 : vector<1x8x32xf32> to vector<8x32xf32>
    %111 = arith.addf %110, %107 : vector<8x32xf32>
    %c0_43 = arith.constant 0 : index
    %c0_44 = arith.constant 0 : index
    %112 = vector.load %arg9[%c0_43, %c0_44] : memref<1x32xf32, #tpu.memory_space<vmem>>, vector<1x32xf32>
    %113 = vector.broadcast %112 : vector<1x32xf32> to vector<8x32xf32>
    %114 = arith.addf %111, %113 : vector<8x32xf32>
    %c0_45 = arith.constant 0 : index
    %c0_46 = arith.constant 0 : index
    %115 = vector.load %arg12[%c0_45, %c0_46] : memref<1x32xf32, #tpu.memory_space<vmem>>, vector<1x32xf32>
    %c0_47 = arith.constant 0 : index
    %c0_48 = arith.constant 0 : index
    %116 = vector.load %arg13[%c0_47, %c0_48] : memref<1x32xf32, #tpu.memory_space<vmem>>, vector<1x32xf32>
    %cst_49 = arith.constant dense<0.000000e+00> : vector<8xf32>
    %117 = vector.multi_reduction <add>, %114, %cst_49 [1] : vector<8x32xf32> to vector<8xf32>
    %118 = vector.shape_cast %117 : vector<8xf32> to vector<8x1xf32>
    %cst_50 = arith.constant 3.200000e+01 : f32
    %119 = vector.broadcast %cst_50 : f32 to vector<8x1xf32>
    %120 = arith.divf %118, %119 : vector<8x1xf32>
    %121 = vector.broadcast %120 : vector<8x1xf32> to vector<8x32xf32>
    %122 = arith.subf %114, %121 : vector<8x32xf32>
    %123 = arith.mulf %122, %122 : vector<8x32xf32>
    %cst_51 = arith.constant dense<0.000000e+00> : vector<8xf32>
    %124 = vector.multi_reduction <add>, %123, %cst_51 [1] : vector<8x32xf32> to vector<8xf32>
    %125 = vector.shape_cast %124 : vector<8xf32> to vector<8x1xf32>
    %cst_52 = arith.constant 3.200000e+01 : f32
    %126 = vector.broadcast %cst_52 : f32 to vector<8x1xf32>
    %127 = arith.divf %125, %126 : vector<8x1xf32>
    %128 = vector.broadcast %120 : vector<8x1xf32> to vector<8x32xf32>
    %129 = arith.subf %114, %128 : vector<8x32xf32>
    %cst_53 = arith.constant 9.99999997E-7 : f32
    %130 = vector.broadcast %cst_53 : f32 to vector<8x1xf32>
    %131 = arith.addf %127, %130 : vector<8x1xf32>
    %132 = math.rsqrt %131 : vector<8x1xf32>
    %133 = vector.broadcast %132 : vector<8x1xf32> to vector<8x32xf32>
    %134 = arith.mulf %129, %133 : vector<8x32xf32>
    %135 = vector.broadcast %115 : vector<1x32xf32> to vector<8x32xf32>
    %136 = arith.mulf %134, %135 : vector<8x32xf32>
    %137 = vector.broadcast %116 : vector<1x32xf32> to vector<8x32xf32>
    %138 = arith.addf %136, %137 : vector<8x32xf32>
    %139 = arith.truncf %138 : vector<8x32xf32> to vector<8x32xbf16>
    %cst_54 = arith.constant 0.000000e+00 : f32
    %140 = vector.broadcast %cst_54 : f32 to vector<8x32xf32>
    %c0_55 = arith.constant 0 : index
    %c0_56 = arith.constant 0 : index
    %141 = vector.load %arg14[%c0_55, %c0_56] : memref<32x64xbf16, #tpu.memory_space<vmem>>, vector<32x64xbf16>
    %cst_57 = arith.constant dense<0.000000e+00> : vector<8x64xf32>
    %142 = tpu.matmul %139, %141, %cst_57 {dimension_numbers = #tpu.dot_dimension_numbers<[1], [0], [0], [1], [0, 0, 1, 1], [], []>} : vector<8x32xbf16>, vector<32x64xbf16>, vector<8x64xf32> -> vector<8x64xf32>
    %c0_58 = arith.constant 0 : index
    %c0_59 = arith.constant 0 : index
    %143 = vector.load %arg15[%c0_58, %c0_59] : memref<1x64xf32, #tpu.memory_space<vmem>>, vector<1x64xf32>
    %144 = vector.broadcast %143 : vector<1x64xf32> to vector<8x64xf32>
    %145 = arith.addf %142, %144 : vector<8x64xf32>
    %cst_60 = arith.constant 0.000000e+00 : f32
    %146 = vector.broadcast %cst_60 : f32 to vector<8x64xf32>
    %147 = arith.maximumf %145, %146 : vector<8x64xf32>
    %148 = arith.truncf %147 : vector<8x64xf32> to vector<8x64xbf16>
    %c0_61 = arith.constant 0 : index
    %c0_62 = arith.constant 0 : index
    %149 = vector.load %arg16[%c0_61, %c0_62] : memref<64x32xbf16, #tpu.memory_space<vmem>>, vector<64x32xbf16>
    %cst_63 = arith.constant dense<0.000000e+00> : vector<8x32xf32>
    %150 = tpu.matmul %148, %149, %cst_63 {dimension_numbers = #tpu.dot_dimension_numbers<[1], [0], [0], [1], [0, 0, 1, 1], [], []>} : vector<8x64xbf16>, vector<64x32xbf16>, vector<8x32xf32> -> vector<8x32xf32>
    %151 = arith.addf %140, %150 : vector<8x32xf32>
    %c0_64 = arith.constant 0 : index
    %c0_65 = arith.constant 0 : index
    %152 = vector.load %arg17[%c0_64, %c0_65] : memref<1x32xf32, #tpu.memory_space<vmem>>, vector<1x32xf32>
    %153 = vector.broadcast %152 : vector<1x32xf32> to vector<8x32xf32>
    %154 = arith.addf %151, %153 : vector<8x32xf32>
    %155 = arith.addf %114, %154 : vector<8x32xf32>
    %c0_66 = arith.constant 0 : index
    %c0_67 = arith.constant 0 : index
    %c0_68 = arith.constant 0 : index
    %156 = vector.load %arg18[%c0_66, %c0_67, %c0_68] : memref<1x8x32xf32, #tpu.memory_space<vmem>>, vector<1x8x32xf32>
    %157 = vector.shape_cast %156 : vector<1x8x32xf32> to vector<8x32xf32>
    %158 = vector.shape_cast %155 : vector<8x32xf32> to vector<1x8x32xf32>
    tpu.vector_store %arg18[%c0_66, %c0_67, %c0_68], %158 {strides = array<i32>} : memref<1x8x32xf32, #tpu.memory_space<vmem>>, vector<1x8x32xf32>,
    return
  }
  func.func @transform_0(%arg0: i32, %arg1: i32) -> (i32, i32, i32) {
    %c0_i32 = arith.constant 0 : i32
    %c0_i32_0 = arith.constant 0 : i32
    %c0_i32_1 = arith.constant 0 : i32
    return %arg0, %c0_i32, %c0_i32_0 : i32, i32, i32
  }
  func.func @transform_1(%arg0: i32, %arg1: i32) -> (i32, i32, i32) {
    %c0_i32 = arith.constant 0 : i32
    %c0_i32_0 = arith.constant 0 : i32
    %c0_i32_1 = arith.constant 0 : i32
    return %arg0, %c0_i32, %c0_i32_0 : i32, i32, i32
  }
  func.func @transform_2(%arg0: i32, %arg1: i32) -> (i32, i32) {
    %c0_i32 = arith.constant 0 : i32
    %c0_i32_0 = arith.constant 0 : i32
    %c0_i32_1 = arith.constant 0 : i32
    return %c0_i32, %c0_i32_0 : i32, i32
  }
  func.func @transform_3(%arg0: i32, %arg1: i32) -> (i32, i32) {
    %c0_i32 = arith.constant 0 : i32
    %c0_i32_0 = arith.constant 0 : i32
    %c0_i32_1 = arith.constant 0 : i32
    return %c0_i32, %c0_i32_0 : i32, i32
  }
  func.func @transform_4(%arg0: i32, %arg1: i32) -> (i32, i32) {
    %c0_i32 = arith.constant 0 : i32
    %c0_i32_0 = arith.constant 0 : i32
    %c0_i32_1 = arith.constant 0 : i32
    return %c0_i32, %c0_i32_0 : i32, i32
  }
  func.func @transform_5(%arg0: i32, %arg1: i32) -> (i32, i32) {
    %c0_i32 = arith.constant 0 : i32
    %c0_i32_0 = arith.constant 0 : i32
    %c0_i32_1 = arith.constant 0 : i32
    return %c0_i32, %c0_i32_0 : i32, i32
  }
  func.func @transform_6(%arg0: i32, %arg1: i32) -> (i32, i32) {
    %c0_i32 = arith.constant 0 : i32
    %c0_i32_0 = arith.constant 0 : i32
    %c0_i32_1 = arith.constant 0 : i32
    return %c0_i32, %c0_i32_0 : i32, i32
  }
  func.func @transform_7(%arg0: i32, %arg1: i32) -> (i32, i32) {
    %c0_i32 = arith.constant 0 : i32
    %c0_i32_0 = arith.constant 0 : i32
    %c0_i32_1 = arith.constant 0 : i32
    return %c0_i32, %c0_i32_0 : i32, i32
  }
  func.func @transform_8(%arg0: i32, %arg1: i32) -> (i32, i32) {
    %c0_i32 = arith.constant 0 : i32
    %c0_i32_0 = arith.constant 0 : i32
    %c0_i32_1 = arith.constant 0 : i32
    return %c0_i32, %c0_i32_0 : i32, i32
  }
  func.func @transform_9(%arg0: i32, %arg1: i32) -> (i32, i32) {
    %c0_i32 = arith.constant 0 : i32
    %c0_i32_0 = arith.constant 0 : i32
    %c0_i32_1 = arith.constant 0 : i32
    return %c0_i32, %c0_i32_0 : i32, i32
  }
  func.func @transform_10(%arg0: i32, %arg1: i32) -> (i32, i32) {
    %c0_i32 = arith.constant 0 : i32
    %c0_i32_0 = arith.constant 0 : i32
    %c0_i32_1 = arith.constant 0 : i32
    return %c0_i32, %c0_i32_0 : i32, i32
  }
  func.func @transform_11(%arg0: i32, %arg1: i32) -> (i32, i32) {
    %c0_i32 = arith.constant 0 : i32
    %c0_i32_0 = arith.constant 0 : i32
    %c0_i32_1 = arith.constant 0 : i32
    return %c0_i32, %c0_i32_0 : i32, i32
  }
  func.func @transform_12(%arg0: i32, %arg1: i32) -> (i32, i32) {
    %c0_i32 = arith.constant 0 : i32
    %c0_i32_0 = arith.constant 0 : i32
    %c0_i32_1 = arith.constant 0 : i32
    return %c0_i32, %c0_i32_0 : i32, i32
  }
  func.func @transform_13(%arg0: i32, %arg1: i32) -> (i32, i32) {
    %c0_i32 = arith.constant 0 : i32
    %c0_i32_0 = arith.constant 0 : i32
    %c0_i32_1 = arith.constant 0 : i32
    return %c0_i32, %c0_i32_0 : i32, i32
  }
  func.func @transform_14(%arg0: i32, %arg1: i32) -> (i32, i32) {
    %c0_i32 = arith.constant 0 : i32
    %c0_i32_0 = arith.constant 0 : i32
    %c0_i32_1 = arith.constant 0 : i32
    return %c0_i32, %c0_i32_0 : i32, i32
  }
  func.func @transform_15(%arg0: i32, %arg1: i32) -> (i32, i32) {
    %c0_i32 = arith.constant 0 : i32
    %c0_i32_0 = arith.constant 0 : i32
    %c0_i32_1 = arith.constant 0 : i32
    return %c0_i32, %c0_i32_0 : i32, i32
  }
  func.func @transform_16(%arg0: i32, %arg1: i32) -> (i32, i32, i32) {
    %c0_i32 = arith.constant 0 : i32
    %c0_i32_0 = arith.constant 0 : i32
    return %arg0, %arg1, %c0_i32 : i32, i32, i32
  }
}

module attributes {stable_mosaic.version = 11 : i64} {
  func.func @encoder_layer_kernel(%arg0: i32, %arg1: i32, %arg2: memref<1x8x32xf32, #tpu.memory_space<vmem>>, %arg3: memref<1x1x8xf32, #tpu.memory_space<vmem>>, %arg4: memref<32x32xbf16, #tpu.memory_space<vmem>>, %arg5: memref<1x32xf32, #tpu.memory_space<vmem>>, %arg6: memref<32x64xbf16, #tpu.memory_space<vmem>>, %arg7: memref<1x64xf32, #tpu.memory_space<vmem>>, %arg8: memref<32x32xbf16, #tpu.memory_space<vmem>>, %arg9: memref<1x32xf32, #tpu.memory_space<vmem>>, %arg10: memref<1x32xf32, #tpu.memory_space<vmem>>, %arg11: memref<1x32xf32, #tpu.memory_space<vmem>>, %arg12: memref<1x32xf32, #tpu.memory_space<vmem>>, %arg13: memref<1x32xf32, #tpu.memory_space<vmem>>, %arg14: memref<32x64xbf16, #tpu.memory_space<vmem>>, %arg15: memref<1x64xf32, #tpu.memory_space<vmem>>, %arg16: memref<64x32xbf16, #tpu.memory_space<vmem>>, %arg17: memref<1x32xf32, #tpu.memory_space<vmem>>, %arg18: memref<1x8x32xf32, #tpu.memory_space<vmem>>, %arg19: memref<8x32xbf16, #tpu.memory_space<vmem>>, %arg20: memref<8x32xbf16, #tpu.memory_space<vmem>>, %arg21: memref<8x32xbf16, #tpu.memory_space<vmem>>, %arg22: memref<8x32xbf16, #tpu.memory_space<vmem>>) attributes {dimension_semantics = [#tpu.dimension_semantics<parallel>, #tpu.dimension_semantics<arbitrary>], iteration_bounds = array<i64: 2, 1>, scalar_prefetch = 0 : i64, scratch_operands = 4 : i64, tpu.core_type = #tpu.core_type<tc>, window_params = [{transform_indices = @transform_0, window_bounds = array<i64: 1, 8, 32>}, {transform_indices = @transform_1, window_bounds = array<i64: 1, 1, 8>}, {pipeline_mode = #tpu.pipeline_mode<synchronous>, transform_indices = @transform_2, window_bounds = array<i64: 32, 32>}, {pipeline_mode = #tpu.pipeline_mode<synchronous>, transform_indices = @transform_3, window_bounds = array<i64: 1, 32>}, {pipeline_mode = #tpu.pipeline_mode<synchronous>, transform_indices = @transform_4, window_bounds = array<i64: 32, 64>}, {pipeline_mode = #tpu.pipeline_mode<synchronous>, transform_indices = @transform_5, window_bounds = array<i64: 1, 64>}, {pipeline_mode = #tpu.pipeline_mode<synchronous>, transform_indices = @transform_6, window_bounds = array<i64: 32, 32>}, {pipeline_mode = #tpu.pipeline_mode<synchronous>, transform_indices = @transform_7, window_bounds = array<i64: 1, 32>}, {pipeline_mode = #tpu.pipeline_mode<synchronous>, transform_indices = @transform_8, window_bounds = array<i64: 1, 32>}, {pipeline_mode = #tpu.pipeline_mode<synchronous>, transform_indices = @transform_9, window_bounds = array<i64: 1, 32>}, {pipeline_mode = #tpu.pipeline_mode<synchronous>, transform_indices = @transform_10, window_bounds = array<i64: 1, 32>}, {pipeline_mode = #tpu.pipeline_mode<synchronous>, transform_indices = @transform_11, window_bounds = array<i64: 1, 32>}, {pipeline_mode = #tpu.pipeline_mode<synchronous>, transform_indices = @transform_12, window_bounds = array<i64: 32, 64>}, {pipeline_mode = #tpu.pipeline_mode<synchronous>, transform_indices = @transform_13, window_bounds = array<i64: 1, 64>}, {pipeline_mode = #tpu.pipeline_mode<synchronous>, transform_indices = @transform_14, window_bounds = array<i64: 64, 32>}, {pipeline_mode = #tpu.pipeline_mode<synchronous>, transform_indices = @transform_15, window_bounds = array<i64: 1, 32>}, {transform_indices = @transform_16, window_bounds = array<i64: 1, 8, 32>}]} {
    %c8_i32 = arith.constant 8 : i32
    %0 = arith.muli %arg1, %c8_i32 : i32
    %1 = tpu.assume_multiple %0, 8 : i32
    %c0_i32 = arith.constant 0 : i32
    %2 = arith.cmpi eq, %arg1, %c0_i32 : i32
    %3 = arith.extui %2 : i1 to i32
    %c0_i32_0 = arith.constant 0 : i32
    %4 = arith.cmpi ne, %3, %c0_i32_0 : i32
    scf.if %4 {
      %c0_69 = arith.constant 0 : index
      %c0_70 = arith.constant 0 : index
      %c0_71 = arith.constant 0 : index
      %159 = vector.load %arg2[%c0_69, %c0_70, %c0_71] : memref<1x8x32xf32, #tpu.memory_space<vmem>>, vector<1x8x32xf32>
      %160 = vector.shape_cast %159 : vector<1x8x32xf32> to vector<8x32xf32>
      %c0_72 = arith.constant 0 : index
      %c0_73 = arith.constant 0 : index
      %161 = vector.load %arg10[%c0_72, %c0_73] : memref<1x32xf32, #tpu.memory_space<vmem>>, vector<1x32xf32>
      %c0_74 = arith.constant 0 : index
      %c0_75 = arith.constant 0 : index
      %162 = vector.load %arg11[%c0_74, %c0_75] : memref<1x32xf32, #tpu.memory_space<vmem>>, vector<1x32xf32>
      %cst_76 = arith.constant dense<0.000000e+00> : vector<8xf32>
      %163 = vector.multi_reduction <add>, %160, %cst_76 [1] : vector<8x32xf32> to vector<8xf32>
      %164 = vector.shape_cast %163 : vector<8xf32> to vector<8x1xf32>
      %cst_77 = arith.constant 3.200000e+01 : f32
      %165 = vector.broadcast %cst_77 : f32 to vector<8x1xf32>
      %166 = arith.divf %164, %165 : vector<8x1xf32>
      %167 = vector.broadcast %166 : vector<8x1xf32> to vector<8x32xf32>
      %168 = arith.subf %160, %167 : vector<8x32xf32>
      %169 = arith.mulf %168, %168 : vector<8x32xf32>
      %cst_78 = arith.constant dense<0.000000e+00> : vector<8xf32>
      %170 = vector.multi_reduction <add>, %169, %cst_78 [1] : vector<8x32xf32> to vector<8xf32>
      %171 = vector.shape_cast %170 : vector<8xf32> to vector<8x1xf32>
      %cst_79 = arith.constant 3.200000e+01 : f32
      %172 = vector.broadcast %cst_79 : f32 to vector<8x1xf32>
      %173 = arith.divf %171, %172 : vector<8x1xf32>
      %174 = vector.broadcast %166 : vector<8x1xf32> to vector<8x32xf32>
      %175 = arith.subf %160, %174 : vector<8x32xf32>
      %cst_80 = arith.constant 9.99999997E-7 : f32
      %176 = vector.broadcast %cst_80 : f32 to vector<8x1xf32>
      %177 = arith.addf %173, %176 : vector<8x1xf32>
      %178 = math.rsqrt %177 : vector<8x1xf32>
      %179 = vector.broadcast %178 : vector<8x1xf32> to vector<8x32xf32>
      %180 = arith.mulf %175, %179 : vector<8x32xf32>
      %181 = vector.broadcast %161 : vector<1x32xf32> to vector<8x32xf32>
      %182 = arith.mulf %180, %181 : vector<8x32xf32>
      %183 = vector.broadcast %162 : vector<1x32xf32> to vector<8x32xf32>
      %184 = arith.addf %182, %183 : vector<8x32xf32>
      %185 = arith.truncf %184 : vector<8x32xf32> to vector<8x32xbf16>
      %c0_81 = arith.constant 0 : index
      %c0_82 = arith.constant 0 : index
      %186 = vector.load %arg19[%c0_81, %c0_82] : memref<8x32xbf16, #tpu.memory_space<vmem>>, vector<8x32xbf16>
      tpu.vector_store %arg19[%c0_81, %c0_82], %185 {strides = array<i32>} : memref<8x32xbf16, #tpu.memory_space<vmem>>, vector<8x32xbf16>,
      %c0_83 = arith.constant 0 : index
      %c0_84 = arith.constant 0 : index
      %187 = vector.load %arg6[%c0_83, %c0_84] : memref<32x64xbf16, #tpu.memory_space<vmem>>, vector<32x64xbf16>
      %cst_85 = arith.constant dense<0.000000e+00> : vector<8x64xf32>
      %188 = tpu.matmul %185, %187, %cst_85 {dimension_numbers = #tpu.dot_dimension_numbers<[1], [0], [0], [1], [0, 0, 1, 1], [], []>} : vector<8x32xbf16>, vector<32x64xbf16>, vector<8x64xf32> -> vector<8x64xf32>
      %c0_86 = arith.constant 0 : index
      %c0_87 = arith.constant 0 : index
      %189 = vector.load %arg7[%c0_86, %c0_87] : memref<1x64xf32, #tpu.memory_space<vmem>>, vector<1x64xf32>
      %190 = vector.broadcast %189 : vector<1x64xf32> to vector<8x64xf32>
      %191 = arith.addf %188, %190 : vector<8x64xf32>
      %192 = vector.extract_strided_slice %191 {offsets = [0, 0], sizes = [8, 32], strides = [1, 1]} : vector<8x64xf32> to vector<8x32xf32>
      %193 = arith.truncf %192 : vector<8x32xf32> to vector<8x32xbf16>
      %c0_88 = arith.constant 0 : index
      %c0_89 = arith.constant 0 : index
      %194 = vector.load %arg20[%c0_88, %c0_89] : memref<8x32xbf16, #tpu.memory_space<vmem>>, vector<8x32xbf16>
      tpu.vector_store %arg20[%c0_88, %c0_89], %193 {strides = array<i32>} : memref<8x32xbf16, #tpu.memory_space<vmem>>, vector<8x32xbf16>,
      %195 = vector.extract_strided_slice %191 {offsets = [0, 32], sizes = [8, 32], strides = [1, 1]} : vector<8x64xf32> to vector<8x32xf32>
      %196 = arith.truncf %195 : vector<8x32xf32> to vector<8x32xbf16>
      %c0_90 = arith.constant 0 : index
      %c0_91 = arith.constant 0 : index
      %197 = vector.load %arg21[%c0_90, %c0_91] : memref<8x32xbf16, #tpu.memory_space<vmem>>, vector<8x32xbf16>
      tpu.vector_store %arg21[%c0_90, %c0_91], %196 {strides = array<i32>} : memref<8x32xbf16, #tpu.memory_space<vmem>>, vector<8x32xbf16>,
    } else {
    }
    %5 = arith.index_cast %1 : i32 to index
    %c0 = arith.constant 0 : index
    %6 = vector.load %arg19[%5, %c0] : memref<8x32xbf16, #tpu.memory_space<vmem>>, vector<8x32xbf16>
    %c0_1 = arith.constant 0 : index
    %c0_2 = arith.constant 0 : index
    %7 = vector.load %arg4[%c0_1, %c0_2] : memref<32x32xbf16, #tpu.memory_space<vmem>>, vector<32x32xbf16>
    %cst = arith.constant dense<0.000000e+00> : vector<8x32xf32>
    %8 = tpu.matmul %6, %7, %cst {dimension_numbers = #tpu.dot_dimension_numbers<[1], [0], [0], [1], [0, 0, 1, 1], [], []>} : vector<8x32xbf16>, vector<32x32xbf16>, vector<8x32xf32> -> vector<8x32xf32>
    %c0_3 = arith.constant 0 : index
    %c0_4 = arith.constant 0 : index
    %9 = vector.load %arg5[%c0_3, %c0_4] : memref<1x32xf32, #tpu.memory_space<vmem>>, vector<1x32xf32>
    %10 = vector.broadcast %9 : vector<1x32xf32> to vector<8x32xf32>
    %11 = arith.addf %8, %10 : vector<8x32xf32>
    %c0_5 = arith.constant 0 : index
    %c0_6 = arith.constant 0 : index
    %c0_7 = arith.constant 0 : index
    %12 = vector.load %arg3[%c0_5, %c0_6, %c0_7] : memref<1x1x8xf32, #tpu.memory_space<vmem>>, vector<1x1x8xf32>
    %13 = vector.shape_cast %12 : vector<1x1x8xf32> to vector<1x8xf32>
    %cst_8 = arith.constant 0.000000e+00 : f32
    %14 = vector.broadcast %cst_8 : f32 to vector<1x8xf32>
    %15 = arith.cmpf oeq, %13, %14 : vector<1x8xf32>
    %cst_9 = arith.constant -1.000000e+09 : f32
    %cst_10 = arith.constant 0.000000e+00 : f32
    %16 = vector.broadcast %cst_9 : f32 to vector<1x8xf32>
    %17 = vector.broadcast %cst_10 : f32 to vector<1x8xf32>
    %18 = arith.select %15, %16, %17 : vector<1x8xi1>, vector<1x8xf32>
    %c0_11 = arith.constant 0 : index
    %c0_12 = arith.constant 0 : index
    %19 = vector.load %arg20[%c0_11, %c0_12] : memref<8x32xbf16, #tpu.memory_space<vmem>>, vector<8x32xbf16>
    %c0_13 = arith.constant 0 : index
    %c0_14 = arith.constant 0 : index
    %20 = vector.load %arg21[%c0_13, %c0_14] : memref<8x32xbf16, #tpu.memory_space<vmem>>, vector<8x32xbf16>
    %21 = vector.extract_strided_slice %11 {offsets = [0, 0], sizes = [8, 8], strides = [1, 1]} : vector<8x32xf32> to vector<8x8xf32>
    %22 = arith.truncf %21 : vector<8x8xf32> to vector<8x8xbf16>
    %23 = vector.extract_strided_slice %19 {offsets = [0, 0], sizes = [8, 8], strides = [1, 1]} : vector<8x32xbf16> to vector<8x8xbf16>
    %cst_15 = arith.constant dense<0.000000e+00> : vector<8x8xf32>
    %24 = tpu.matmul %22, %23, %cst_15 {dimension_numbers = #tpu.dot_dimension_numbers<[1], [1], [0], [0], [0, 0, 1, 0], [], []>} : vector<8x8xbf16>, vector<8x8xbf16>, vector<8x8xf32> -> vector<8x8xf32>
    %25 = vector.broadcast %18 : vector<1x8xf32> to vector<8x8xf32>
    %26 = arith.addf %24, %25 : vector<8x8xf32>
    %cst_16 = arith.constant dense<0xFF800000> : vector<8xf32>
    %27 = vector.multi_reduction <maximumf>, %26, %cst_16 [1] : vector<8x8xf32> to vector<8xf32>
    %28 = vector.shape_cast %27 : vector<8xf32> to vector<8x1xf32>
    %29 = vector.broadcast %28 : vector<8x1xf32> to vector<8x8xf32>
    %30 = arith.subf %26, %29 : vector<8x8xf32>
    %31 = math.exp %30 : vector<8x8xf32>
    %cst_17 = arith.constant dense<0.000000e+00> : vector<8xf32>
    %32 = vector.multi_reduction <add>, %31, %cst_17 [1] : vector<8x8xf32> to vector<8xf32>
    %33 = vector.shape_cast %32 : vector<8xf32> to vector<8x1xf32>
    %34 = tpu.reciprocal %33 {approx = true} : vector<8x1xf32> -> vector<8x1xf32>
    %35 = vector.broadcast %34 : vector<8x1xf32> to vector<8x8xf32>
    %36 = arith.mulf %31, %35 : vector<8x8xf32>
    %37 = arith.truncf %36 : vector<8x8xf32> to vector<8x8xbf16>
    %38 = vector.extract_strided_slice %20 {offsets = [0, 0], sizes = [8, 8], strides = [1, 1]} : vector<8x32xbf16> to vector<8x8xbf16>
    %cst_18 = arith.constant dense<0.000000e+00> : vector<8x8xf32>
    %39 = tpu.matmul %37, %38, %cst_18 {dimension_numbers = #tpu.dot_dimension_numbers<[1], [0], [0], [1], [0, 0, 1, 1], [], []>} : vector<8x8xbf16>, vector<8x8xbf16>, vector<8x8xf32> -> vector<8x8xf32>
    %40 = arith.truncf %39 : vector<8x8xf32> to vector<8x8xbf16>
    %c0_19 = arith.constant 0 : index
    %c0_20 = arith.constant 0 : index
    %41 = vector.load %arg22[%c0_19, %c0_20] : memref<8x32xbf16, #tpu.memory_space<vmem>>, vector<8x8xbf16>
    tpu.vector_store %arg22[%c0_19, %c0_20], %40 {strides = array<i32>} : memref<8x32xbf16, #tpu.memory_space<vmem>>, vector<8x8xbf16>,
    %42 = vector.extract_strided_slice %11 {offsets = [0, 8], sizes = [8, 8], strides = [1, 1]} : vector<8x32xf32> to vector<8x8xf32>
    %43 = arith.truncf %42 : vector<8x8xf32> to vector<8x8xbf16>
    %44 = vector.extract_strided_slice %19 {offsets = [0, 8], sizes = [8, 8], strides = [1, 1]} : vector<8x32xbf16> to vector<8x8xbf16>
    %cst_21 = arith.constant dense<0.000000e+00> : vector<8x8xf32>
    %45 = tpu.matmul %43, %44, %cst_21 {dimension_numbers = #tpu.dot_dimension_numbers<[1], [1], [0], [0], [0, 0, 1, 0], [], []>} : vector<8x8xbf16>, vector<8x8xbf16>, vector<8x8xf32> -> vector<8x8xf32>
    %46 = vector.broadcast %18 : vector<1x8xf32> to vector<8x8xf32>
    %47 = arith.addf %45, %46 : vector<8x8xf32>
    %cst_22 = arith.constant dense<0xFF800000> : vector<8xf32>
    %48 = vector.multi_reduction <maximumf>, %47, %cst_22 [1] : vector<8x8xf32> to vector<8xf32>
    %49 = vector.shape_cast %48 : vector<8xf32> to vector<8x1xf32>
    %50 = vector.broadcast %49 : vector<8x1xf32> to vector<8x8xf32>
    %51 = arith.subf %47, %50 : vector<8x8xf32>
    %52 = math.exp %51 : vector<8x8xf32>
    %cst_23 = arith.constant dense<0.000000e+00> : vector<8xf32>
    %53 = vector.multi_reduction <add>, %52, %cst_23 [1] : vector<8x8xf32> to vector<8xf32>
    %54 = vector.shape_cast %53 : vector<8xf32> to vector<8x1xf32>
    %55 = tpu.reciprocal %54 {approx = true} : vector<8x1xf32> -> vector<8x1xf32>
    %56 = vector.broadcast %55 : vector<8x1xf32> to vector<8x8xf32>
    %57 = arith.mulf %52, %56 : vector<8x8xf32>
    %58 = arith.truncf %57 : vector<8x8xf32> to vector<8x8xbf16>
    %59 = vector.extract_strided_slice %20 {offsets = [0, 8], sizes = [8, 8], strides = [1, 1]} : vector<8x32xbf16> to vector<8x8xbf16>
    %cst_24 = arith.constant dense<0.000000e+00> : vector<8x8xf32>
    %60 = tpu.matmul %58, %59, %cst_24 {dimension_numbers = #tpu.dot_dimension_numbers<[1], [0], [0], [1], [0, 0, 1, 1], [], []>} : vector<8x8xbf16>, vector<8x8xbf16>, vector<8x8xf32> -> vector<8x8xf32>
    %61 = arith.truncf %60 : vector<8x8xf32> to vector<8x8xbf16>
    %c0_25 = arith.constant 0 : index
    %c8 = arith.constant 8 : index
    %62 = vector.load %arg22[%c0_25, %c8] : memref<8x32xbf16, #tpu.memory_space<vmem>>, vector<8x8xbf16>
    tpu.vector_store %arg22[%c0_25, %c8], %61 {strides = array<i32>} : memref<8x32xbf16, #tpu.memory_space<vmem>>, vector<8x8xbf16>,
    %63 = vector.extract_strided_slice %11 {offsets = [0, 16], sizes = [8, 8], strides = [1, 1]} : vector<8x32xf32> to vector<8x8xf32>
    %64 = arith.truncf %63 : vector<8x8xf32> to vector<8x8xbf16>
    %65 = vector.extract_strided_slice %19 {offsets = [0, 16], sizes = [8, 8], strides = [1, 1]} : vector<8x32xbf16> to vector<8x8xbf16>
    %cst_26 = arith.constant dense<0.000000e+00> : vector<8x8xf32>
    %66 = tpu.matmul %64, %65, %cst_26 {dimension_numbers = #tpu.dot_dimension_numbers<[1], [1], [0], [0], [0, 0, 1, 0], [], []>} : vector<8x8xbf16>, vector<8x8xbf16>, vector<8x8xf32> -> vector<8x8xf32>
    %67 = vector.broadcast %18 : vector<1x8xf32> to vector<8x8xf32>
    %68 = arith.addf %66, %67 : vector<8x8xf32>
    %cst_27 = arith.constant dense<0xFF800000> : vector<8xf32>
    %69 = vector.multi_reduction <maximumf>, %68, %cst_27 [1] : vector<8x8xf32> to vector<8xf32>
    %70 = vector.shape_cast %69 : vector<8xf32> to vector<8x1xf32>
    %71 = vector.broadcast %70 : vector<8x1xf32> to vector<8x8xf32>
    %72 = arith.subf %68, %71 : vector<8x8xf32>
    %73 = math.exp %72 : vector<8x8xf32>
    %cst_28 = arith.constant dense<0.000000e+00> : vector<8xf32>
    %74 = vector.multi_reduction <add>, %73, %cst_28 [1] : vector<8x8xf32> to vector<8xf32>
    %75 = vector.shape_cast %74 : vector<8xf32> to vector<8x1xf32>
    %76 = tpu.reciprocal %75 {approx = true} : vector<8x1xf32> -> vector<8x1xf32>
    %77 = vector.broadcast %76 : vector<8x1xf32> to vector<8x8xf32>
    %78 = arith.mulf %73, %77 : vector<8x8xf32>
    %79 = arith.truncf %78 : vector<8x8xf32> to vector<8x8xbf16>
    %80 = vector.extract_strided_slice %20 {offsets = [0, 16], sizes = [8, 8], strides = [1, 1]} : vector<8x32xbf16> to vector<8x8xbf16>
    %cst_29 = arith.constant dense<0.000000e+00> : vector<8x8xf32>
    %81 = tpu.matmul %79, %80, %cst_29 {dimension_numbers = #tpu.dot_dimension_numbers<[1], [0], [0], [1], [0, 0, 1, 1], [], []>} : vector<8x8xbf16>, vector<8x8xbf16>, vector<8x8xf32> -> vector<8x8xf32>
    %82 = arith.truncf %81 : vector<8x8xf32> to vector<8x8xbf16>
    %c0_30 = arith.constant 0 : index
    %c16 = arith.constant 16 : index
    %83 = vector.load %arg22[%c0_30, %c16] : memref<8x32xbf16, #tpu.memory_space<vmem>>, vector<8x8xbf16>
    tpu.vector_store %arg22[%c0_30, %c16], %82 {strides = array<i32>} : memref<8x32xbf16, #tpu.memory_space<vmem>>, vector<8x8xbf16>,
    %84 = vector.extract_strided_slice %11 {offsets = [0, 24], sizes = [8, 8], strides = [1, 1]} : vector<8x32xf32> to vector<8x8xf32>
    %85 = arith.truncf %84 : vector<8x8xf32> to vector<8x8xbf16>
    %86 = vector.extract_strided_slice %19 {offsets = [0, 24], sizes = [8, 8], strides = [1, 1]} : vector<8x32xbf16> to vector<8x8xbf16>
    %cst_31 = arith.constant dense<0.000000e+00> : vector<8x8xf32>
    %87 = tpu.matmul %85, %86, %cst_31 {dimension_numbers = #tpu.dot_dimension_numbers<[1], [1], [0], [0], [0, 0, 1, 0], [], []>} : vector<8x8xbf16>, vector<8x8xbf16>, vector<8x8xf32> -> vector<8x8xf32>
    %88 = vector.broadcast %18 : vector<1x8xf32> to vector<8x8xf32>
    %89 = arith.addf %87, %88 : vector<8x8xf32>
    %cst_32 = arith.constant dense<0xFF800000> : vector<8xf32>
    %90 = vector.multi_reduction <maximumf>, %89, %cst_32 [1] : vector<8x8xf32> to vector<8xf32>
    %91 = vector.shape_cast %90 : vector<8xf32> to vector<8x1xf32>
    %92 = vector.broadcast %91 : vector<8x1xf32> to vector<8x8xf32>
    %93 = arith.subf %89, %92 : vector<8x8xf32>
    %94 = math.exp %93 : vector<8x8xf32>
    %cst_33 = arith.constant dense<0.000000e+00> : vector<8xf32>
    %95 = vector.multi_reduction <add>, %94, %cst_33 [1] : vector<8x8xf32> to vector<8xf32>
    %96 = vector.shape_cast %95 : vector<8xf32> to vector<8x1xf32>
    %97 = tpu.reciprocal %96 {approx = true} : vector<8x1xf32> -> vector<8x1xf32>
    %98 = vector.broadcast %97 : vector<8x1xf32> to vector<8x8xf32>
    %99 = arith.mulf %94, %98 : vector<8x8xf32>
    %100 = arith.truncf %99 : vector<8x8xf32> to vector<8x8xbf16>
    %101 = vector.extract_strided_slice %20 {offsets = [0, 24], sizes = [8, 8], strides = [1, 1]} : vector<8x32xbf16> to vector<8x8xbf16>
    %cst_34 = arith.constant dense<0.000000e+00> : vector<8x8xf32>
    %102 = tpu.matmul %100, %101, %cst_34 {dimension_numbers = #tpu.dot_dimension_numbers<[1], [0], [0], [1], [0, 0, 1, 1], [], []>} : vector<8x8xbf16>, vector<8x8xbf16>, vector<8x8xf32> -> vector<8x8xf32>
    %103 = arith.truncf %102 : vector<8x8xf32> to vector<8x8xbf16>
    %c0_35 = arith.constant 0 : index
    %c24 = arith.constant 24 : index
    %104 = vector.load %arg22[%c0_35, %c24] : memref<8x32xbf16, #tpu.memory_space<vmem>>, vector<8x8xbf16>
    tpu.vector_store %arg22[%c0_35, %c24], %103 {strides = array<i32>} : memref<8x32xbf16, #tpu.memory_space<vmem>>, vector<8x8xbf16>,
    %c0_36 = arith.constant 0 : index
    %c0_37 = arith.constant 0 : index
    %105 = vector.load %arg22[%c0_36, %c0_37] : memref<8x32xbf16, #tpu.memory_space<vmem>>, vector<8x32xbf16>
    %c0_38 = arith.constant 0 : index
    %c0_39 = arith.constant 0 : index
    %106 = vector.load %arg8[%c0_38, %c0_39] : memref<32x32xbf16, #tpu.memory_space<vmem>>, vector<32x32xbf16>
    %cst_40 = arith.constant dense<0.000000e+00> : vector<8x32xf32>
    %107 = tpu.matmul %105, %106, %cst_40 {dimension_numbers = #tpu.dot_dimension_numbers<[1], [0], [0], [1], [0, 0, 1, 1], [], []>} : vector<8x32xbf16>, vector<32x32xbf16>, vector<8x32xf32> -> vector<8x32xf32>
    %c0_41 = arith.constant 0 : index
    %108 = arith.index_cast %1 : i32 to index
    %c0_42 = arith.constant 0 : index
    %109 = vector.load %arg2[%c0_41, %108, %c0_42] : memref<1x8x32xf32, #tpu.memory_space<vmem>>, vector<1x8x32xf32>
    %110 = vector.shape_cast %109 : vector<1x8x32xf32> to vector<8x32xf32>
    %111 = arith.addf %110, %107 : vector<8x32xf32>
    %c0_43 = arith.constant 0 : index
    %c0_44 = arith.constant 0 : index
    %112 = vector.load %arg9[%c0_43, %c0_44] : memref<1x32xf32, #tpu.memory_space<vmem>>, vector<1x32xf32>
    %113 = vector.broadcast %112 : vector<1x32xf32> to vector<8x32xf32>
    %114 = arith.addf %111, %113 : vector<8x32xf32>
    %c0_45 = arith.constant 0 : index
    %c0_46 = arith.constant 0 : index
    %115 = vector.load %arg12[%c0_45, %c0_46] : memref<1x32xf32, #tpu.memory_space<vmem>>, vector<1x32xf32>
    %c0_47 = arith.constant 0 : index
    %c0_48 = arith.constant 0 : index
    %116 = vector.load %arg13[%c0_47, %c0_48] : memref<1x32xf32, #tpu.memory_space<vmem>>, vector<1x32xf32>
    %cst_49 = arith.constant dense<0.000000e+00> : vector<8xf32>
    %117 = vector.multi_reduction <add>, %114, %cst_49 [1] : vector<8x32xf32> to vector<8xf32>
    %118 = vector.shape_cast %117 : vector<8xf32> to vector<8x1xf32>
    %cst_50 = arith.constant 3.200000e+01 : f32
    %119 = vector.broadcast %cst_50 : f32 to vector<8x1xf32>
    %120 = arith.divf %118, %119 : vector<8x1xf32>
    %121 = vector.broadcast %120 : vector<8x1xf32> to vector<8x32xf32>
    %122 = arith.subf %114, %121 : vector<8x32xf32>
    %123 = arith.mulf %122, %122 : vector<8x32xf32>
    %cst_51 = arith.constant dense<0.000000e+00> : vector<8xf32>
    %124 = vector.multi_reduction <add>, %123, %cst_51 [1] : vector<8x32xf32> to vector<8xf32>
    %125 = vector.shape_cast %124 : vector<8xf32> to vector<8x1xf32>
    %cst_52 = arith.constant 3.200000e+01 : f32
    %126 = vector.broadcast %cst_52 : f32 to vector<8x1xf32>
    %127 = arith.divf %125, %126 : vector<8x1xf32>
    %128 = vector.broadcast %120 : vector<8x1xf32> to vector<8x32xf32>
    %129 = arith.subf %114, %128 : vector<8x32xf32>
    %cst_53 = arith.constant 9.99999997E-7 : f32
    %130 = vector.broadcast %cst_53 : f32 to vector<8x1xf32>
    %131 = arith.addf %127, %130 : vector<8x1xf32>
    %132 = math.rsqrt %131 : vector<8x1xf32>
    %133 = vector.broadcast %132 : vector<8x1xf32> to vector<8x32xf32>
    %134 = arith.mulf %129, %133 : vector<8x32xf32>
    %135 = vector.broadcast %115 : vector<1x32xf32> to vector<8x32xf32>
    %136 = arith.mulf %134, %135 : vector<8x32xf32>
    %137 = vector.broadcast %116 : vector<1x32xf32> to vector<8x32xf32>
    %138 = arith.addf %136, %137 : vector<8x32xf32>
    %139 = arith.truncf %138 : vector<8x32xf32> to vector<8x32xbf16>
    %cst_54 = arith.constant 0.000000e+00 : f32
    %140 = vector.broadcast %cst_54 : f32 to vector<8x32xf32>
    %c0_55 = arith.constant 0 : index
    %c0_56 = arith.constant 0 : index
    %141 = vector.load %arg14[%c0_55, %c0_56] : memref<32x64xbf16, #tpu.memory_space<vmem>>, vector<32x64xbf16>
    %cst_57 = arith.constant dense<0.000000e+00> : vector<8x64xf32>
    %142 = tpu.matmul %139, %141, %cst_57 {dimension_numbers = #tpu.dot_dimension_numbers<[1], [0], [0], [1], [0, 0, 1, 1], [], []>} : vector<8x32xbf16>, vector<32x64xbf16>, vector<8x64xf32> -> vector<8x64xf32>
    %c0_58 = arith.constant 0 : index
    %c0_59 = arith.constant 0 : index
    %143 = vector.load %arg15[%c0_58, %c0_59] : memref<1x64xf32, #tpu.memory_space<vmem>>, vector<1x64xf32>
    %144 = vector.broadcast %143 : vector<1x64xf32> to vector<8x64xf32>
    %145 = arith.addf %142, %144 : vector<8x64xf32>
    %cst_60 = arith.constant 0.000000e+00 : f32
    %146 = vector.broadcast %cst_60 : f32 to vector<8x64xf32>
    %147 = arith.maximumf %145, %146 : vector<8x64xf32>
    %148 = arith.truncf %147 : vector<8x64xf32> to vector<8x64xbf16>
    %c0_61 = arith.constant 0 : index
    %c0_62 = arith.constant 0 : index
    %149 = vector.load %arg16[%c0_61, %c0_62] : memref<64x32xbf16, #tpu.memory_space<vmem>>, vector<64x32xbf16>
    %cst_63 = arith.constant dense<0.000000e+00> : vector<8x32xf32>
    %150 = tpu.matmul %148, %149, %cst_63 {dimension_numbers = #tpu.dot_dimension_numbers<[1], [0], [0], [1], [0, 0, 1, 1], [], []>} : vector<8x64xbf16>, vector<64x32xbf16>, vector<8x32xf32> -> vector<8x32xf32>
    %151 = arith.addf %140, %150 : vector<8x32xf32>
    %c0_64 = arith.constant 0 : index
    %c0_65 = arith.constant 0 : index
    %152 = vector.load %arg17[%c0_64, %c0_65] : memref<1x32xf32, #tpu.memory_space<vmem>>, vector<1x32xf32>
    %153 = vector.broadcast %152 : vector<1x32xf32> to vector<8x32xf32>
    %154 = arith.addf %151, %153 : vector<8x32xf32>
    %155 = arith.addf %114, %154 : vector<8x32xf32>
    %c0_66 = arith.constant 0 : index
    %c0_67 = arith.constant 0 : index
    %c0_68 = arith.constant 0 : index
    %156 = vector.load %arg18[%c0_66, %c0_67, %c0_68] : memref<1x8x32xf32, #tpu.memory_space<vmem>>, vector<1x8x32xf32>
    %157 = vector.shape_cast %156 : vector<1x8x32xf32> to vector<8x32xf32>
    %158 = vector.shape_cast %155 : vector<8x32xf32> to vector<1x8x32xf32>
    tpu.vector_store %arg18[%c0_66, %c0_67, %c0_68], %158 {strides = array<i32>} : memref<1x8x32xf32, #tpu.memory_space<vmem>>, vector<1x8x32xf32>,
    return
  }
  func.func @transform_0(%arg0: i32, %arg1: i32) -> (i32, i32, i32) {
    %c0_i32 = arith.constant 0 : i32
    %c0_i32_0 = arith.constant 0 : i32
    %c0_i32_1 = arith.constant 0 : i32
    return %arg0, %c0_i32, %c0_i32_0 : i32, i32, i32
  }
  func.func @transform_1(%arg0: i32, %arg1: i32) -> (i32, i32, i32) {
    %c0_i32 = arith.constant 0 : i32
    %c0_i32_0 = arith.constant 0 : i32
    %c0_i32_1 = arith.constant 0 : i32
    return %arg0, %c0_i32, %c0_i32_0 : i32, i32, i32
  }
  func.func @transform_2(%arg0: i32, %arg1: i32) -> (i32, i32) {
    %c0_i32 = arith.constant 0 : i32
    %c0_i32_0 = arith.constant 0 : i32
    %c0_i32_1 = arith.constant 0 : i32
    return %c0_i32, %c0_i32_0 : i32, i32
  }
  func.func @transform_3(%arg0: i32, %arg1: i32) -> (i32, i32) {
    %c0_i32 = arith.constant 0 : i32
    %c0_i32_0 = arith.constant 0 : i32
    %c0_i32_1 = arith.constant 0 : i32
    return %c0_i32, %c0_i32_0 : i32, i32
  }
  func.func @transform_4(%arg0: i32, %arg1: i32) -> (i32, i32) {
    %c0_i32 = arith.constant 0 : i32
    %c0_i32_0 = arith.constant 0 : i32
    %c0_i32_1 = arith.constant 0 : i32
    return %c0_i32, %c0_i32_0 : i32, i32
  }
  func.func @transform_5(%arg0: i32, %arg1: i32) -> (i32, i32) {
    %c0_i32 = arith.constant 0 : i32
    %c0_i32_0 = arith.constant 0 : i32
    %c0_i32_1 = arith.constant 0 : i32
    return %c0_i32, %c0_i32_0 : i32, i32
  }
  func.func @transform_6(%arg0: i32, %arg1: i32) -> (i32, i32) {
    %c0_i32 = arith.constant 0 : i32
    %c0_i32_0 = arith.constant 0 : i32
    %c0_i32_1 = arith.constant 0 : i32
    return %c0_i32, %c0_i32_0 : i32, i32
  }
  func.func @transform_7(%arg0: i32, %arg1: i32) -> (i32, i32) {
    %c0_i32 = arith.constant 0 : i32
    %c0_i32_0 = arith.constant 0 : i32
    %c0_i32_1 = arith.constant 0 : i32
    return %c0_i32, %c0_i32_0 : i32, i32
  }
  func.func @transform_8(%arg0: i32, %arg1: i32) -> (i32, i32) {
    %c0_i32 = arith.constant 0 : i32
    %c0_i32_0 = arith.constant 0 : i32
    %c0_i32_1 = arith.constant 0 : i32
    return %c0_i32, %c0_i32_0 : i32, i32
  }
  func.func @transform_9(%arg0: i32, %arg1: i32) -> (i32, i32) {
    %c0_i32 = arith.constant 0 : i32
    %c0_i32_0 = arith.constant 0 : i32
    %c0_i32_1 = arith.constant 0 : i32
    return %c0_i32, %c0_i32_0 : i32, i32
  }
  func.func @transform_10(%arg0: i32, %arg1: i32) -> (i32, i32) {
    %c0_i32 = arith.constant 0 : i32
    %c0_i32_0 = arith.constant 0 : i32
    %c0_i32_1 = arith.constant 0 : i32
    return %c0_i32, %c0_i32_0 : i32, i32
  }
  func.func @transform_11(%arg0: i32, %arg1: i32) -> (i32, i32) {
    %c0_i32 = arith.constant 0 : i32
    %c0_i32_0 = arith.constant 0 : i32
    %c0_i32_1 = arith.constant 0 : i32
    return %c0_i32, %c0_i32_0 : i32, i32
  }
  func.func @transform_12(%arg0: i32, %arg1: i32) -> (i32, i32) {
    %c0_i32 = arith.constant 0 : i32
    %c0_i32_0 = arith.constant 0 : i32
    %c0_i32_1 = arith.constant 0 : i32
    return %c0_i32, %c0_i32_0 : i32, i32
  }
  func.func @transform_13(%arg0: i32, %arg1: i32) -> (i32, i32) {
    %c0_i32 = arith.constant 0 : i32
    %c0_i32_0 = arith.constant 0 : i32
    %c0_i32_1 = arith.constant 0 : i32
    return %c0_i32, %c0_i32_0 : i32, i32
  }
  func.func @transform_14(%arg0: i32, %arg1: i32) -> (i32, i32) {
    %c0_i32 = arith.constant 0 : i32
    %c0_i32_0 = arith.constant 0 : i32
    %c0_i32_1 = arith.constant 0 : i32
    return %c0_i32, %c0_i32_0 : i32, i32
  }
  func.func @transform_15(%arg0: i32, %arg1: i32) -> (i32, i32) {
    %c0_i32 = arith.constant 0 : i32
    %c0_i32_0 = arith.constant 0 : i32
    %c0_i32_1 = arith.constant 0 : i32
    return %c0_i32, %c0_i32_0 : i32, i32
  }
  func.func @transform_16(%arg0: i32, %arg1: i32) -> (i32, i32, i32) {
    %c0_i32 = arith.constant 0 : i32
    %c0_i32_0 = arith.constant 0 : i32
    return %arg0, %arg1, %c0_i32 : i32, i32, i32
  }
}

</mosaic_0001>

<bundles_post_ra>
// kernel: tpu_custom_call.1
= control target key start
LH: loop header
LB: loop body
LE: loop exit
PB: predicated region body
PF: predicated region fallthrough
CT: control target
= control target key end

     0   :  { %s2845_s0 = inlined_call_operand.vmem [shape: f32[2,8,32], index: 0, kind: input, shape index: {}]   ;;  %s2846_s1 = inlined_call_operand.vmem [shape: f32[2,1,8], index: 1, kind: input, shape index: {}]   ;;  %s2847_s2 = inlined_call_operand.vmem [shape: bf16[32,32], index: 2, kind: input, shape index: {}]   ;;  %s2848_s3 = inlined_call_operand.hbm [shape: f32[1,32], index: 3, kind: input, shape index: {}]   ;;  %s2849_s4 = inlined_call_operand.vmem [shape: bf16[32,64], index: 4, kind: input, shape index: {}]   ;;  %s2850_s5 = inlined_call_operand.hbm [shape: f32[1,64], index: 5, kind: input, shape index: {}]   ;;  %s2851_s6 = inlined_call_operand.hbm [shape: bf16[32,32], index: 6, kind: input, shape index: {}]   ;;  %s2852_s7 = inlined_call_operand.hbm [shape: f32[1,32], index: 7, kind: input, shape index: {}]   ;;  %s2853_s8 = inlined_call_operand.hbm [shape: f32[1,32], index: 8, kind: input, shape index: {}]   ;;  %s2854_s9 = inlined_call_operand.hbm [shape: f32[1,32], index: 9, kind: input, shape index: {}]   ;;  %s2855_s10 = inlined_call_operand.vmem [shape: f32[1,32], index: 10, kind: input, shape index: {}]   ;;  %s2856_s11 = inlined_call_operand.vmem [shape: f32[1,32], index: 11, kind: input, shape index: {}]   ;;  %s2857_s12 = inlined_call_operand.vmem [shape: bf16[32,64], index: 12, kind: input, shape index: {}]   ;;  %s2858_s13 = inlined_call_operand.vmem [shape: f32[1,64], index: 13, kind: input, shape index: {}]   ;;  %s2859_s14 = inlined_call_operand.vmem [shape: bf16[64,32], index: 14, kind: input, shape index: {}]   ;;  %s2860_s15 = inlined_call_operand.vmem [shape: f32[1,32], index: 15, kind: input, shape index: {}]   ;;  %s2861_s16 = inlined_call_operand.hbm [shape: f32[2,8,32], index: 16, kind: output, shape index: {}]  }
   0x1   :  { %2877 = sst [smem:[#allocation32_spill]] %s2845_s0 }
   0x2   :  { %2878 = sst [smem:[#allocation33_spill]] %s2848_s3 }
   0x3   :  { %2879 = sst [smem:[#allocation34_spill]] %s2850_s5 }
   0x4   :  { %2880 = sst [smem:[#allocation35_spill]] %s2852_s7 }
   0x5   :  { %2881 = sst [smem:[#allocation36_spill]] %s2858_s13 }
   0x6   :  { %2882 = sst [smem:[#allocation37_spill]] %s2860_s15 }
   0x7   :  { %2883 = sst [smem:[#allocation38_spill]] %s2861_s16 }
   0x8   :  { %21 = vsyncpa [#allocation7], 0 }
   0x9   :  { %22 = vsyncpa [#allocation10], 0 }
   0xa   :  { %23 = vsyncpa [#allocation13], 0 }
   0xb   :  { %24 = vsyncpa [#allocation16], 0 }
   0xc   :  { %25 = vsyncpa [#allocation8], 0 }
   0xd   :  { %27 = vsyncpa [#allocation8 + $0x1], 0  ;;  %s2427_s21 = smov 0   ;;  %s2429_s22 = smov 0  }
   0xe   :  { %s2431_s23 = smov 0   ;;  %s2433_s24 = smov 0  }
   0xf   :  { %s2435_s25 = smov 0   ;;  %s2437_s26 = smov 0  }
  0x10 LB: > { %2884 = sst [smem:[#allocation23_spill]] %s2302_s21  ;;  %s1707_s27 = sadd.s32 4294967295, %s2322_s26   ;;  %s2322_s26 = sphi %s2437_s26, %s33_s26   ;;  %s2318_s25 = sphi %s2435_s25, %s2919_s25   ;;  %s2314_s24 = sphi %s2433_s24, %s2918_s24   ;;  %s2310_s23 = sphi %s2431_s23, %s2917_s23   ;;  %s2306_s22 = sphi %s2429_s22, %s2916_s22   ;;  %s2302_s21 = sphi %s2427_s21, %s2915_s21  }
  0x11   : > { %2885 = sst [smem:[#allocation24_spill]] %s2306_s22  ;;  %s1708_s28 = sadd.s32 4294967294, %s2322_s26  }
  0x12   : > { %2886 = sst [smem:[#allocation25_spill]] %s2310_s23  ;;  %s45_s29 = sadd.s32 1, %s2318_s25 }
  0x13   : > { %2887 = sst [smem:[#allocation26_spill]] %s2318_s25  ;;  %s400_s30 = sadd.s32 1, %s2310_s23 }
  0x14   : > { %2888 = sst [smem:[#allocation27_spill]] %s2322_s26  ;;  %p47_p0 = scmp.ge.s32.totalorder %s45_s29, 2 }
  0x15   : > { %p410_p1 = scmp.ne.s32.totalorder %s2310_s23, %s2306_s22  ;;  %p411_p2 = scmp.eq.s32.totalorder %s1707_s27, 1 }
  0x16   : > { %p416_p3 = scmp.ne.s32.totalorder %s2306_s22, %s2302_s21  ;;  %s2921_s29 = smov (%p47_p0, %s45_s29), 0 }
  0x17   : > { %2889 = sst [smem:[#allocation28_spill]] %s2921_s29  ;;  %p2467_p4 = por %p411_p2, %p410_p1 }
  0x18   : > { %p417_p5 = scmp.eq.s32.totalorder %s1708_s28, 1  ;;  %s395_s17 = ssub.s32 %s2318_s25, %s2921_s29 }
  0x19   : > { %s2890_s0 = scalar_select %p2467_p4, 1, 0 }
  0x1a   : > { %p1709_p6 = scmp.ge.s32.totalorder %s2322_s26, 1  ;;  %p398_p7 = scmp.eq.s32.totalorder %s395_s17, 0 }
  0x1b   : > { %2891 = sst [smem:[#allocation29_spill]] %s2890_s0  ;;  %p2474_p8 = por %p417_p5, %p416_p3 }
  0x1c   : > { %p424_p9 = scmp.lt.s32.totalorder %s2322_s26, 3  ;;  %p2486_p11 = scmp.eq.s32.totalorder %s1707_s27, 0 }
  0x1d   : > { %s2892_s18 = scalar_select %p2474_p8, 1, 0 }
  0x1e   : > { %s2480_s19 = scalar_select %p398_p7, %s2310_s23, %s400_s30  }
  0x1f   : > { %2893 = sst [smem:[#allocation30_spill]] %s2892_s18  ;;  %p2482_p10 = pnand %p1709_p6, %p424_p9 }
  0x20   : > { %2894 = sst [smem:[#allocation31_spill]] %s2480_s19  ;;  %s2324_s28 = smov [#allocation9]  }
  0x21   : > { %s2895_s20 = scalar_select %p2482_p10, 1, 0 }
  0x22   : > { %s2896_s21 = scalar_select %p2486_p11, 1, 0 }
  0x23   : > { %p1925_p12 = pneg %p2482_p10  ;;  %s454_s17 = sshll.u32 %s2324_s28, 4  ;;  %s455_s17 = int_to_ptr.vmem [resolvable:$true] %s454_s17 }
  0x24   : > { %s2325_s29 = smov [#allocation12]   ;;  %s2898_s5 = sld [smem:[#allocation34_spill]] }
  0x25   : > { %s478_s25 = sshll.u32 %s2325_s29, 4  ;;  %p2494_p13 = pnand %p2486_p11, %p1925_p12  ;;  %s2498_s25 = int_to_ptr.vmem [resolvable:$true] %s478_s25 }
  0x27   : > { %p2508_p1 = pneg %p2494_p13 }
  0x2a   : > { %s2060_s23 = scalar_lea.hbm %s2898_s5, 16 }
  0x2b   : > { %p2061_p0 = scmp.ne.s32.totalorder %s2898_s5, %s2060_s23  ;;  %p2067_p5 = scmp.lt.u32.totalorder %s2060_s23, %s2898_s5 }
  0x2d   : > { %p2063_p2 = pnand %p2508_p1, %p2061_p0 }
  0x2f   : > { %p2064_p3 = pneg %p2063_p2 }
  0x31   : > { %p2069_p6 = pnand %p2067_p5, %p2064_p3 }
  0x33   : > { %2072 = shalt.err (!%p2069_p6)
}
  0x34   : > { %s2073_s19 = scalar_lea.vmem %s455_s17, 16  ;;  %s2080_s26 = scalar_lea.vmem %s455_s17, 32 }
  0x35   : > { %p2074_p7 = scmp.ne.s32.totalorder %s455_s17, %s2073_s19  ;;  %p2081_p8 = scmp.lt.s32.totalorder %s455_s17, %s455_s17 }
  0x36   : > { %p2082_p4 = scmp.lt.s32.totalorder %s2080_s26, %s2073_s19 }
  0x37   : > { %p2076_p9 = pnand %p2074_p7, %p2508_p1 }
  0x38   : > { %p2083_p11 = por %p2082_p4, %p2081_p8 }
  0x39   : > { %p2077_p12 = pneg %p2076_p9 }
  0x3b   : > { %p2084_p10 = pnand %p2083_p11, %p2077_p12 }
  0x3d   : > { %2087 = shalt.err (!%p2084_p10)
}
  0x3e   : > { %1931 = dma.hbm_to_vmem [thread:$0]  (!%p2494_p13), %s2898_s5, 16, %s455_s17, [#allocation10]  }
  0x3f   : > { %s2900_s7 = sld [smem:[#allocation35_spill]] }
  0x45   : > { %s2088_s29 = scalar_lea.hbm %s2900_s7, 16 }
  0x46   : > { %p2089_p0 = scmp.ne.s32.totalorder %s2900_s7, %s2088_s29  ;;  %p2095_p8 = scmp.lt.u32.totalorder %s2088_s29, %s2900_s7 }
  0x48   : > { %p2091_p2 = pnand %p2089_p0, %p2508_p1 }
  0x4a   : > { %p2092_p4 = pneg %p2091_p2 }
  0x4c   : > { %p2097_p10 = pnand %p2095_p8, %p2092_p4 }
  0x4e   : > { %2100 = shalt.err (!%p2097_p10)
}
  0x4f   : > { %s2101_s17 = scalar_lea.vmem %s2498_s25, 16  ;;  %s2108_s15 = scalar_lea.vmem %s2498_s25, 32 }
  0x50   : > { %p2102_p11 = scmp.ne.s32.totalorder %s2498_s25, %s2101_s17  ;;  %p2109_p6 = scmp.lt.s32.totalorder %s2498_s25, %s2498_s25 }
  0x51   : > { %p2110_p7 = scmp.lt.s32.totalorder %s2108_s15, %s2101_s17 }
  0x52   : > { %p2104_p3 = pnand %p2102_p11, %p2508_p1 }
  0x53   : > { %p2111_p9 = por %p2110_p7, %p2109_p6 }
  0x54   : > { %p2105_p5 = pneg %p2104_p3 }
  0x56   : > { %p2112_p12 = pnand %p2111_p9, %p2105_p5 }
  0x58   : > { %2115 = shalt.err (!%p2112_p12)
}
  0x59   : > { %1937 = dma.hbm_to_vmem [thread:$0]  (!%p2494_p13), %s2900_s7, 16, %s2498_s25, [#allocation13]  }
  0x5a   : > { %s2326_s27 = smov [#allocation6]   ;;  %s2327_s23 = smov [#allocation11]  }
  0x5b   : > { %s440_s16 = sshll.u32 %s2326_s27, 4  ;;  %s464_s29 = sshll.u32 %s2327_s23, 4  ;;  %s441_s16 = int_to_ptr.vmem [resolvable:$true] %s440_s16  ;;  %s465_s29 = int_to_ptr.vmem [resolvable:$true] %s464_s29 }
  0x5c   : > { %s2901_s3 = sld [smem:[#allocation33_spill]] }
  0x62   : > { %s2116_s17 = scalar_lea.hbm %s2901_s3, 16 }
  0x63   : > { %p2117_p0 = scmp.ne.s32.totalorder %s2901_s3, %s2116_s17  ;;  %p2123_p8 = scmp.lt.u32.totalorder %s2116_s17, %s2901_s3 }
  0x65   : > { %p2119_p2 = pnand %p2117_p0, %p2508_p1 }
  0x67   : > { %p2120_p4 = pneg %p2119_p2 }
  0x69   : > { %p2125_p10 = pnand %p2123_p8, %p2120_p4 }
  0x6b   : > { %2128 = shalt.err (!%p2125_p10)
}
  0x6c   : > { %s2129_s25 = scalar_lea.vmem %s441_s16, 16  ;;  %s2136_s18 = scalar_lea.vmem %s441_s16, 32 }
  0x6d   : > { %p2130_p11 = scmp.ne.s32.totalorder %s441_s16, %s2129_s25  ;;  %p2137_p6 = scmp.lt.s32.totalorder %s441_s16, %s441_s16 }
  0x6e   : > { %p2138_p7 = scmp.lt.s32.totalorder %s2136_s18, %s2129_s25 }
  0x6f   : > { %p2132_p3 = pnand %p2130_p11, %p2508_p1 }
  0x70   : > { %p2139_p9 = por %p2138_p7, %p2137_p6 }
  0x71   : > { %p2133_p5 = pneg %p2132_p3 }
  0x73   : > { %p2140_p12 = pnand %p2139_p9, %p2133_p5 }
  0x75   : > { %2143 = shalt.err (!%p2140_p12)
}
  0x76   : > { %1928 = dma.hbm_to_vmem [thread:$0]  (!%p2494_p13), %s2901_s3, 16, %s441_s16, [#allocation7]  }
  0x77   : > { %s2144_s19 = scalar_lea.hbm %s2851_s6, 256 }
  0x78   : > { %p2145_p0 = scmp.ne.s32.totalorder %s2851_s6, %s2144_s19  ;;  %p2151_p8 = scmp.lt.u32.totalorder %s2144_s19, %s2851_s6 }
  0x7a   : > { %p2147_p2 = pnand %p2145_p0, %p2508_p1 }
  0x7c   : > { %p2148_p4 = pneg %p2147_p2 }
  0x7e   : > { %p2153_p10 = pnand %p2151_p8, %p2148_p4 }
  0x80   : > { %2156 = shalt.err (!%p2153_p10)
}
  0x81   : > { %s2157_s25 = scalar_lea.vmem %s465_s29, 256  ;;  %p2165_p6 = scmp.lt.s32.totalorder %s465_s29, %s465_s29 }
  0x82   : > { %p2158_p11 = scmp.ne.s32.totalorder %s465_s29, %s2157_s25  ;;  %p2166_p7 = scmp.lt.s32.totalorder %s2157_s25, %s2157_s25 }
  0x84   : > { %p2160_p3 = pnand %p2158_p11, %p2508_p1  ;;  %p2167_p9 = por %p2166_p7, %p2165_p6 }
  0x86   : > { %p2161_p5 = pneg %p2160_p3 }
  0x88   : > { %p2168_p12 = pnand %p2167_p9, %p2161_p5 }
  0x8a   : > { %2171 = shalt.err (!%p2168_p12)
}
  0x8b   : > { %s2328_s16 = smov 64   ;;  %s2329_s18 = smov 4  }
  0x8c   : > { %1934 = dma.hbm_to_vmem [thread:$0]  (!%p2494_p13), %s2851_s6, 256, %s465_s29, [#allocation10], %s2328_s16, %s2328_s16, %s2329_s18  }
  0x8d   : > { %s2330_s13 = smov [#allocation14]   ;;  %s2331_s19 = smov [#allocation15]  }
  0x8e   : > { %s489_s23 = sshll.u32 %s2330_s13, 4  ;;  %s500_s26 = sshll.u32 %s2331_s19, 4  ;;  %s490_s23 = int_to_ptr.vmem [resolvable:$true] %s489_s23  ;;  %s501_s26 = int_to_ptr.vmem [resolvable:$true] %s500_s26 }
  0x8f   : > { %s2172_s0 = scalar_lea.hbm %s2853_s8, 16 }
  0x90   : > { %p2173_p0 = scmp.ne.s32.totalorder %s2853_s8, %s2172_s0  ;;  %p2179_p8 = scmp.lt.u32.totalorder %s2172_s0, %s2853_s8 }
  0x92   : > { %p2175_p2 = pnand %p2173_p0, %p2508_p1 }
  0x94   : > { %p2176_p4 = pneg %p2175_p2 }
  0x96   : > { %p2181_p10 = pnand %p2179_p8, %p2176_p4 }
  0x98   : > { %2184 = shalt.err (!%p2181_p10)
}
  0x99   : > { %s2185_s29 = scalar_lea.vmem %s490_s23, 16  ;;  %s2192_s16 = scalar_lea.vmem %s490_s23, 32 }
  0x9a   : > { %p2186_p11 = scmp.ne.s32.totalorder %s490_s23, %s2185_s29  ;;  %p2193_p6 = scmp.lt.s32.totalorder %s490_s23, %s490_s23 }
  0x9b   : > { %p2194_p7 = scmp.lt.s32.totalorder %s2192_s16, %s2185_s29 }
  0x9c   : > { %p2188_p3 = pnand %p2186_p11, %p2508_p1 }
  0x9d   : > { %p2195_p9 = por %p2194_p7, %p2193_p6 }
  0x9e   : > { %p2189_p5 = pneg %p2188_p3 }
  0xa0   : > { %p2196_p12 = pnand %p2195_p9, %p2189_p5 }
  0xa2   : > { %2199 = shalt.err (!%p2196_p12)
}
  0xa3   : > { %1940 = dma.hbm_to_vmem [thread:$0]  (!%p2494_p13), %s2853_s8, 16, %s490_s23, [#allocation13]  }
  0xa4   : > { %s2200_s5 = scalar_lea.hbm %s2854_s9, 16 }
  0xa5   : > { %p2201_p0 = scmp.ne.s32.totalorder %s2854_s9, %s2200_s5  ;;  %p2207_p8 = scmp.lt.u32.totalorder %s2200_s5, %s2854_s9 }
  0xa7   : > { %p2203_p2 = pnand %p2201_p0, %p2508_p1 }
  0xa9   : > { %p2204_p4 = pneg %p2203_p2 }
  0xab   : > { %p2209_p10 = pnand %p2207_p8, %p2204_p4 }
  0xad   : > { %2212 = shalt.err (!%p2209_p10)
}
  0xae   : > { %s2213_s15 = scalar_lea.vmem %s501_s26, 16  ;;  %s2220_s23 = scalar_lea.vmem %s501_s26, 32 }
  0xaf   : > { %p2214_p11 = scmp.ne.s32.totalorder %s501_s26, %s2213_s15  ;;  %p2221_p6 = scmp.lt.s32.totalorder %s501_s26, %s501_s26 }
  0xb0   : > { %p2222_p7 = scmp.lt.s32.totalorder %s2220_s23, %s2213_s15 }
  0xb1   : > { %p2216_p3 = pnand %p2214_p11, %p2508_p1 }
  0xb2   : > { %p2223_p9 = por %p2222_p7, %p2221_p6 }
  0xb3   : > { %p2217_p5 = pneg %p2216_p3 }
  0xb5   : > { %p2224_p12 = pnand %p2223_p9, %p2217_p5 }
  0xb7   : > { %2227 = shalt.err (!%p2224_p12)
}
  0xb8   : > { %1943 = dma.hbm_to_vmem [thread:$0]  (!%p2494_p13), %s2854_s9, 16, %s501_s26, [#allocation16]  }
  0xb9   : > { %p2902_p0 = scmp.ne.s32.totalorder %s2895_s20, 0 }
  0xba   : > { %p2903_p2 = scmp.ne.s32.totalorder (!%p2902_p0), %s2896_s21, 0 }
  0xbb   : > { %544 = sbr.rel (%p2902_p0) target bundleno = 2744 (0xab8), region = 84 }
  0xc2   : > { %2281 = dma.done.wait (%p2903_p2), [#allocation7], 16  }
  0xc3   : > { %2283 = vsyncadd (%p2903_p2), [#allocation7], 4294967280 }
  0xc4   : > { %2285 = dma.done.wait (%p2903_p2), [#allocation10], 272  }
  0xc5   : > { %2287 = vsyncadd (%p2903_p2), [#allocation10], 4294967024 }
  0xc6   : > { %2289 = dma.done.wait (%p2903_p2), [#allocation13], 32  }
  0xc7   : > { %2291 = vsyncadd (%p2903_p2), [#allocation13], 4294967264 }
  0xc8   : > { %2293 = dma.done.wait (%p2903_p2), [#allocation16], 16  }
  0xc9   : > { %2295 = vsyncadd (%p2903_p2), [#allocation16], 4294967280  ;;  %p616_p13 = scmp.lt.s32.totalorder %s2314_s24, 1  ;;  %v2332_v0 = vmov 0.0   ;;  %s2904_s29 = sld [smem:[#allocation32_spill]]  ;;  %vm632_vm0 = vcmask 261120   ;;  %v818_v49 = vlaneseq }
  0xca   : > { %1807 = vmatprep.subr.bf16.mxu1 %v2332_v0  ;;  %1823 = vmatprep.subr.bf16.mxu0 %v2332_v0  ;;  %v2026_v8 = vld [vmem:[%s2849_s4] sm:$0xff]   ;;  %vm2333_vm1 = vmmov 0   ;;  %v2027_v9 = vld [vmem:[%s2849_s4 + $0x8] sm:$0xff]   ;;  %vm662_vm2 = vcmask 257024   ;;  %v1728_v23 = vld [vmem:[#allocation9] ss:$0 sm:$0xff] }
  0xcb   : > { %s2642_s20 = scalar_select %p616_p13, %s2314_s24, 1  ;;  %1811 = vmatprep.mubr.msk.bf16.mxu1 %vm2333_vm1, %v2332_v0  ;;  %1825 = vmatprep.mubr.msk.bf16.mxu0 %vm2333_vm1, %v2332_v0  ;;  %v1726_v14 = vld [vmem:[#allocation14] ss:$0 sm:$0xff]  ;;  %v1727_v16 = vld [vmem:[#allocation15] ss:$0 sm:$0xff]  ;;  %vm823_vm3 = vcmask 64512  }
  0xcc   : > { %1808 = vmatpush3.bf16.msra.mxu1 %v2026_v8  ;;  %v2028_v19 = vld [vmem:[%s2847_s2] sm:$0xff]   ;;  %v2029_v21 = vld [vmem:[%s2847_s2 + $0x8] sm:$0xff]   ;;  %v1733_v32 = vld [vmem:[#allocation6] ss:$0 sm:$0xff]  ;;  %s2334_s19 = smov 112   ;;  %s2335_s17 = smov 120  }
  0xcd   : > { %s1725_s30 = sshll.u32 %s2642_s20, 3  ;;  %1809 = vmatprep.subr.bf16.mxu1 %v2332_v0  ;;  %s2336_s15 = smov 104   ;;  %v819_v51 = vshrl.u32 %v818_v49, 7  ;;  %vm885_vm5 = vcmask 1043456   ;;  %vm930_vm6 = vcmask 60416   ;;  %vm1056_vm7 = vcmask 126016  }
  0xce   : > { %s622_s25 = scalar_lea.vmem %s2846_s1, %s2642_s20  ;;  %s2337_s20 = smov 96   ;;  %vm1175_vm8 = vcmask 191616   ;;  %vm1294_vm9 = vcmask 257216   ;;  %vm1505_vm10 = vcmask 523264  }
  0xcf   : > { %s619_s16 = scalar_lea.vmem %s2904_s29, %s1725_s30  ;;  %v811_v50 = vld [vmem:[%s622_s25] sm:$0x1]  ;;  %v820_v52 = vsub.s32 0, %v819_v51  ;;  %s2338_s30 = smov 8  }
  0xd0   : > { %v2648_v1 = vld [vmem:[%s619_s16] sm:$0xff]  ;;  %1810 = vmatpush3.bf16.msra.mxu1 %v2027_v9  ;;  %vm812_vm4 = vcmp.eq.f32.partialorder %v811_v50, 0.0  ;;  %s2339_s28 = smov 16   ;;  %s2340_s26 = smov 24  }
  0xd1   : > { %v633_v2 = vsel %vm632_vm0, %v2648_v1, 0.0  ;;  %1815 = vmatprep.subr.bf16.mxu1 %v2332_v0  ;;  %v813_v53 = vsel %vm812_vm4, -1e+09, %v2332_v0  ;;  %s2905_s0 = sld [smem:[#allocation24_spill]]  ;;  %s2907_s18 = sld [smem:[#allocation37_spill]] }
  0xd2   : > { %634 = vadd.xlane.f32.xlu0 %v633_v2  ;;  %v821_v54 = vrot.slane %v813_v53, %v820_v52  ;;  %s2908_s7 = sld [smem:[#allocation29_spill]]  ;;  %s1767_s22 = sshll.u32 %s2314_s24, 7 }
  0xd7   : > { %s613_s29 = sand.u32 1, %s2905_s0   ;;  %s2341_s0 = smov [#allocation17]  }
  0xd8   : > { %s1724_s16 = sshll.u32 %s613_s29, 3  ;;  %s1552_s24 = scalar_lea.sflag [#allocation8], %s613_s29 }
  0xd9   : > { %s615_s5 = scalar_lea.vmem [#allocation17], %s1724_s16  ;;  %p2910_p4 = scmp.ne.s32.totalorder %s2908_s7, 0 }
  0xda   : > { %s1566_s27 = sshll.u32 %s615_s5, 4  ;;  %s2232_s25 = sshll.u32 %s2341_s0, 4  ;;  %s2799_s27 = int_to_ptr.vmem [resolvable:$true] %s1566_s27  ;;  %s2233_s25 = int_to_ptr.vmem [resolvable:$false] %s2232_s25 }
  0xdb   : > { %s2228_s23 = scalar_lea.vmem %s2799_s27, 128  ;;  %p2235_p11 = scmp.lt.s32.totalorder %s2799_s27, %s2233_s25 }
  0xdc   : > { %p2229_p1 = scmp.ne.s32.totalorder %s2799_s27, %s2228_s23 }
  0xde   : > { %p2230_p8 = pnand %p2229_p1, %p2910_p4 }
  0xe0   : > { %p2231_p10 = pneg %p2230_p8 }
 0x15f   : > { %v635_v3 = vpop.xlane.xlu0 %634 }
 0x160   : > { %v637_v4 = vmul.f32 0.03125, %v635_v3 }
 0x162   : > { %v638_v5 = vsub.f32 %v2648_v1, %v637_v4 }
 0x164   : > { %v639_v6 = vmul.f32 %v638_v5, %v638_v5 }
 0x166   : > { %v640_v7 = vsel %vm632_vm0, %v639_v6, 0.0 }
 0x167   : > { %641 = vadd.xlane.f32.xlu0 %v640_v7 }
 0x1f4   : > { %v642_v10 = vpop.xlane.xlu0 %641 }
 0x1f5   : > { %v643_v11 = vmul.f32 0.03125, %v642_v10 }
 0x1f7   : > { %v644_v12 = vadd.f32 1e-06, %v643_v11 }
 0x1f9   : > { %2040 = vrsqrt.f32 %v644_v12 }
 0x203   : > { %v2041_v13 = vpop.eup %2040 }
 0x204   : > { %v646_v15 = vmul.f32 %v2041_v13, %v638_v5 }
 0x206   : > { %v653_v17 = vmul.f32 %v1726_v14, %v646_v15 }
 0x208   : > { %v660_v18 = vadd.f32 %v1727_v16, %v653_v17 }
 0x20a   : > { %v661_v20 = vpack.c.bf16 %v660_v18, %v660_v18 }
 0x20c   : > { %663 = vst.msk [vmem:[#allocation2] sm:$0xf] %vm662_vm2, %v661_v20  ;;  %1812 = vmatmul.mubr.msk.bf16.vlgmr.msra.gmra.mrb[0].mxu1 %vm632_vm0, %v661_v20 }
 0x20d   : > { %1816 = vmatpush3.bf16.msra.mxu1 %v2028_v19  ;;  %1819 = vmatprep.mubr.msk.bf16.mxu1 %vm2333_vm1, %v2332_v0 }
 0x20e   : > { %1817 = vmatprep.subr.bf16.mxu1 %v2332_v0 }
 0x211   : > { %1818 = vmatpush3.bf16.msra.mxu1 %v2029_v21 }
 0x212   : > { %1829 = vmatprep.subr.bf16.mxu1 %v2332_v0 }
 0x213   : > { %v743_v22 = vld [vmem:[#allocation2] sm:$0xf] }
 0x214   : > { %1820 = vmatmul.mubr.msk.bf16.vlgmr.msra.gmra.mrb[4].mxu1 %vm632_vm0, %v743_v22 }
 0x215   : > { %1831 = vmatprep.mubr.msk.bf16.mxu1 %vm2333_vm1, %v2332_v0 }
 0x2df   : > { %v724_v24 = vpop.f32.mrb[0].mxu1 }
 0x2e0   : > { %v725_v25 = vadd.f32 %v1728_v23, %v724_v24  ;;  %v1813_v26 = vpop.f32.mrb[1].mxu1 }
 0x2e1   : > { %v727_v27 = vpop.f32.mrb[2].mxu1 }
 0x2e2   : > { %v2681_v28 = vpack.c.bf16 %v725_v25, %v725_v25  ;;  %v1814_v29 = vpop.f32.mrb[3].mxu1 }
 0x2e4   : > { %731 = vst.msk [vmem:[#allocation3] sm:$0xf] %vm662_vm2, %v2681_v28 }
 0x2e7   : > { %v805_v30 = vpop.f32.mrb[4].mxu1 }
 0x2e8   : > { %v1821_v31 = vpop.f32.mrb[5].mxu1  ;;  %v806_v36 = vadd.f32 %v1733_v32, %v805_v30 }
 0x2e9   : > { %v808_v33 = vpop.f32.mrb[6].mxu1 }
 0x2ea   : > { %v1822_v34 = vpop.f32.mrb[7].mxu1  ;;  %v816_v39 = vpack.c.bf16 %v806_v36, %v806_v36 }
 0x2eb   : > { %v814_v35 = vld [vmem:[#allocation3] sm:$0xf] }
 0x2ec   : > { %v828_v37 = vsel %vm823_vm3, %v814_v35, 0  ;;  %v1739_v38 = vcombine.low %v814_v35, %v814_v35 }
 0x2ed   : > { %1824 = vmatpush3.bf16.xpose.msra.mxu0 %v828_v37 }
 0x2ee   : > { %1060 = vrot.lane.b32.xlu0 %v1739_v38, %s2334_s19  ;;  %938 = vrot.lane.b32.xlu1 %v1739_v38, %s2335_s17 }
 0x2ef   : > { %1835 = vmatprep.subr.bf16.mxu0 %v2332_v0 }
 0x2f2   : > { %933 = vrot.lane.b32.xlu1 %v816_v39, %s2335_s17 }
 0x2f4   : > { %1826 = vmatmul.mubr.msk.bf16.vlgmr.msra.gmra.mrb[0].mxu0 %vm823_vm3, %v816_v39 }
 0x2f5   : > { %1837 = vmatprep.mubr.msk.bf16.mxu0 %vm2333_vm1, %v2332_v0 }
 0x2f6   : > { %1058 = vrot.lane.b32.xlu1 %v816_v39, %s2334_s19 }
 0x2fa   : > { %1179 = vrot.lane.b32.xlu1 %v1739_v38, %s2336_s15 }
 0x2fe   : > { %1177 = vrot.lane.b32.xlu1 %v816_v39, %s2336_s15 }
 0x360   : > { %v939_v40 = vpop.permute.xlu1 %938  ;;  %v1061_v43 = vpop.permute.xlu0 %1060 }
 0x361   : > { %v944_v41 = vsel %vm823_vm3, %v939_v40, 0  ;;  %v1066_v45 = vsel %vm823_vm3, %v1061_v43, 0 }
 0x362   : > { %1836 = vmatpush3.bf16.xpose.msra.mxu0 %v944_v41 }
 0x363   : > { %1847 = vmatprep.subr.bf16.mxu0 %v2332_v0 }
 0x364   : > { %v934_v42 = vpop.permute.xlu1 %933 }
 0x368   : > { %v1059_v44 = vpop.permute.xlu1 %1058 }
 0x369   : > { %1838 = vmatmul.mubr.msk.bf16.vlgmr.msra.gmra.mrb[4].mxu0 %vm823_vm3, %v934_v42 }
 0x36a   : > { %1848 = vmatpush3.bf16.xpose.msra.mxu0 %v1066_v45  ;;  %1849 = vmatprep.mubr.msk.bf16.mxu0 %vm2333_vm1, %v2332_v0 }
 0x36b   : > { %1859 = vmatprep.subr.bf16.mxu0 %v2332_v0 }
 0x36c   : > { %v1180_v46 = vpop.permute.xlu1 %1179 }
 0x36d   : > { %v1185_v47 = vsel %vm823_vm3, %v1180_v46, 0 }
 0x370   : > { %v1178_v48 = vpop.permute.xlu1 %1177 }
 0x371   : > { %1850 = vmatmul.mubr.msk.bf16.vlgmr.msra.gmra.mrb[8].mxu0 %vm823_vm3, %v1059_v44 }
 0x372   : > { %1860 = vmatpush3.bf16.xpose.msra.mxu0 %v1185_v47  ;;  %1861 = vmatprep.mubr.msk.bf16.mxu0 %vm2333_vm1, %v2332_v0 }
 0x373   : > { %1871 = vmatprep.subr.bf16.mxu0 %v2332_v0 }
 0x379   : > { %1862 = vmatmul.mubr.msk.bf16.vlgmr.msra.gmra.mrb[12].mxu0 %vm823_vm3, %v1178_v48 }
 0x37a   : > { %1875 = vmatprep.mubr.msk.bf16.mxu0 %vm2333_vm1, %v2332_v0 }
 0x3c7   : > { %v864_v55 = vpop.f32.mrb[0].mxu0 }
 0x3c8   : > { %v865_v56 = vadd.f32 %v864_v55, %v821_v54  ;;  %v1827_v57 = vpop.f32.mrb[1].mxu0 }
 0x3c9   : > { %v867_v58 = vpop.f32.mrb[2].mxu0 }
 0x3ca   : > { %v1828_v59 = vpop.f32.mrb[3].mxu0  ;;  %v870_v60 = vsel %vm823_vm3, %v865_v56, -inf }
 0x3cb   : > { %871 = vmax.xlane.f32.xlu1 %v870_v60 }
 0x43c   : > { %v980_v61 = vpop.f32.mrb[4].mxu0 }
 0x43d   : > { %v981_v62 = vadd.f32 %v980_v61, %v821_v54  ;;  %v1839_v63 = vpop.f32.mrb[5].mxu0 }
 0x43e   : > { %v983_v2 = vpop.f32.mrb[6].mxu0 }
 0x43f   : > { %v1840_v3 = vpop.f32.mrb[7].mxu0  ;;  %v986_v4 = vsel %vm823_vm3, %v981_v62, -inf }
 0x440   : > { %987 = vmax.xlane.f32.xlu0 %v986_v4 }
 0x444   : > { %v1102_v5 = vpop.f32.mrb[8].mxu0 }
 0x445   : > { %v1103_v6 = vadd.f32 %v1102_v5, %v821_v54  ;;  %v1851_v7 = vpop.f32.mrb[9].mxu0 }
 0x446   : > { %v1105_v8 = vpop.f32.mrb[10].mxu0 }
 0x447   : > { %v1852_v9 = vpop.f32.mrb[11].mxu0  ;;  %v1108_v10 = vsel %vm823_vm3, %v1103_v6, -inf }
 0x448   : > { %1109 = vmax.xlane.f32.xlu1 %v1108_v10 }
 0x44c   : > { %v1221_v11 = vpop.f32.mrb[12].mxu0 }
 0x44d   : > { %v1222_v12 = vadd.f32 %v1221_v11, %v821_v54  ;;  %v1863_v13 = vpop.f32.mrb[13].mxu0  ;;  %v2032_v11 = vld [vmem:[#allocation11] sm:$0xff]  }
 0x44e   : > { %v1224_v14 = vpop.f32.mrb[14].mxu0  ;;  %1872 = vmatpush3.bf16.msra.mxu0 %v2032_v11  ;;  %v2033_v13 = vld [vmem:[#allocation11 + $0x8] sm:$0xff]  }
 0x44f   : > { %v1864_v15 = vpop.f32.mrb[15].mxu0  ;;  %v1227_v16 = vsel %vm823_vm3, %v1222_v12, -inf  ;;  %1873 = vmatprep.subr.bf16.mxu0 %v2332_v0 }
 0x450   : > { %1228 = vmax.xlane.f32.xlu1 %v1227_v16 }
 0x452   : > { %1874 = vmatpush3.bf16.msra.mxu0 %v2033_v13 }
 0x453   : > { %1887 = vmatprep.subr.bf16.mxu0 %v2332_v0 }
 0x456   : > { %735 = vrot.lane.b32.xlu0 %v2681_v28, %s2337_s20  ;;  %s2234_s20 = scalar_lea.vmem %s2233_s25, 256 }
 0x457   : > { %p2236_p3 = scmp.lt.s32.totalorder %s2234_s20, %s2228_s23 }
 0x458   : > { %v872_v17 = vpop.xlane.xlu1 %871 }
 0x459   : > { %v873_v18 = vsub.f32 %v865_v56, %v872_v17  ;;  %p2237_p5 = por %p2236_p3, %p2235_p11 }
 0x45b   : > { %v874_v19 = vmul.f32 1.442695, %v873_v18  ;;  %p2238_p6 = pnand %p2237_p5, %p2231_p10 }
 0x45d   : > { %2042 = vpow2.f32 %v874_v19 }
 0x467   : > { %v2043_v20 = vpop.eup %2042 }
 0x468   : > { %v876_v21 = vsel %vm823_vm3, %v2043_v20, 0.0 }
 0x469   : > { %877 = vadd.xlane.f32.xlu1 %v876_v21 }
 0x4cd   : > { %v988_v22 = vpop.xlane.xlu0 %987 }
 0x4ce   : > { %v989_v23 = vsub.f32 %v981_v62, %v988_v22 }
 0x4d0   : > { %v990_v24 = vmul.f32 1.442695, %v989_v23 }
 0x4d1   : > { %v736_v25 = vpop.permute.xlu0 %735 }
 0x4d2   : > { %2044 = vpow2.f32 %v990_v24  ;;  %738 = vst.msk [vmem:[#allocation4] sm:$0xf] %vm662_vm2, %v736_v25 }
 0x4d5   : > { %v1110_v26 = vpop.xlane.xlu1 %1109 }
 0x4d6   : > { %v1111_v27 = vsub.f32 %v1103_v6, %v1110_v26 }
 0x4d8   : > { %v1112_v29 = vmul.f32 1.442695, %v1111_v27 }
 0x4d9   : > { %v815_v28 = vld [vmem:[#allocation4] sm:$0xf] }
 0x4da   : > { %2046 = vpow2.f32 %v1112_v29  ;;  %v887_v30 = vsel %vm885_vm5, %v815_v28, 0  ;;  %v1741_v31 = vcombine.low %v815_v28, %v815_v28  ;;  %v1753_v29 = vld [vmem:[#allocation12] ss:$0 sm:$0xff] }
 0x4db   : > { %1830 = vmatpush3.bf16.msra.mxu1 %v887_v30 }
 0x4dc   : > { %v2045_v32 = vpop.eup %2044  ;;  %1120 = vrot.lane.b32.xlu0 %v1741_v31, %s2334_s19  ;;  %1841 = vmatprep.subr.bf16.mxu1 %v2332_v0 }
 0x4dd   : > { %v1229_v33 = vpop.xlane.xlu1 %1228  ;;  %v992_v34 = vsel %vm823_vm3, %v2045_v32, 0.0 }
 0x4de   : > { %v1230_v35 = vsub.f32 %v1222_v12, %v1229_v33  ;;  %993 = vadd.xlane.f32.xlu1 %v992_v34 }
 0x4e0   : > { %v1231_v36 = vmul.f32 1.442695, %v1230_v35  ;;  %1239 = vrot.lane.b32.xlu0 %v1741_v31, %s2336_s15 }
 0x4e2   : > { %2048 = vpow2.f32 %v1231_v36 }
 0x4e4   : > { %v2047_v37 = vpop.eup %2046 }
 0x4e5   : > { %v1114_v38 = vsel %vm823_vm3, %v2047_v37, 0.0 }
 0x4e6   : > { %1115 = vadd.xlane.f32.xlu1 %v1114_v38 }
 0x4ec   : > { %v2049_v39 = vpop.eup %2048 }
 0x4ed   : > { %v1233_v40 = vsel %vm823_vm3, %v2049_v39, 0.0 }
 0x4ee   : > { %1234 = vadd.xlane.f32.xlu1 %v1233_v40  ;;  %v2034_v40 = vld [vmem:[%s2857_s12] sm:$0xff]  }
 0x4f6   : > { %v878_v41 = vpop.xlane.xlu1 %877 }
 0x4f7   : > { %2050 = vrcp.f32 %v878_v41  ;;  %v2036_v41 = vld [vmem:[%s2859_s14] sm:$0xff]  }
 0x4ff   : > { %1001 = vrot.lane.b32.xlu1 %v1741_v31, %s2335_s17  ;;  %s2909_s17 = sld [smem:[#allocation38_spill]] }
 0x501   : > { %v2051_v42 = vpop.eup %2050 }
 0x502   : > { %v880_v43 = vmul.f32 %v2051_v42, %v2043_v20  ;;  %v2037_v42 = vld [vmem:[%s2859_s14 + $0x8] sm:$0xff]  }
 0x504   : > { %v881_v44 = vpack.c.bf16 %v880_v43, %v880_v43 }
 0x505   : > { %s2797_s15 = scalar_lea.hbm %s2909_s17, %s1767_s22 }
 0x506   : > { %1832 = vmatmul.mubr.msk.bf16.vlgmr.msra.gmra.mrb[8].mxu1 %vm823_vm3, %v881_v44 }
 0x507   : > { %1843 = vmatprep.mubr.msk.bf16.mxu1 %vm2333_vm1, %v2332_v0 }
 0x54e   : > { %v1121_v52 = vpop.permute.xlu0 %1120 }
 0x54f   : > { %v1126_v55 = vsel %vm885_vm5, %v1121_v52, 0 }
 0x552   : > { %v1240_v57 = vpop.permute.xlu0 %1239 }
 0x553   : > { %v1245_v60 = vsel %vm885_vm5, %v1240_v57, 0 }
 0x56b   : > { %v994_v45 = vpop.xlane.xlu1 %993 }
 0x56c   : > { %2052 = vrcp.f32 %v994_v45 }
 0x573   : > { %v1116_v46 = vpop.xlane.xlu1 %1115 }
 0x574   : > { %2054 = vrcp.f32 %v1116_v46 }
 0x576   : > { %v2053_v47 = vpop.eup %2052 }
 0x577   : > { %v996_v49 = vmul.f32 %v2053_v47, %v2045_v32  ;;  %v1754_v47 = vld [vmem:[%s2855_s10] ss:$0 sm:$0xff] }
 0x579   : > { %v997_v53 = vpack.c.bf16 %v996_v49, %v996_v49  ;;  %v1755_v49 = vld [vmem:[%s2856_s11] ss:$0 sm:$0xff] }
 0x57b   : > { %v1235_v48 = vpop.xlane.xlu1 %1234 }
 0x57c   : > { %2056 = vrcp.f32 %v1235_v48 }
 0x57e   : > { %v2055_v54 = vpop.eup %2054 }
 0x57f   : > { %v1002_v50 = vpop.permute.xlu1 %1001  ;;  %v1118_v56 = vmul.f32 %v2055_v54, %v2047_v37  ;;  %v2039_v54 = vld [vmem:[%s2859_s14 + $0x18] sm:$0xff]  }
 0x580   : > { %v1007_v51 = vsel %vm885_vm5, %v1002_v50, 0 }
 0x581   : > { %1842 = vmatpush3.bf16.msra.mxu1 %v1007_v51  ;;  %v1119_v58 = vpack.c.bf16 %v1118_v56, %v1118_v56 }
 0x582   : > { %1853 = vmatprep.subr.bf16.mxu1 %v2332_v0 }
 0x584   : > { %1844 = vmatmul.mubr.msk.bf16.vlgmr.msra.gmra.mrb[12].mxu1 %vm823_vm3, %v997_v53  ;;  %v2038_v53 = vld [vmem:[%s2859_s14 + $0x10] sm:$0xff]  }
 0x585   : > { %1854 = vmatpush3.bf16.msra.mxu1 %v1126_v55  ;;  %1855 = vmatprep.mubr.msk.bf16.mxu1 %vm2333_vm1, %v2332_v0 }
 0x586   : > { %1865 = vmatprep.subr.bf16.mxu1 %v2332_v0  ;;  %v2057_v59 = vpop.eup %2056 }
 0x587   : > { %v1237_v61 = vmul.f32 %v2057_v59, %v2049_v39 }
 0x589   : > { %v1238_v62 = vpack.c.bf16 %v1237_v61, %v1237_v61 }
 0x58c   : > { %1856 = vmatmul.mubr.msk.bf16.vlgmr.msra.gmra.mrb[16].mxu1 %vm823_vm3, %v1119_v58 }
 0x58d   : > { %1866 = vmatpush3.bf16.msra.mxu1 %v1245_v60  ;;  %1867 = vmatprep.mubr.msk.bf16.mxu1 %vm2333_vm1, %v2332_v0 }
 0x58e   : > { %1879 = vmatprep.subr.bf16.mxu1 %v2332_v0 }
 0x594   : > { %1868 = vmatmul.mubr.msk.bf16.vlgmr.msra.gmra.mrb[20].mxu1 %vm823_vm3, %v1238_v62 }
 0x595   : > { %1883 = vmatprep.mubr.msk.bf16.mxu1 %vm2333_vm1, %v2332_v0  ;;  %1880 = vmatpush3.bf16.msra.mxu1 %v2034_v40 }
 0x596   : > { %1881 = vmatprep.subr.bf16.mxu1 %v2332_v0 }
 0x5d9   : > { %v923_v63 = vpop.f32.mrb[8].mxu1 }
 0x5da   : > { %v929_v2 = vpack.c.bf16 %v923_v63, %v923_v63  ;;  %v1833_v3 = vpop.f32.mrb[9].mxu1 }
 0x5db   : > { %v926_v4 = vpop.f32.mrb[10].mxu1 }
 0x5dc   : > { %931 = vst.msk [vmem:[#allocation5] sm:$0xf] %vm930_vm6, %v929_v2  ;;  %v1834_v5 = vpop.f32.mrb[11].mxu1 }
 0x657   : > { %v1043_v6 = vpop.f32.mrb[12].mxu1 }
 0x658   : > { %v1771_v7 = vpack.c.bf16 %v1043_v6, %v1043_v6  ;;  %v1845_v8 = vpop.f32.mrb[13].mxu1 }
 0x659   : > { %v1046_v9 = vpop.f32.mrb[14].mxu1 }
 0x65a   : > { %1053 = vrot.lane.b32.xlu0 %v1771_v7, %s2338_s30  ;;  %v1846_v10 = vpop.f32.mrb[15].mxu1 }
 0x65f   : > { %v1162_v12 = vpop.f32.mrb[16].mxu1 }
 0x660   : > { %v1772_v14 = vpack.c.bf16 %v1162_v12, %v1162_v12  ;;  %v1857_v15 = vpop.f32.mrb[17].mxu1 }
 0x661   : > { %v1165_v16 = vpop.f32.mrb[18].mxu1 }
 0x662   : > { %1172 = vrot.lane.b32.xlu0 %v1772_v14, %s2339_s28  ;;  %v1858_v17 = vpop.f32.mrb[19].mxu1 }
 0x667   : > { %v1281_v18 = vpop.f32.mrb[20].mxu1 }
 0x668   : > { %v1773_v19 = vpack.c.bf16 %v1281_v18, %v1281_v18  ;;  %v1869_v20 = vpop.f32.mrb[21].mxu1 }
 0x669   : > { %v1284_v21 = vpop.f32.mrb[22].mxu1 }
 0x66a   : > { %1291 = vrot.lane.b32.xlu1 %v1773_v19, %s2340_s26  ;;  %v1870_v22 = vpop.f32.mrb[23].mxu1  ;;  %s2906_s26 = sld [smem:[#allocation36_spill]] }
 0x670   : > { %v1756_v55 = vld [vmem:[%s2906_s26] ss:$0 sm:$0xff] }
 0x6cc   : > { %v1054_v23 = vpop.permute.xlu0 %1053 }
 0x6cd   : > { %1057 = vst.msk [vmem:[#allocation5] sm:$0xf] %vm1056_vm7, %v1054_v23 }
 0x6d4   : > { %v1173_v24 = vpop.permute.xlu0 %1172 }
 0x6d5   : > { %1176 = vst.msk [vmem:[#allocation5] sm:$0xf] %vm1175_vm8, %v1173_v24 }
 0x6dc   : > { %v1292_v25 = vpop.permute.xlu1 %1291 }
 0x6dd   : > { %1295 = vst.msk [vmem:[#allocation5] sm:$0xf] %vm1294_vm9, %v1292_v25 }
 0x6e4   : > { %v1296_v26 = vld [vmem:[#allocation5] sm:$0xf] }
 0x6e5   : > { %1876 = vmatmul.mubr.msk.bf16.vlgmr.msra.gmra.mrb[16].mxu0 %vm632_vm0, %v1296_v26 }
 0x6e6   : > { %1895 = vmatprep.mubr.msk.bf16.mxu0 %vm2333_vm1, %v2332_v0  ;;  %1888 = vmatpush3.bf16.msra.mxu0 %v2036_v41 }
 0x6e7   : > { %1889 = vmatprep.subr.bf16.mxu0 %v2332_v0 }
 0x6ea   : > { %1890 = vmatpush3.bf16.msra.mxu0 %v2037_v42 }
 0x6eb   : > { %1891 = vmatprep.subr.bf16.mxu0 %v2332_v0 }
 0x6ee   : > { %1892 = vmatpush3.bf16.msra.mxu0 %v2038_v53 }
 0x6ef   : > { %1893 = vmatprep.subr.bf16.mxu0 %v2332_v0  ;;  %v1760_v0 = vld [vmem:[%s2907_s18] ss:$0 sm:$0xff] }
 0x6f2   : > { %1894 = vmatpush3.bf16.msra.mxu0 %v2039_v54 }
 0x7b8   : > { %v1350_v27 = vpop.f32.mrb[16].mxu0 }
 0x7b9   : > { %v1358_v28 = vadd.f32 %v1350_v27, %v2648_v1  ;;  %v1877_v30 = vpop.f32.mrb[17].mxu0  ;;  %v2035_v1 = vld [vmem:[%s2857_s12 + $0x8] sm:$0xff]  }
 0x7ba   : > { %v1353_v31 = vpop.f32.mrb[18].mxu0  ;;  %1882 = vmatpush3.bf16.msra.mxu1 %v2035_v1 }
 0x7bb   : > { %v1366_v32 = vadd.f32 %v1753_v29, %v1358_v28  ;;  %v1878_v33 = vpop.f32.mrb[19].mxu0 }
 0x7bd   : > { %v1369_v34 = vsel %vm632_vm0, %v1366_v32, 0.0 }
 0x7be   : > { %1370 = vadd.xlane.f32.xlu0 %v1369_v34 }
 0x84b   : > { %v1371_v35 = vpop.xlane.xlu0 %1370 }
 0x84c   : > { %v1373_v36 = vmul.f32 0.03125, %v1371_v35 }
 0x84e   : > { %v1374_v37 = vsub.f32 %v1366_v32, %v1373_v36 }
 0x850   : > { %v1375_v38 = vmul.f32 %v1374_v37, %v1374_v37 }
 0x852   : > { %v1376_v39 = vsel %vm632_vm0, %v1375_v38, 0.0 }
 0x853   : > { %1377 = vadd.xlane.f32.xlu1 %v1376_v39 }
 0x8e0   : > { %v1378_v43 = vpop.xlane.xlu1 %1377 }
 0x8e1   : > { %v1379_v44 = vmul.f32 0.03125, %v1378_v43 }
 0x8e3   : > { %v1380_v45 = vadd.f32 1e-06, %v1379_v44 }
 0x8e5   : > { %2058 = vrsqrt.f32 %v1380_v45 }
 0x8ef   : > { %v2059_v46 = vpop.eup %2058 }
 0x8f0   : > { %v1382_v48 = vmul.f32 %v2059_v46, %v1374_v37 }
 0x8f2   : > { %v1389_v50 = vmul.f32 %v1754_v47, %v1382_v48 }
 0x8f4   : > { %v1396_v51 = vadd.f32 %v1755_v49, %v1389_v50 }
 0x8f6   : > { %v1397_v52 = vpack.c.bf16 %v1396_v51, %v1396_v51 }
 0x8f8   : > { %1884 = vmatmul.mubr.msk.bf16.vlgmr.msra.gmra.mrb[24].mxu1 %vm632_vm0, %v1397_v52 }
 0x9cb   : > { %v1458_v56 = vpop.f32.mrb[24].mxu1 }
 0x9cc   : > { %v1459_v57 = vadd.f32 %v1756_v55, %v1458_v56  ;;  %v1885_v58 = vpop.f32.mrb[25].mxu1 }
 0x9cd   : > { %v1461_v59 = vpop.f32.mrb[26].mxu1 }
 0x9ce   : > { %v1464_v60 = vmax.f32 %v1459_v57, 0.0  ;;  %v1886_v61 = vpop.f32.mrb[27].mxu1 }
 0x9d0   : > { %v1465_v62 = vpack.c.bf16 %v1464_v60, %v1464_v60 }
 0x9d2   : > { %1896 = vmatmul.mubr.msk.bf16.vlgmr.msra.gmra.mrb[20].mxu0 %vm1505_vm10, %v1465_v62 }
 0xaa5   : > { %v1543_v63 = vpop.f32.mrb[20].mxu0 }
 0xaa6   : > { %v1544_v2 = vadd.f32 %v1760_v0, %v1543_v63  ;;  %v1897_v3 = vpop.f32.mrb[21].mxu0 }
 0xaa7   : > { %v1546_v4 = vpop.f32.mrb[22].mxu0 }
 0xaa8   : > { %v1549_v5 = vadd.f32 %v1544_v2, %v1366_v32  ;;  %v1898_v6 = vpop.f32.mrb[23].mxu0 }
 0xaaa   : > { %1550 = vst.msk [vmem:[%s615_s5] sm:$0xff] %vm632_vm0, %v1549_v5 }
 0xaab   : > { %2241 = shalt.err (!%p2238_p6)
}
 0xaac   : > { %s2242_s30 = scalar_lea.hbm %s2797_s15, 128  ;;  %s2246_s29 = scalar_lea.hbm %s2909_s17, 256 }
 0xaad   : > { %p2243_p7 = scmp.ne.s32.totalorder %s2797_s15, %s2242_s30  ;;  %p2247_p0 = scmp.lt.u32.totalorder %s2797_s15, %s2909_s17 }
 0xaae   : > { %p2248_p2 = scmp.lt.u32.totalorder %s2246_s29, %s2242_s30  ;;  %p2250_p1 = scmp.lt.u32.totalorder %s2242_s30, %s2797_s15 }
 0xaaf   : > { %p2244_p9 = pnand %p2243_p7, %p2910_p4 }
 0xab0   : > { %p2249_p13 = por %p2248_p2, %p2247_p0 }
 0xab1   : > { %p2245_p12 = pneg %p2244_p9 }
 0xab2   : > { %p2251_p8 = por %p2250_p1, %p2249_p13 }
 0xab4   : > { %p2252_p10 = pnand %p2251_p8, %p2245_p12 }
 0xab6   : > { %2255 = shalt.err (!%p2252_p10)
}
 0xab7   : > { %1923 = dma.vmem_to_hbm [thread:$0]  (%p2910_p4), %s2799_s27, 128, %s2797_s15, %s1552_s24  }
 0xab8 PF: > { %s2911_s3 = sld [smem:[#allocation27_spill]]  ;;  %s2912_s18 = sld [smem:[#allocation23_spill]] }
 0xab9   : > { %s2913_s22 = sld [smem:[#allocation30_spill]] }
 0xabe   : > { %p1960_p11 = scmp.ge.s32.totalorder %s2911_s3, 2  ;;  %s1578_s5 = sand.u32 1, %s2912_s18  }
 0xabf   : > { %p2914_p3 = scmp.ne.s32.totalorder %s2913_s22, 0  ;;  %s1579_s13 = scalar_lea.sflag [#allocation8], %s1578_s5 }
 0xac1   : > { %p1945_p5 = pnand %p1960_p11, %p2914_p3 }
 0xac3   : > { %2297 = dma.done.wait (!%p1945_p5), %s1579_s13, 128  }
 0xac4   : > { %2299 = vsyncadd (!%p1945_p5), %s1579_s13, 4294967168  ;;  %s33_s26 = sadd.s32 1, %s2911_s3   ;;  %s2915_s21 = sld [smem:[#allocation24_spill]] }
 0xac5   : > { %p30_p6 = scmp.ge.s32.totalorder %s33_s26, 4   ;;  %s2916_s22 = sld [smem:[#allocation25_spill]] }
 0xac6   : > { %s2917_s23 = sld [smem:[#allocation31_spill]]  ;;  %s2918_s24 = sld [smem:[#allocation26_spill]] }
 0xac7   : > { %s2919_s25 = sld [smem:[#allocation28_spill]]  ;;  %32 = sbr.rel (!%p30_p6) target bundleno = 16 (0x10), region = 153 }
 0xace   :  { %1584 = vsyncpa [#allocation7], 1 }
 0xacf   :  { %1586 = vsyncpa [#allocation7 + $0x1], 1 }
 0xad0   :  { %1587 = vsyncpa [#allocation10], 1 }
 0xad1   :  { %1588 = vsyncpa [#allocation13], 1 }
 0xad2   :  { %1589 = vsyncpa [#allocation16], 1 }
 0xad3   :  { %1590 = vsyncpa [#allocation8], 1 }
 0xad4   :  { %1592 = vsyncpa [#allocation8 + $0x1], 1 }

// kernel: tpu_custom_call.1
= control target key start
LH: loop header
LB: loop body
LE: loop exit
PB: predicated region body
PF: predicated region fallthrough
CT: control target
= control target key end

     0   :  { %s2845_s0 = inlined_call_operand.vmem [shape: f32[2,8,32], index: 0, kind: input, shape index: {}]   ;;  %s2846_s1 = inlined_call_operand.vmem [shape: f32[2,1,8], index: 1, kind: input, shape index: {}]   ;;  %s2847_s2 = inlined_call_operand.vmem [shape: bf16[32,32], index: 2, kind: input, shape index: {}]   ;;  %s2848_s3 = inlined_call_operand.hbm [shape: f32[1,32], index: 3, kind: input, shape index: {}]   ;;  %s2849_s4 = inlined_call_operand.vmem [shape: bf16[32,64], index: 4, kind: input, shape index: {}]   ;;  %s2850_s5 = inlined_call_operand.hbm [shape: f32[1,64], index: 5, kind: input, shape index: {}]   ;;  %s2851_s6 = inlined_call_operand.hbm [shape: bf16[32,32], index: 6, kind: input, shape index: {}]   ;;  %s2852_s7 = inlined_call_operand.hbm [shape: f32[1,32], index: 7, kind: input, shape index: {}]   ;;  %s2853_s8 = inlined_call_operand.hbm [shape: f32[1,32], index: 8, kind: input, shape index: {}]   ;;  %s2854_s9 = inlined_call_operand.hbm [shape: f32[1,32], index: 9, kind: input, shape index: {}]   ;;  %s2855_s10 = inlined_call_operand.vmem [shape: f32[1,32], index: 10, kind: input, shape index: {}]   ;;  %s2856_s11 = inlined_call_operand.vmem [shape: f32[1,32], index: 11, kind: input, shape index: {}]   ;;  %s2857_s12 = inlined_call_operand.vmem [shape: bf16[32,64], index: 12, kind: input, shape index: {}]   ;;  %s2858_s13 = inlined_call_operand.vmem [shape: f32[1,64], index: 13, kind: input, shape index: {}]   ;;  %s2859_s14 = inlined_call_operand.vmem [shape: bf16[64,32], index: 14, kind: input, shape index: {}]   ;;  %s2860_s15 = inlined_call_operand.vmem [shape: f32[1,32], index: 15, kind: input, shape index: {}]   ;;  %s2861_s16 = inlined_call_operand.hbm [shape: f32[2,8,32], index: 16, kind: output, shape index: {}]  }
   0x1   :  { %2877 = sst [smem:[#allocation32_spill]] %s2845_s0 }
   0x2   :  { %2878 = sst [smem:[#allocation33_spill]] %s2848_s3 }
   0x3   :  { %2879 = sst [smem:[#allocation34_spill]] %s2850_s5 }
   0x4   :  { %2880 = sst [smem:[#allocation35_spill]] %s2852_s7 }
   0x5   :  { %2881 = sst [smem:[#allocation36_spill]] %s2858_s13 }
   0x6   :  { %2882 = sst [smem:[#allocation37_spill]] %s2860_s15 }
   0x7   :  { %2883 = sst [smem:[#allocation38_spill]] %s2861_s16 }
   0x8   :  { %21 = vsyncpa [#allocation7], 0 }
   0x9   :  { %22 = vsyncpa [#allocation10], 0 }
   0xa   :  { %23 = vsyncpa [#allocation13], 0 }
   0xb   :  { %24 = vsyncpa [#allocation16], 0 }
   0xc   :  { %25 = vsyncpa [#allocation8], 0 }
   0xd   :  { %27 = vsyncpa [#allocation8 + $0x1], 0  ;;  %s2427_s21 = smov 0   ;;  %s2429_s22 = smov 0  }
   0xe   :  { %s2431_s23 = smov 0   ;;  %s2433_s24 = smov 0  }
   0xf   :  { %s2435_s25 = smov 0   ;;  %s2437_s26 = smov 0  }
  0x10 LB: > { %2884 = sst [smem:[#allocation23_spill]] %s2302_s21  ;;  %s1707_s27 = sadd.s32 4294967295, %s2322_s26   ;;  %s2322_s26 = sphi %s2437_s26, %s33_s26   ;;  %s2318_s25 = sphi %s2435_s25, %s2919_s25   ;;  %s2314_s24 = sphi %s2433_s24, %s2918_s24   ;;  %s2310_s23 = sphi %s2431_s23, %s2917_s23   ;;  %s2306_s22 = sphi %s2429_s22, %s2916_s22   ;;  %s2302_s21 = sphi %s2427_s21, %s2915_s21  }
  0x11   : > { %2885 = sst [smem:[#allocation24_spill]] %s2306_s22  ;;  %s1708_s28 = sadd.s32 4294967294, %s2322_s26  }
  0x12   : > { %2886 = sst [smem:[#allocation25_spill]] %s2310_s23  ;;  %s45_s29 = sadd.s32 1, %s2318_s25 }
  0x13   : > { %2887 = sst [smem:[#allocation26_spill]] %s2318_s25  ;;  %s400_s30 = sadd.s32 1, %s2310_s23 }
  0x14   : > { %2888 = sst [smem:[#allocation27_spill]] %s2322_s26  ;;  %p47_p0 = scmp.ge.s32.totalorder %s45_s29, 2 }
  0x15   : > { %p410_p1 = scmp.ne.s32.totalorder %s2310_s23, %s2306_s22  ;;  %p411_p2 = scmp.eq.s32.totalorder %s1707_s27, 1 }
  0x16   : > { %p416_p3 = scmp.ne.s32.totalorder %s2306_s22, %s2302_s21  ;;  %s2921_s29 = smov (%p47_p0, %s45_s29), 0 }
  0x17   : > { %2889 = sst [smem:[#allocation28_spill]] %s2921_s29  ;;  %p2467_p4 = por %p411_p2, %p410_p1 }
  0x18   : > { %p417_p5 = scmp.eq.s32.totalorder %s1708_s28, 1  ;;  %s395_s17 = ssub.s32 %s2318_s25, %s2921_s29 }
  0x19   : > { %s2890_s0 = scalar_select %p2467_p4, 1, 0 }
  0x1a   : > { %p1709_p6 = scmp.ge.s32.totalorder %s2322_s26, 1  ;;  %p398_p7 = scmp.eq.s32.totalorder %s395_s17, 0 }
  0x1b   : > { %2891 = sst [smem:[#allocation29_spill]] %s2890_s0  ;;  %p2474_p8 = por %p417_p5, %p416_p3 }
  0x1c   : > { %p424_p9 = scmp.lt.s32.totalorder %s2322_s26, 3  ;;  %p2486_p11 = scmp.eq.s32.totalorder %s1707_s27, 0 }
  0x1d   : > { %s2892_s18 = scalar_select %p2474_p8, 1, 0 }
  0x1e   : > { %s2480_s19 = scalar_select %p398_p7, %s2310_s23, %s400_s30  }
  0x1f   : > { %2893 = sst [smem:[#allocation30_spill]] %s2892_s18  ;;  %p2482_p10 = pnand %p1709_p6, %p424_p9 }
  0x20   : > { %2894 = sst [smem:[#allocation31_spill]] %s2480_s19  ;;  %s2324_s28 = smov [#allocation9]  }
  0x21   : > { %s2895_s20 = scalar_select %p2482_p10, 1, 0 }
  0x22   : > { %s2896_s21 = scalar_select %p2486_p11, 1, 0 }
  0x23   : > { %p1925_p12 = pneg %p2482_p10  ;;  %s454_s17 = sshll.u32 %s2324_s28, 4  ;;  %s455_s17 = int_to_ptr.vmem [resolvable:$true] %s454_s17 }
  0x24   : > { %s2325_s29 = smov [#allocation12]   ;;  %s2898_s5 = sld [smem:[#allocation34_spill]] }
  0x25   : > { %s478_s25 = sshll.u32 %s2325_s29, 4  ;;  %p2494_p13 = pnand %p2486_p11, %p1925_p12  ;;  %s2498_s25 = int_to_ptr.vmem [resolvable:$true] %s478_s25 }
  0x27   : > { %p2508_p1 = pneg %p2494_p13 }
  0x2a   : > { %s2060_s23 = scalar_lea.hbm %s2898_s5, 16 }
  0x2b   : > { %p2061_p0 = scmp.ne.s32.totalorder %s2898_s5, %s2060_s23  ;;  %p2067_p5 = scmp.lt.u32.totalorder %s2060_s23, %s2898_s5 }
  0x2d   : > { %p2063_p2 = pnand %p2508_p1, %p2061_p0 }
  0x2f   : > { %p2064_p3 = pneg %p2063_p2 }
  0x31   : > { %p2069_p6 = pnand %p2067_p5, %p2064_p3 }
  0x33   : > { %2072 = shalt.err (!%p2069_p6)
}
  0x34   : > { %s2073_s19 = scalar_lea.vmem %s455_s17, 16  ;;  %s2080_s26 = scalar_lea.vmem %s455_s17, 32 }
  0x35   : > { %p2074_p7 = scmp.ne.s32.totalorder %s455_s17, %s2073_s19  ;;  %p2081_p8 = scmp.lt.s32.totalorder %s455_s17, %s455_s17 }
  0x36   : > { %p2082_p4 = scmp.lt.s32.totalorder %s2080_s26, %s2073_s19 }
  0x37   : > { %p2076_p9 = pnand %p2074_p7, %p2508_p1 }
  0x38   : > { %p2083_p11 = por %p2082_p4, %p2081_p8 }
  0x39   : > { %p2077_p12 = pneg %p2076_p9 }
  0x3b   : > { %p2084_p10 = pnand %p2083_p11, %p2077_p12 }
  0x3d   : > { %2087 = shalt.err (!%p2084_p10)
}
  0x3e   : > { %1931 = dma.hbm_to_vmem [thread:$0]  (!%p2494_p13), %s2898_s5, 16, %s455_s17, [#allocation10]  }
  0x3f   : > { %s2900_s7 = sld [smem:[#allocation35_spill]] }
  0x45   : > { %s2088_s29 = scalar_lea.hbm %s2900_s7, 16 }
  0x46   : > { %p2089_p0 = scmp.ne.s32.totalorder %s2900_s7, %s2088_s29  ;;  %p2095_p8 = scmp.lt.u32.totalorder %s2088_s29, %s2900_s7 }
  0x48   : > { %p2091_p2 = pnand %p2089_p0, %p2508_p1 }
  0x4a   : > { %p2092_p4 = pneg %p2091_p2 }
  0x4c   : > { %p2097_p10 = pnand %p2095_p8, %p2092_p4 }
  0x4e   : > { %2100 = shalt.err (!%p2097_p10)
}
  0x4f   : > { %s2101_s17 = scalar_lea.vmem %s2498_s25, 16  ;;  %s2108_s15 = scalar_lea.vmem %s2498_s25, 32 }
  0x50   : > { %p2102_p11 = scmp.ne.s32.totalorder %s2498_s25, %s2101_s17  ;;  %p2109_p6 = scmp.lt.s32.totalorder %s2498_s25, %s2498_s25 }
  0x51   : > { %p2110_p7 = scmp.lt.s32.totalorder %s2108_s15, %s2101_s17 }
  0x52   : > { %p2104_p3 = pnand %p2102_p11, %p2508_p1 }
  0x53   : > { %p2111_p9 = por %p2110_p7, %p2109_p6 }
  0x54   : > { %p2105_p5 = pneg %p2104_p3 }
  0x56   : > { %p2112_p12 = pnand %p2111_p9, %p2105_p5 }
  0x58   : > { %2115 = shalt.err (!%p2112_p12)
}
  0x59   : > { %1937 = dma.hbm_to_vmem [thread:$0]  (!%p2494_p13), %s2900_s7, 16, %s2498_s25, [#allocation13]  }
  0x5a   : > { %s2326_s27 = smov [#allocation6]   ;;  %s2327_s23 = smov [#allocation11]  }
  0x5b   : > { %s440_s16 = sshll.u32 %s2326_s27, 4  ;;  %s464_s29 = sshll.u32 %s2327_s23, 4  ;;  %s441_s16 = int_to_ptr.vmem [resolvable:$true] %s440_s16  ;;  %s465_s29 = int_to_ptr.vmem [resolvable:$true] %s464_s29 }
  0x5c   : > { %s2901_s3 = sld [smem:[#allocation33_spill]] }
  0x62   : > { %s2116_s17 = scalar_lea.hbm %s2901_s3, 16 }
  0x63   : > { %p2117_p0 = scmp.ne.s32.totalorder %s2901_s3, %s2116_s17  ;;  %p2123_p8 = scmp.lt.u32.totalorder %s2116_s17, %s2901_s3 }
  0x65   : > { %p2119_p2 = pnand %p2117_p0, %p2508_p1 }
  0x67   : > { %p2120_p4 = pneg %p2119_p2 }
  0x69   : > { %p2125_p10 = pnand %p2123_p8, %p2120_p4 }
  0x6b   : > { %2128 = shalt.err (!%p2125_p10)
}
  0x6c   : > { %s2129_s25 = scalar_lea.vmem %s441_s16, 16  ;;  %s2136_s18 = scalar_lea.vmem %s441_s16, 32 }
  0x6d   : > { %p2130_p11 = scmp.ne.s32.totalorder %s441_s16, %s2129_s25  ;;  %p2137_p6 = scmp.lt.s32.totalorder %s441_s16, %s441_s16 }
  0x6e   : > { %p2138_p7 = scmp.lt.s32.totalorder %s2136_s18, %s2129_s25 }
  0x6f   : > { %p2132_p3 = pnand %p2130_p11, %p2508_p1 }
  0x70   : > { %p2139_p9 = por %p2138_p7, %p2137_p6 }
  0x71   : > { %p2133_p5 = pneg %p2132_p3 }
  0x73   : > { %p2140_p12 = pnand %p2139_p9, %p2133_p5 }
  0x75   : > { %2143 = shalt.err (!%p2140_p12)
}
  0x76   : > { %1928 = dma.hbm_to_vmem [thread:$0]  (!%p2494_p13), %s2901_s3, 16, %s441_s16, [#allocation7]  }
  0x77   : > { %s2144_s19 = scalar_lea.hbm %s2851_s6, 256 }
  0x78   : > { %p2145_p0 = scmp.ne.s32.totalorder %s2851_s6, %s2144_s19  ;;  %p2151_p8 = scmp.lt.u32.totalorder %s2144_s19, %s2851_s6 }
  0x7a   : > { %p2147_p2 = pnand %p2145_p0, %p2508_p1 }
  0x7c   : > { %p2148_p4 = pneg %p2147_p2 }
  0x7e   : > { %p2153_p10 = pnand %p2151_p8, %p2148_p4 }
  0x80   : > { %2156 = shalt.err (!%p2153_p10)
}
  0x81   : > { %s2157_s25 = scalar_lea.vmem %s465_s29, 256  ;;  %p2165_p6 = scmp.lt.s32.totalorder %s465_s29, %s465_s29 }
  0x82   : > { %p2158_p11 = scmp.ne.s32.totalorder %s465_s29, %s2157_s25  ;;  %p2166_p7 = scmp.lt.s32.totalorder %s2157_s25, %s2157_s25 }
  0x84   : > { %p2160_p3 = pnand %p2158_p11, %p2508_p1  ;;  %p2167_p9 = por %p2166_p7, %p2165_p6 }
  0x86   : > { %p2161_p5 = pneg %p2160_p3 }
  0x88   : > { %p2168_p12 = pnand %p2167_p9, %p2161_p5 }
  0x8a   : > { %2171 = shalt.err (!%p2168_p12)
}
  0x8b   : > { %s2328_s16 = smov 64   ;;  %s2329_s18 = smov 4  }
  0x8c   : > { %1934 = dma.hbm_to_vmem [thread:$0]  (!%p2494_p13), %s2851_s6, 256, %s465_s29, [#allocation10], %s2328_s16, %s2328_s16, %s2329_s18  }
  0x8d   : > { %s2330_s13 = smov [#allocation14]   ;;  %s2331_s19 = smov [#allocation15]  }
  0x8e   : > { %s489_s23 = sshll.u32 %s2330_s13, 4  ;;  %s500_s26 = sshll.u32 %s2331_s19, 4  ;;  %s490_s23 = int_to_ptr.vmem [resolvable:$true] %s489_s23  ;;  %s501_s26 = int_to_ptr.vmem [resolvable:$true] %s500_s26 }
  0x8f   : > { %s2172_s0 = scalar_lea.hbm %s2853_s8, 16 }
  0x90   : > { %p2173_p0 = scmp.ne.s32.totalorder %s2853_s8, %s2172_s0  ;;  %p2179_p8 = scmp.lt.u32.totalorder %s2172_s0, %s2853_s8 }
  0x92   : > { %p2175_p2 = pnand %p2173_p0, %p2508_p1 }
  0x94   : > { %p2176_p4 = pneg %p2175_p2 }
  0x96   : > { %p2181_p10 = pnand %p2179_p8, %p2176_p4 }
  0x98   : > { %2184 = shalt.err (!%p2181_p10)
}
  0x99   : > { %s2185_s29 = scalar_lea.vmem %s490_s23, 16  ;;  %s2192_s16 = scalar_lea.vmem %s490_s23, 32 }
  0x9a   : > { %p2186_p11 = scmp.ne.s32.totalorder %s490_s23, %s2185_s29  ;;  %p2193_p6 = scmp.lt.s32.totalorder %s490_s23, %s490_s23 }
  0x9b   : > { %p2194_p7 = scmp.lt.s32.totalorder %s2192_s16, %s2185_s29 }
  0x9c   : > { %p2188_p3 = pnand %p2186_p11, %p2508_p1 }
  0x9d   : > { %p2195_p9 = por %p2194_p7, %p2193_p6 }
  0x9e   : > { %p2189_p5 = pneg %p2188_p3 }
  0xa0   : > { %p2196_p12 = pnand %p2195_p9, %p2189_p5 }
  0xa2   : > { %2199 = shalt.err (!%p2196_p12)
}
  0xa3   : > { %1940 = dma.hbm_to_vmem [thread:$0]  (!%p2494_p13), %s2853_s8, 16, %s490_s23, [#allocation13]  }
  0xa4   : > { %s2200_s5 = scalar_lea.hbm %s2854_s9, 16 }
  0xa5   : > { %p2201_p0 = scmp.ne.s32.totalorder %s2854_s9, %s2200_s5  ;;  %p2207_p8 = scmp.lt.u32.totalorder %s2200_s5, %s2854_s9 }
  0xa7   : > { %p2203_p2 = pnand %p2201_p0, %p2508_p1 }
  0xa9   : > { %p2204_p4 = pneg %p2203_p2 }
  0xab   : > { %p2209_p10 = pnand %p2207_p8, %p2204_p4 }
  0xad   : > { %2212 = shalt.err (!%p2209_p10)
}
  0xae   : > { %s2213_s15 = scalar_lea.vmem %s501_s26, 16  ;;  %s2220_s23 = scalar_lea.vmem %s501_s26, 32 }
  0xaf   : > { %p2214_p11 = scmp.ne.s32.totalorder %s501_s26, %s2213_s15  ;;  %p2221_p6 = scmp.lt.s32.totalorder %s501_s26, %s501_s26 }
  0xb0   : > { %p2222_p7 = scmp.lt.s32.totalorder %s2220_s23, %s2213_s15 }
  0xb1   : > { %p2216_p3 = pnand %p2214_p11, %p2508_p1 }
  0xb2   : > { %p2223_p9 = por %p2222_p7, %p2221_p6 }
  0xb3   : > { %p2217_p5 = pneg %p2216_p3 }
  0xb5   : > { %p2224_p12 = pnand %p2223_p9, %p2217_p5 }
  0xb7   : > { %2227 = shalt.err (!%p2224_p12)
}
  0xb8   : > { %1943 = dma.hbm_to_vmem [thread:$0]  (!%p2494_p13), %s2854_s9, 16, %s501_s26, [#allocation16]  }
  0xb9   : > { %p2902_p0 = scmp.ne.s32.totalorder %s2895_s20, 0 }
  0xba   : > { %p2903_p2 = scmp.ne.s32.totalorder (!%p2902_p0), %s2896_s21, 0 }
  0xbb   : > { %544 = sbr.rel (%p2902_p0) target bundleno = 2744 (0xab8), region = 84 }
  0xc2   : > { %2281 = dma.done.wait (%p2903_p2), [#allocation7], 16  }
  0xc3   : > { %2283 = vsyncadd (%p2903_p2), [#allocation7], 4294967280 }
  0xc4   : > { %2285 = dma.done.wait (%p2903_p2), [#allocation10], 272  }
  0xc5   : > { %2287 = vsyncadd (%p2903_p2), [#allocation10], 4294967024 }
  0xc6   : > { %2289 = dma.done.wait (%p2903_p2), [#allocation13], 32  }
  0xc7   : > { %2291 = vsyncadd (%p2903_p2), [#allocation13], 4294967264 }
  0xc8   : > { %2293 = dma.done.wait (%p2903_p2), [#allocation16], 16  }
  0xc9   : > { %2295 = vsyncadd (%p2903_p2), [#allocation16], 4294967280  ;;  %p616_p13 = scmp.lt.s32.totalorder %s2314_s24, 1  ;;  %v2332_v0 = vmov 0.0   ;;  %s2904_s29 = sld [smem:[#allocation32_spill]]  ;;  %vm632_vm0 = vcmask 261120   ;;  %v818_v49 = vlaneseq }
  0xca   : > { %1807 = vmatprep.subr.bf16.mxu1 %v2332_v0  ;;  %1823 = vmatprep.subr.bf16.mxu0 %v2332_v0  ;;  %v2026_v8 = vld [vmem:[%s2849_s4] sm:$0xff]   ;;  %vm2333_vm1 = vmmov 0   ;;  %v2027_v9 = vld [vmem:[%s2849_s4 + $0x8] sm:$0xff]   ;;  %vm662_vm2 = vcmask 257024   ;;  %v1728_v23 = vld [vmem:[#allocation9] ss:$0 sm:$0xff] }
  0xcb   : > { %s2642_s20 = scalar_select %p616_p13, %s2314_s24, 1  ;;  %1811 = vmatprep.mubr.msk.bf16.mxu1 %vm2333_vm1, %v2332_v0  ;;  %1825 = vmatprep.mubr.msk.bf16.mxu0 %vm2333_vm1, %v2332_v0  ;;  %v1726_v14 = vld [vmem:[#allocation14] ss:$0 sm:$0xff]  ;;  %v1727_v16 = vld [vmem:[#allocation15] ss:$0 sm:$0xff]  ;;  %vm823_vm3 = vcmask 64512  }
  0xcc   : > { %1808 = vmatpush3.bf16.msra.mxu1 %v2026_v8  ;;  %v2028_v19 = vld [vmem:[%s2847_s2] sm:$0xff]   ;;  %v2029_v21 = vld [vmem:[%s2847_s2 + $0x8] sm:$0xff]   ;;  %v1733_v32 = vld [vmem:[#allocation6] ss:$0 sm:$0xff]  ;;  %s2334_s19 = smov 112   ;;  %s2335_s17 = smov 120  }
  0xcd   : > { %s1725_s30 = sshll.u32 %s2642_s20, 3  ;;  %1809 = vmatprep.subr.bf16.mxu1 %v2332_v0  ;;  %s2336_s15 = smov 104   ;;  %v819_v51 = vshrl.u32 %v818_v49, 7  ;;  %vm885_vm5 = vcmask 1043456   ;;  %vm930_vm6 = vcmask 60416   ;;  %vm1056_vm7 = vcmask 126016  }
  0xce   : > { %s622_s25 = scalar_lea.vmem %s2846_s1, %s2642_s20  ;;  %s2337_s20 = smov 96   ;;  %vm1175_vm8 = vcmask 191616   ;;  %vm1294_vm9 = vcmask 257216   ;;  %vm1505_vm10 = vcmask 523264  }
  0xcf   : > { %s619_s16 = scalar_lea.vmem %s2904_s29, %s1725_s30  ;;  %v811_v50 = vld [vmem:[%s622_s25] sm:$0x1]  ;;  %v820_v52 = vsub.s32 0, %v819_v51  ;;  %s2338_s30 = smov 8  }
  0xd0   : > { %v2648_v1 = vld [vmem:[%s619_s16] sm:$0xff]  ;;  %1810 = vmatpush3.bf16.msra.mxu1 %v2027_v9  ;;  %vm812_vm4 = vcmp.eq.f32.partialorder %v811_v50, 0.0  ;;  %s2339_s28 = smov 16   ;;  %s2340_s26 = smov 24  }
  0xd1   : > { %v633_v2 = vsel %vm632_vm0, %v2648_v1, 0.0  ;;  %1815 = vmatprep.subr.bf16.mxu1 %v2332_v0  ;;  %v813_v53 = vsel %vm812_vm4, -1e+09, %v2332_v0  ;;  %s2905_s0 = sld [smem:[#allocation24_spill]]  ;;  %s2907_s18 = sld [smem:[#allocation37_spill]] }
  0xd2   : > { %634 = vadd.xlane.f32.xlu0 %v633_v2  ;;  %v821_v54 = vrot.slane %v813_v53, %v820_v52  ;;  %s2908_s7 = sld [smem:[#allocation29_spill]]  ;;  %s1767_s22 = sshll.u32 %s2314_s24, 7 }
  0xd7   : > { %s613_s29 = sand.u32 1, %s2905_s0   ;;  %s2341_s0 = smov [#allocation17]  }
  0xd8   : > { %s1724_s16 = sshll.u32 %s613_s29, 3  ;;  %s1552_s24 = scalar_lea.sflag [#allocation8], %s613_s29 }
  0xd9   : > { %s615_s5 = scalar_lea.vmem [#allocation17], %s1724_s16  ;;  %p2910_p4 = scmp.ne.s32.totalorder %s2908_s7, 0 }
  0xda   : > { %s1566_s27 = sshll.u32 %s615_s5, 4  ;;  %s2232_s25 = sshll.u32 %s2341_s0, 4  ;;  %s2799_s27 = int_to_ptr.vmem [resolvable:$true] %s1566_s27  ;;  %s2233_s25 = int_to_ptr.vmem [resolvable:$false] %s2232_s25 }
  0xdb   : > { %s2228_s23 = scalar_lea.vmem %s2799_s27, 128  ;;  %p2235_p11 = scmp.lt.s32.totalorder %s2799_s27, %s2233_s25 }
  0xdc   : > { %p2229_p1 = scmp.ne.s32.totalorder %s2799_s27, %s2228_s23 }
  0xde   : > { %p2230_p8 = pnand %p2229_p1, %p2910_p4 }
  0xe0   : > { %p2231_p10 = pneg %p2230_p8 }
 0x15f   : > { %v635_v3 = vpop.xlane.xlu0 %634 }
 0x160   : > { %v637_v4 = vmul.f32 0.03125, %v635_v3 }
 0x162   : > { %v638_v5 = vsub.f32 %v2648_v1, %v637_v4 }
 0x164   : > { %v639_v6 = vmul.f32 %v638_v5, %v638_v5 }
 0x166   : > { %v640_v7 = vsel %vm632_vm0, %v639_v6, 0.0 }
 0x167   : > { %641 = vadd.xlane.f32.xlu0 %v640_v7 }
 0x1f4   : > { %v642_v10 = vpop.xlane.xlu0 %641 }
 0x1f5   : > { %v643_v11 = vmul.f32 0.03125, %v642_v10 }
 0x1f7   : > { %v644_v12 = vadd.f32 1e-06, %v643_v11 }
 0x1f9   : > { %2040 = vrsqrt.f32 %v644_v12 }
 0x203   : > { %v2041_v13 = vpop.eup %2040 }
 0x204   : > { %v646_v15 = vmul.f32 %v2041_v13, %v638_v5 }
 0x206   : > { %v653_v17 = vmul.f32 %v1726_v14, %v646_v15 }
 0x208   : > { %v660_v18 = vadd.f32 %v1727_v16, %v653_v17 }
 0x20a   : > { %v661_v20 = vpack.c.bf16 %v660_v18, %v660_v18 }
 0x20c   : > { %663 = vst.msk [vmem:[#allocation2] sm:$0xf] %vm662_vm2, %v661_v20  ;;  %1812 = vmatmul.mubr.msk.bf16.vlgmr.msra.gmra.mrb[0].mxu1 %vm632_vm0, %v661_v20 }
 0x20d   : > { %1816 = vmatpush3.bf16.msra.mxu1 %v2028_v19  ;;  %1819 = vmatprep.mubr.msk.bf16.mxu1 %vm2333_vm1, %v2332_v0 }
 0x20e   : > { %1817 = vmatprep.subr.bf16.mxu1 %v2332_v0 }
 0x211   : > { %1818 = vmatpush3.bf16.msra.mxu1 %v2029_v21 }
 0x212   : > { %1829 = vmatprep.subr.bf16.mxu1 %v2332_v0 }
 0x213   : > { %v743_v22 = vld [vmem:[#allocation2] sm:$0xf] }
 0x214   : > { %1820 = vmatmul.mubr.msk.bf16.vlgmr.msra.gmra.mrb[4].mxu1 %vm632_vm0, %v743_v22 }
 0x215   : > { %1831 = vmatprep.mubr.msk.bf16.mxu1 %vm2333_vm1, %v2332_v0 }
 0x2df   : > { %v724_v24 = vpop.f32.mrb[0].mxu1 }
 0x2e0   : > { %v725_v25 = vadd.f32 %v1728_v23, %v724_v24  ;;  %v1813_v26 = vpop.f32.mrb[1].mxu1 }
 0x2e1   : > { %v727_v27 = vpop.f32.mrb[2].mxu1 }
 0x2e2   : > { %v2681_v28 = vpack.c.bf16 %v725_v25, %v725_v25  ;;  %v1814_v29 = vpop.f32.mrb[3].mxu1 }
 0x2e4   : > { %731 = vst.msk [vmem:[#allocation3] sm:$0xf] %vm662_vm2, %v2681_v28 }
 0x2e7   : > { %v805_v30 = vpop.f32.mrb[4].mxu1 }
 0x2e8   : > { %v1821_v31 = vpop.f32.mrb[5].mxu1  ;;  %v806_v36 = vadd.f32 %v1733_v32, %v805_v30 }
 0x2e9   : > { %v808_v33 = vpop.f32.mrb[6].mxu1 }
 0x2ea   : > { %v1822_v34 = vpop.f32.mrb[7].mxu1  ;;  %v816_v39 = vpack.c.bf16 %v806_v36, %v806_v36 }
 0x2eb   : > { %v814_v35 = vld [vmem:[#allocation3] sm:$0xf] }
 0x2ec   : > { %v828_v37 = vsel %vm823_vm3, %v814_v35, 0  ;;  %v1739_v38 = vcombine.low %v814_v35, %v814_v35 }
 0x2ed   : > { %1824 = vmatpush3.bf16.xpose.msra.mxu0 %v828_v37 }
 0x2ee   : > { %1060 = vrot.lane.b32.xlu0 %v1739_v38, %s2334_s19  ;;  %938 = vrot.lane.b32.xlu1 %v1739_v38, %s2335_s17 }
 0x2ef   : > { %1835 = vmatprep.subr.bf16.mxu0 %v2332_v0 }
 0x2f2   : > { %933 = vrot.lane.b32.xlu1 %v816_v39, %s2335_s17 }
 0x2f4   : > { %1826 = vmatmul.mubr.msk.bf16.vlgmr.msra.gmra.mrb[0].mxu0 %vm823_vm3, %v816_v39 }
 0x2f5   : > { %1837 = vmatprep.mubr.msk.bf16.mxu0 %vm2333_vm1, %v2332_v0 }
 0x2f6   : > { %1058 = vrot.lane.b32.xlu1 %v816_v39, %s2334_s19 }
 0x2fa   : > { %1179 = vrot.lane.b32.xlu1 %v1739_v38, %s2336_s15 }
 0x2fe   : > { %1177 = vrot.lane.b32.xlu1 %v816_v39, %s2336_s15 }
 0x360   : > { %v939_v40 = vpop.permute.xlu1 %938  ;;  %v1061_v43 = vpop.permute.xlu0 %1060 }
 0x361   : > { %v944_v41 = vsel %vm823_vm3, %v939_v40, 0  ;;  %v1066_v45 = vsel %vm823_vm3, %v1061_v43, 0 }
 0x362   : > { %1836 = vmatpush3.bf16.xpose.msra.mxu0 %v944_v41 }
 0x363   : > { %1847 = vmatprep.subr.bf16.mxu0 %v2332_v0 }
 0x364   : > { %v934_v42 = vpop.permute.xlu1 %933 }
 0x368   : > { %v1059_v44 = vpop.permute.xlu1 %1058 }
 0x369   : > { %1838 = vmatmul.mubr.msk.bf16.vlgmr.msra.gmra.mrb[4].mxu0 %vm823_vm3, %v934_v42 }
 0x36a   : > { %1848 = vmatpush3.bf16.xpose.msra.mxu0 %v1066_v45  ;;  %1849 = vmatprep.mubr.msk.bf16.mxu0 %vm2333_vm1, %v2332_v0 }
 0x36b   : > { %1859 = vmatprep.subr.bf16.mxu0 %v2332_v0 }
 0x36c   : > { %v1180_v46 = vpop.permute.xlu1 %1179 }
 0x36d   : > { %v1185_v47 = vsel %vm823_vm3, %v1180_v46, 0 }
 0x370   : > { %v1178_v48 = vpop.permute.xlu1 %1177 }
 0x371   : > { %1850 = vmatmul.mubr.msk.bf16.vlgmr.msra.gmra.mrb[8].mxu0 %vm823_vm3, %v1059_v44 }
 0x372   : > { %1860 = vmatpush3.bf16.xpose.msra.mxu0 %v1185_v47  ;;  %1861 = vmatprep.mubr.msk.bf16.mxu0 %vm2333_vm1, %v2332_v0 }
 0x373   : > { %1871 = vmatprep.subr.bf16.mxu0 %v2332_v0 }
 0x379   : > { %1862 = vmatmul.mubr.msk.bf16.vlgmr.msra.gmra.mrb[12].mxu0 %vm823_vm3, %v1178_v48 }
 0x37a   : > { %1875 = vmatprep.mubr.msk.bf16.mxu0 %vm2333_vm1, %v2332_v0 }
 0x3c7   : > { %v864_v55 = vpop.f32.mrb[0].mxu0 }
 0x3c8   : > { %v865_v56 = vadd.f32 %v864_v55, %v821_v54  ;;  %v1827_v57 = vpop.f32.mrb[1].mxu0 }
 0x3c9   : > { %v867_v58 = vpop.f32.mrb[2].mxu0 }
 0x3ca   : > { %v1828_v59 = vpop.f32.mrb[3].mxu0  ;;  %v870_v60 = vsel %vm823_vm3, %v865_v56, -inf }
 0x3cb   : > { %871 = vmax.xlane.f32.xlu1 %v870_v60 }
 0x43c   : > { %v980_v61 = vpop.f32.mrb[4].mxu0 }
 0x43d   : > { %v981_v62 = vadd.f32 %v980_v61, %v821_v54  ;;  %v1839_v63 = vpop.f32.mrb[5].mxu0 }
 0x43e   : > { %v983_v2 = vpop.f32.mrb[6].mxu0 }
 0x43f   : > { %v1840_v3 = vpop.f32.mrb[7].mxu0  ;;  %v986_v4 = vsel %vm823_vm3, %v981_v62, -inf }
 0x440   : > { %987 = vmax.xlane.f32.xlu0 %v986_v4 }
 0x444   : > { %v1102_v5 = vpop.f32.mrb[8].mxu0 }
 0x445   : > { %v1103_v6 = vadd.f32 %v1102_v5, %v821_v54  ;;  %v1851_v7 = vpop.f32.mrb[9].mxu0 }
 0x446   : > { %v1105_v8 = vpop.f32.mrb[10].mxu0 }
 0x447   : > { %v1852_v9 = vpop.f32.mrb[11].mxu0  ;;  %v1108_v10 = vsel %vm823_vm3, %v1103_v6, -inf }
 0x448   : > { %1109 = vmax.xlane.f32.xlu1 %v1108_v10 }
 0x44c   : > { %v1221_v11 = vpop.f32.mrb[12].mxu0 }
 0x44d   : > { %v1222_v12 = vadd.f32 %v1221_v11, %v821_v54  ;;  %v1863_v13 = vpop.f32.mrb[13].mxu0  ;;  %v2032_v11 = vld [vmem:[#allocation11] sm:$0xff]  }
 0x44e   : > { %v1224_v14 = vpop.f32.mrb[14].mxu0  ;;  %1872 = vmatpush3.bf16.msra.mxu0 %v2032_v11  ;;  %v2033_v13 = vld [vmem:[#allocation11 + $0x8] sm:$0xff]  }
 0x44f   : > { %v1864_v15 = vpop.f32.mrb[15].mxu0  ;;  %v1227_v16 = vsel %vm823_vm3, %v1222_v12, -inf  ;;  %1873 = vmatprep.subr.bf16.mxu0 %v2332_v0 }
 0x450   : > { %1228 = vmax.xlane.f32.xlu1 %v1227_v16 }
 0x452   : > { %1874 = vmatpush3.bf16.msra.mxu0 %v2033_v13 }
 0x453   : > { %1887 = vmatprep.subr.bf16.mxu0 %v2332_v0 }
 0x456   : > { %735 = vrot.lane.b32.xlu0 %v2681_v28, %s2337_s20  ;;  %s2234_s20 = scalar_lea.vmem %s2233_s25, 256 }
 0x457   : > { %p2236_p3 = scmp.lt.s32.totalorder %s2234_s20, %s2228_s23 }
 0x458   : > { %v872_v17 = vpop.xlane.xlu1 %871 }
 0x459   : > { %v873_v18 = vsub.f32 %v865_v56, %v872_v17  ;;  %p2237_p5 = por %p2236_p3, %p2235_p11 }
 0x45b   : > { %v874_v19 = vmul.f32 1.442695, %v873_v18  ;;  %p2238_p6 = pnand %p2237_p5, %p2231_p10 }
 0x45d   : > { %2042 = vpow2.f32 %v874_v19 }
 0x467   : > { %v2043_v20 = vpop.eup %2042 }
 0x468   : > { %v876_v21 = vsel %vm823_vm3, %v2043_v20, 0.0 }
 0x469   : > { %877 = vadd.xlane.f32.xlu1 %v876_v21 }
 0x4cd   : > { %v988_v22 = vpop.xlane.xlu0 %987 }
 0x4ce   : > { %v989_v23 = vsub.f32 %v981_v62, %v988_v22 }
 0x4d0   : > { %v990_v24 = vmul.f32 1.442695, %v989_v23 }
 0x4d1   : > { %v736_v25 = vpop.permute.xlu0 %735 }
 0x4d2   : > { %2044 = vpow2.f32 %v990_v24  ;;  %738 = vst.msk [vmem:[#allocation4] sm:$0xf] %vm662_vm2, %v736_v25 }
 0x4d5   : > { %v1110_v26 = vpop.xlane.xlu1 %1109 }
 0x4d6   : > { %v1111_v27 = vsub.f32 %v1103_v6, %v1110_v26 }
 0x4d8   : > { %v1112_v29 = vmul.f32 1.442695, %v1111_v27 }
 0x4d9   : > { %v815_v28 = vld [vmem:[#allocation4] sm:$0xf] }
 0x4da   : > { %2046 = vpow2.f32 %v1112_v29  ;;  %v887_v30 = vsel %vm885_vm5, %v815_v28, 0  ;;  %v1741_v31 = vcombine.low %v815_v28, %v815_v28  ;;  %v1753_v29 = vld [vmem:[#allocation12] ss:$0 sm:$0xff] }
 0x4db   : > { %1830 = vmatpush3.bf16.msra.mxu1 %v887_v30 }
 0x4dc   : > { %v2045_v32 = vpop.eup %2044  ;;  %1120 = vrot.lane.b32.xlu0 %v1741_v31, %s2334_s19  ;;  %1841 = vmatprep.subr.bf16.mxu1 %v2332_v0 }
 0x4dd   : > { %v1229_v33 = vpop.xlane.xlu1 %1228  ;;  %v992_v34 = vsel %vm823_vm3, %v2045_v32, 0.0 }
 0x4de   : > { %v1230_v35 = vsub.f32 %v1222_v12, %v1229_v33  ;;  %993 = vadd.xlane.f32.xlu1 %v992_v34 }
 0x4e0   : > { %v1231_v36 = vmul.f32 1.442695, %v1230_v35  ;;  %1239 = vrot.lane.b32.xlu0 %v1741_v31, %s2336_s15 }
 0x4e2   : > { %2048 = vpow2.f32 %v1231_v36 }
 0x4e4   : > { %v2047_v37 = vpop.eup %2046 }
 0x4e5   : > { %v1114_v38 = vsel %vm823_vm3, %v2047_v37, 0.0 }
 0x4e6   : > { %1115 = vadd.xlane.f32.xlu1 %v1114_v38 }
 0x4ec   : > { %v2049_v39 = vpop.eup %2048 }
 0x4ed   : > { %v1233_v40 = vsel %vm823_vm3, %v2049_v39, 0.0 }
 0x4ee   : > { %1234 = vadd.xlane.f32.xlu1 %v1233_v40  ;;  %v2034_v40 = vld [vmem:[%s2857_s12] sm:$0xff]  }
 0x4f6   : > { %v878_v41 = vpop.xlane.xlu1 %877 }
 0x4f7   : > { %2050 = vrcp.f32 %v878_v41  ;;  %v2036_v41 = vld [vmem:[%s2859_s14] sm:$0xff]  }
 0x4ff   : > { %1001 = vrot.lane.b32.xlu1 %v1741_v31, %s2335_s17  ;;  %s2909_s17 = sld [smem:[#allocation38_spill]] }
 0x501   : > { %v2051_v42 = vpop.eup %2050 }
 0x502   : > { %v880_v43 = vmul.f32 %v2051_v42, %v2043_v20  ;;  %v2037_v42 = vld [vmem:[%s2859_s14 + $0x8] sm:$0xff]  }
 0x504   : > { %v881_v44 = vpack.c.bf16 %v880_v43, %v880_v43 }
 0x505   : > { %s2797_s15 = scalar_lea.hbm %s2909_s17, %s1767_s22 }
 0x506   : > { %1832 = vmatmul.mubr.msk.bf16.vlgmr.msra.gmra.mrb[8].mxu1 %vm823_vm3, %v881_v44 }
 0x507   : > { %1843 = vmatprep.mubr.msk.bf16.mxu1 %vm2333_vm1, %v2332_v0 }
 0x54e   : > { %v1121_v52 = vpop.permute.xlu0 %1120 }
 0x54f   : > { %v1126_v55 = vsel %vm885_vm5, %v1121_v52, 0 }
 0x552   : > { %v1240_v57 = vpop.permute.xlu0 %1239 }
 0x553   : > { %v1245_v60 = vsel %vm885_vm5, %v1240_v57, 0 }
 0x56b   : > { %v994_v45 = vpop.xlane.xlu1 %993 }
 0x56c   : > { %2052 = vrcp.f32 %v994_v45 }
 0x573   : > { %v1116_v46 = vpop.xlane.xlu1 %1115 }
 0x574   : > { %2054 = vrcp.f32 %v1116_v46 }
 0x576   : > { %v2053_v47 = vpop.eup %2052 }
 0x577   : > { %v996_v49 = vmul.f32 %v2053_v47, %v2045_v32  ;;  %v1754_v47 = vld [vmem:[%s2855_s10] ss:$0 sm:$0xff] }
 0x579   : > { %v997_v53 = vpack.c.bf16 %v996_v49, %v996_v49  ;;  %v1755_v49 = vld [vmem:[%s2856_s11] ss:$0 sm:$0xff] }
 0x57b   : > { %v1235_v48 = vpop.xlane.xlu1 %1234 }
 0x57c   : > { %2056 = vrcp.f32 %v1235_v48 }
 0x57e   : > { %v2055_v54 = vpop.eup %2054 }
 0x57f   : > { %v1002_v50 = vpop.permute.xlu1 %1001  ;;  %v1118_v56 = vmul.f32 %v2055_v54, %v2047_v37  ;;  %v2039_v54 = vld [vmem:[%s2859_s14 + $0x18] sm:$0xff]  }
 0x580   : > { %v1007_v51 = vsel %vm885_vm5, %v1002_v50, 0 }
 0x581   : > { %1842 = vmatpush3.bf16.msra.mxu1 %v1007_v51  ;;  %v1119_v58 = vpack.c.bf16 %v1118_v56, %v1118_v56 }
 0x582   : > { %1853 = vmatprep.subr.bf16.mxu1 %v2332_v0 }
 0x584   : > { %1844 = vmatmul.mubr.msk.bf16.vlgmr.msra.gmra.mrb[12].mxu1 %vm823_vm3, %v997_v53  ;;  %v2038_v53 = vld [vmem:[%s2859_s14 + $0x10] sm:$0xff]  }
 0x585   : > { %1854 = vmatpush3.bf16.msra.mxu1 %v1126_v55  ;;  %1855 = vmatprep.mubr.msk.bf16.mxu1 %vm2333_vm1, %v2332_v0 }
 0x586   : > { %1865 = vmatprep.subr.bf16.mxu1 %v2332_v0  ;;  %v2057_v59 = vpop.eup %2056 }
 0x587   : > { %v1237_v61 = vmul.f32 %v2057_v59, %v2049_v39 }
 0x589   : > { %v1238_v62 = vpack.c.bf16 %v1237_v61, %v1237_v61 }
 0x58c   : > { %1856 = vmatmul.mubr.msk.bf16.vlgmr.msra.gmra.mrb[16].mxu1 %vm823_vm3, %v1119_v58 }
 0x58d   : > { %1866 = vmatpush3.bf16.msra.mxu1 %v1245_v60  ;;  %1867 = vmatprep.mubr.msk.bf16.mxu1 %vm2333_vm1, %v2332_v0 }
 0x58e   : > { %1879 = vmatprep.subr.bf16.mxu1 %v2332_v0 }
 0x594   : > { %1868 = vmatmul.mubr.msk.bf16.vlgmr.msra.gmra.mrb[20].mxu1 %vm823_vm3, %v1238_v62 }
 0x595   : > { %1883 = vmatprep.mubr.msk.bf16.mxu1 %vm2333_vm1, %v2332_v0  ;;  %1880 = vmatpush3.bf16.msra.mxu1 %v2034_v40 }
 0x596   : > { %1881 = vmatprep.subr.bf16.mxu1 %v2332_v0 }
 0x5d9   : > { %v923_v63 = vpop.f32.mrb[8].mxu1 }
 0x5da   : > { %v929_v2 = vpack.c.bf16 %v923_v63, %v923_v63  ;;  %v1833_v3 = vpop.f32.mrb[9].mxu1 }
 0x5db   : > { %v926_v4 = vpop.f32.mrb[10].mxu1 }
 0x5dc   : > { %931 = vst.msk [vmem:[#allocation5] sm:$0xf] %vm930_vm6, %v929_v2  ;;  %v1834_v5 = vpop.f32.mrb[11].mxu1 }
 0x657   : > { %v1043_v6 = vpop.f32.mrb[12].mxu1 }
 0x658   : > { %v1771_v7 = vpack.c.bf16 %v1043_v6, %v1043_v6  ;;  %v1845_v8 = vpop.f32.mrb[13].mxu1 }
 0x659   : > { %v1046_v9 = vpop.f32.mrb[14].mxu1 }
 0x65a   : > { %1053 = vrot.lane.b32.xlu0 %v1771_v7, %s2338_s30  ;;  %v1846_v10 = vpop.f32.mrb[15].mxu1 }
 0x65f   : > { %v1162_v12 = vpop.f32.mrb[16].mxu1 }
 0x660   : > { %v1772_v14 = vpack.c.bf16 %v1162_v12, %v1162_v12  ;;  %v1857_v15 = vpop.f32.mrb[17].mxu1 }
 0x661   : > { %v1165_v16 = vpop.f32.mrb[18].mxu1 }
 0x662   : > { %1172 = vrot.lane.b32.xlu0 %v1772_v14, %s2339_s28  ;;  %v1858_v17 = vpop.f32.mrb[19].mxu1 }
 0x667   : > { %v1281_v18 = vpop.f32.mrb[20].mxu1 }
 0x668   : > { %v1773_v19 = vpack.c.bf16 %v1281_v18, %v1281_v18  ;;  %v1869_v20 = vpop.f32.mrb[21].mxu1 }
 0x669   : > { %v1284_v21 = vpop.f32.mrb[22].mxu1 }
 0x66a   : > { %1291 = vrot.lane.b32.xlu1 %v1773_v19, %s2340_s26  ;;  %v1870_v22 = vpop.f32.mrb[23].mxu1  ;;  %s2906_s26 = sld [smem:[#allocation36_spill]] }
 0x670   : > { %v1756_v55 = vld [vmem:[%s2906_s26] ss:$0 sm:$0xff] }
 0x6cc   : > { %v1054_v23 = vpop.permute.xlu0 %1053 }
 0x6cd   : > { %1057 = vst.msk [vmem:[#allocation5] sm:$0xf] %vm1056_vm7, %v1054_v23 }
 0x6d4   : > { %v1173_v24 = vpop.permute.xlu0 %1172 }
 0x6d5   : > { %1176 = vst.msk [vmem:[#allocation5] sm:$0xf] %vm1175_vm8, %v1173_v24 }
 0x6dc   : > { %v1292_v25 = vpop.permute.xlu1 %1291 }
 0x6dd   : > { %1295 = vst.msk [vmem:[#allocation5] sm:$0xf] %vm1294_vm9, %v1292_v25 }
 0x6e4   : > { %v1296_v26 = vld [vmem:[#allocation5] sm:$0xf] }
 0x6e5   : > { %1876 = vmatmul.mubr.msk.bf16.vlgmr.msra.gmra.mrb[16].mxu0 %vm632_vm0, %v1296_v26 }
 0x6e6   : > { %1895 = vmatprep.mubr.msk.bf16.mxu0 %vm2333_vm1, %v2332_v0  ;;  %1888 = vmatpush3.bf16.msra.mxu0 %v2036_v41 }
 0x6e7   : > { %1889 = vmatprep.subr.bf16.mxu0 %v2332_v0 }
 0x6ea   : > { %1890 = vmatpush3.bf16.msra.mxu0 %v2037_v42 }
 0x6eb   : > { %1891 = vmatprep.subr.bf16.mxu0 %v2332_v0 }
 0x6ee   : > { %1892 = vmatpush3.bf16.msra.mxu0 %v2038_v53 }
 0x6ef   : > { %1893 = vmatprep.subr.bf16.mxu0 %v2332_v0  ;;  %v1760_v0 = vld [vmem:[%s2907_s18] ss:$0 sm:$0xff] }
 0x6f2   : > { %1894 = vmatpush3.bf16.msra.mxu0 %v2039_v54 }
 0x7b8   : > { %v1350_v27 = vpop.f32.mrb[16].mxu0 }
 0x7b9   : > { %v1358_v28 = vadd.f32 %v1350_v27, %v2648_v1  ;;  %v1877_v30 = vpop.f32.mrb[17].mxu0  ;;  %v2035_v1 = vld [vmem:[%s2857_s12 + $0x8] sm:$0xff]  }
 0x7ba   : > { %v1353_v31 = vpop.f32.mrb[18].mxu0  ;;  %1882 = vmatpush3.bf16.msra.mxu1 %v2035_v1 }
 0x7bb   : > { %v1366_v32 = vadd.f32 %v1753_v29, %v1358_v28  ;;  %v1878_v33 = vpop.f32.mrb[19].mxu0 }
 0x7bd   : > { %v1369_v34 = vsel %vm632_vm0, %v1366_v32, 0.0 }
 0x7be   : > { %1370 = vadd.xlane.f32.xlu0 %v1369_v34 }
 0x84b   : > { %v1371_v35 = vpop.xlane.xlu0 %1370 }
 0x84c   : > { %v1373_v36 = vmul.f32 0.03125, %v1371_v35 }
 0x84e   : > { %v1374_v37 = vsub.f32 %v1366_v32, %v1373_v36 }
 0x850   : > { %v1375_v38 = vmul.f32 %v1374_v37, %v1374_v37 }
 0x852   : > { %v1376_v39 = vsel %vm632_vm0, %v1375_v38, 0.0 }
 0x853   : > { %1377 = vadd.xlane.f32.xlu1 %v1376_v39 }
 0x8e0   : > { %v1378_v43 = vpop.xlane.xlu1 %1377 }
 0x8e1   : > { %v1379_v44 = vmul.f32 0.03125, %v1378_v43 }
 0x8e3   : > { %v1380_v45 = vadd.f32 1e-06, %v1379_v44 }
 0x8e5   : > { %2058 = vrsqrt.f32 %v1380_v45 }
 0x8ef   : > { %v2059_v46 = vpop.eup %2058 }
 0x8f0   : > { %v1382_v48 = vmul.f32 %v2059_v46, %v1374_v37 }
 0x8f2   : > { %v1389_v50 = vmul.f32 %v1754_v47, %v1382_v48 }
 0x8f4   : > { %v1396_v51 = vadd.f32 %v1755_v49, %v1389_v50 }
 0x8f6   : > { %v1397_v52 = vpack.c.bf16 %v1396_v51, %v1396_v51 }
 0x8f8   : > { %1884 = vmatmul.mubr.msk.bf16.vlgmr.msra.gmra.mrb[24].mxu1 %vm632_vm0, %v1397_v52 }
 0x9cb   : > { %v1458_v56 = vpop.f32.mrb[24].mxu1 }
 0x9cc   : > { %v1459_v57 = vadd.f32 %v1756_v55, %v1458_v56  ;;  %v1885_v58 = vpop.f32.mrb[25].mxu1 }
 0x9cd   : > { %v1461_v59 = vpop.f32.mrb[26].mxu1 }
 0x9ce   : > { %v1464_v60 = vmax.f32 %v1459_v57, 0.0  ;;  %v1886_v61 = vpop.f32.mrb[27].mxu1 }
 0x9d0   : > { %v1465_v62 = vpack.c.bf16 %v1464_v60, %v1464_v60 }
 0x9d2   : > { %1896 = vmatmul.mubr.msk.bf16.vlgmr.msra.gmra.mrb[20].mxu0 %vm1505_vm10, %v1465_v62 }
 0xaa5   : > { %v1543_v63 = vpop.f32.mrb[20].mxu0 }
 0xaa6   : > { %v1544_v2 = vadd.f32 %v1760_v0, %v1543_v63  ;;  %v1897_v3 = vpop.f32.mrb[21].mxu0 }
 0xaa7   : > { %v1546_v4 = vpop.f32.mrb[22].mxu0 }
 0xaa8   : > { %v1549_v5 = vadd.f32 %v1544_v2, %v1366_v32  ;;  %v1898_v6 = vpop.f32.mrb[23].mxu0 }
 0xaaa   : > { %1550 = vst.msk [vmem:[%s615_s5] sm:$0xff] %vm632_vm0, %v1549_v5 }
 0xaab   : > { %2241 = shalt.err (!%p2238_p6)
}
 0xaac   : > { %s2242_s30 = scalar_lea.hbm %s2797_s15, 128  ;;  %s2246_s29 = scalar_lea.hbm %s2909_s17, 256 }
 0xaad   : > { %p2243_p7 = scmp.ne.s32.totalorder %s2797_s15, %s2242_s30  ;;  %p2247_p0 = scmp.lt.u32.totalorder %s2797_s15, %s2909_s17 }
 0xaae   : > { %p2248_p2 = scmp.lt.u32.totalorder %s2246_s29, %s2242_s30  ;;  %p2250_p1 = scmp.lt.u32.totalorder %s2242_s30, %s2797_s15 }
 0xaaf   : > { %p2244_p9 = pnand %p2243_p7, %p2910_p4 }
 0xab0   : > { %p2249_p13 = por %p2248_p2, %p2247_p0 }
 0xab1   : > { %p2245_p12 = pneg %p2244_p9 }
 0xab2   : > { %p2251_p8 = por %p2250_p1, %p2249_p13 }
 0xab4   : > { %p2252_p10 = pnand %p2251_p8, %p2245_p12 }
 0xab6   : > { %2255 = shalt.err (!%p2252_p10)
}
 0xab7   : > { %1923 = dma.vmem_to_hbm [thread:$0]  (%p2910_p4), %s2799_s27, 128, %s2797_s15, %s1552_s24  }
 0xab8 PF: > { %s2911_s3 = sld [smem:[#allocation27_spill]]  ;;  %s2912_s18 = sld [smem:[#allocation23_spill]] }
 0xab9   : > { %s2913_s22 = sld [smem:[#allocation30_spill]] }
 0xabe   : > { %p1960_p11 = scmp.ge.s32.totalorder %s2911_s3, 2  ;;  %s1578_s5 = sand.u32 1, %s2912_s18  }
 0xabf   : > { %p2914_p3 = scmp.ne.s32.totalorder %s2913_s22, 0  ;;  %s1579_s13 = scalar_lea.sflag [#allocation8], %s1578_s5 }
 0xac1   : > { %p1945_p5 = pnand %p1960_p11, %p2914_p3 }
 0xac3   : > { %2297 = dma.done.wait (!%p1945_p5), %s1579_s13, 128  }
 0xac4   : > { %2299 = vsyncadd (!%p1945_p5), %s1579_s13, 4294967168  ;;  %s33_s26 = sadd.s32 1, %s2911_s3   ;;  %s2915_s21 = sld [smem:[#allocation24_spill]] }
 0xac5   : > { %p30_p6 = scmp.ge.s32.totalorder %s33_s26, 4   ;;  %s2916_s22 = sld [smem:[#allocation25_spill]] }
 0xac6   : > { %s2917_s23 = sld [smem:[#allocation31_spill]]  ;;  %s2918_s24 = sld [smem:[#allocation26_spill]] }
 0xac7   : > { %s2919_s25 = sld [smem:[#allocation28_spill]]  ;;  %32 = sbr.rel (!%p30_p6) target bundleno = 16 (0x10), region = 153 }
 0xace   :  { %1584 = vsyncpa [#allocation7], 1 }
 0xacf   :  { %1586 = vsyncpa [#allocation7 + $0x1], 1 }
 0xad0   :  { %1587 = vsyncpa [#allocation10], 1 }
 0xad1   :  { %1588 = vsyncpa [#allocation13], 1 }
 0xad2   :  { %1589 = vsyncpa [#allocation16], 1 }
 0xad3   :  { %1590 = vsyncpa [#allocation8], 1 }
 0xad4   :  { %1592 = vsyncpa [#allocation8 + $0x1], 1 }

</bundles_post_ra>
